<compile_context>
chip_gen: v7x
topology: tpu7x:2x2x1
jax: 0.10.0
libtpu: 0.0.40
codegen_flags: <defaults>
</compile_context>

<pallas_src>
import numpy as np
import jax
import jax.numpy as jnp
from jax import lax
from jax.experimental import pallas as pl
from jax.experimental.pallas import tpu as pltpu


def _round_up(x, m):
    return ((x + m - 1) // m) * m


def _build_kernel(num_steps, unroll, hoist):
    """Builds the Pallas kernel body as a closure over static loop params."""

    def lif(cur, mem, beta, thr):
        """snntorch Leaky, reset_mechanism='subtract', Heaviside fire (strict >)."""
        reset = (mem > thr).astype(jnp.float32)
        mem_new = beta * mem + cur - reset * thr
        spk = (mem_new > thr).astype(jnp.float32)
        return spk, mem_new

    def conv_mp(x, W, B):
        """Conv1d (valid) + MaxPool1d(2) as one MXU matmul + one lane-aligned max.

        W columns are [even conv positions | odd conv positions], each half
        padded to a multiple of 128 lanes -> both slices are vreg-aligned.
        """
        y = jnp.dot(x, W, preferred_element_type=jnp.float32) + B
        half = W.shape[1] // 2
        return jnp.maximum(y[:, :half], y[:, half:])

    def kernel(betas_ref, thrs_ref, x_ref,
               w1_ref, b1_ref, w2_ref, b2_ref, w3_ref, b3_ref, w4_ref, b4_ref,
               wf_ref, bf_ref, cur_out, spk_out, mem_out):
        # Hoisted scalar reads (betas pre-clipped to [0, 1] in the wrapper).
        beta = [betas_ref[i] for i in range(5)]
        thr = [thrs_ref[i] for i in range(5)]

        # conv1 + maxpool1 see only the time-invariant input -> compute once.
        cur1 = conv_mp(x_ref[...], w1_ref[...], b1_ref[...])        # (N, P1)

        if hoist:
            # Rolled loop: read the weights once, outside the loop.
            mats = [(w2_ref[...], b2_ref[...]), (w3_ref[...], b3_ref[...]),
                    (w4_ref[...], b4_ref[...]), (wf_ref[...], bf_ref[...])]
            get = lambda i: mats[i]
        else:
            # Fully unrolled loop: keep reads in-loop (lower pinned live range).
            refs = [(w2_ref, b2_ref), (w3_ref, b3_ref),
                    (w4_ref, b4_ref), (wf_ref, bf_ref)]
            get = lambda i: (refs[i][0][...], refs[i][1][...])

        N = cur1.shape[0]
        P1 = cur1.shape[1]
        P2 = w2_ref.shape[1] // 2
        P3 = w3_ref.shape[1] // 2
        P4 = w4_ref.shape[1] // 2
        F = bf_ref.shape[1]

        def step(t, mems):
            mem1, mem2, mem3, mem4, mem5 = mems
            spk1, mem1 = lif(cur1, mem1, beta[0], thr[0])
            w2, b2 = get(0)
            cur2 = conv_mp(spk1, w2, b2)
            spk2, mem2 = lif(cur2, mem2, beta[1], thr[1])
            w3, b3 = get(1)
            cur3 = conv_mp(spk2, w3, b3)
            spk3, mem3 = lif(cur3, mem3, beta[2], thr[2])
            w4, b4 = get(2)
            cur4 = conv_mp(spk3, w4, b4)
            spk4, mem4 = lif(cur4, mem4, beta[3], thr[3])
            # fc1(spk4.flatten(1)) as one MXU matmul; the wrapper re-ordered the
            # torch channel-major fc weight rows to the lane-dense layout.
            wf, bf = get(3)
            cur5 = jnp.dot(spk4, wf, preferred_element_type=jnp.float32) + bf
            spk5, mem5 = lif(cur5, mem5, beta[4], thr[4])
            cur_out[t] = cur5
            spk_out[t] = spk5
            mem_out[t] = mem5
            return (mem1, mem2, mem3, mem4, mem5)

        mems0 = (jnp.zeros((N, P1), jnp.float32),    # lif1.reset_mem() ... lif5
                 jnp.zeros((N, P2), jnp.float32),
                 jnp.zeros((N, P3), jnp.float32),
                 jnp.zeros((N, P4), jnp.float32),
                 jnp.zeros((N, F), jnp.float32))
        lax.fori_loop(0, num_steps, step, mems0, unroll=unroll)

    return kernel


def _build_toeplitz_conv_pool(w_t, b_t, L_in, in_width):
    """Banded conv+pool weight for the lane-dense layout.

    Input activation: (N, in_width); real columns [0, L_in*Cin), col = l*Cin + c.
    Output of the matmul: (N, 2*P) with columns [even conv positions | odd],
    each half padded to P = round_up(Lp*Cout, 128); pad columns are exact
    zeros (zero weight + zero bias).  Pool = max of the two halves.
    """
    w_t = np.asarray(w_t, np.float32)    # (Cout, Cin, K), torch layout
    b_t = np.asarray(b_t, np.float32)    # (Cout,)
    Cout, Cin, K = w_t.shape
    Lc = L_in - K + 1                    # valid conv length
    Lp = Lc // 2                         # MaxPool1d(2), floor mode
    P = max(_round_up(Lp * Cout, 128), 128)
    W = np.zeros((in_width, 2 * P), np.float32)
    B = np.zeros((1, 2 * P), np.float32)
    for parity in range(2):              # even / odd conv output positions
        base = parity * P
        for p in range(Lp):
            l_out = 2 * p + parity
            col0 = base + p * Cout
            B[0, col0:col0 + Cout] = b_t
            for k in range(K):
                row0 = (l_out + k) * Cin
                W[row0:row0 + Cin, col0:col0 + Cout] = w_t[:, :, k].T
    return W, B, Lp, Cout, P


def net_csnn_4conv(x_ncl, params):
    """Forward pass.  x_ncl: (N, Cin, L) float32 (PyTorch NCL convention).

    Returns (cur_rec, spk_rec, mem_rec), each of shape (num_steps, N, F),
    matching torch.stack of the per-step outputs of the last Leaky layer.
    """
    num_steps = int(params["step"])
    # snntorch clamps beta to [0, 1] inside Leaky's state update -> hoist here.
    betas = jnp.clip(jnp.asarray(params["beta"], jnp.float32), 0.0, 1.0)
    thrs = jnp.asarray(params["threshold"], jnp.float32)

    N, Cin, L = x_ncl.shape
    # (N, Cin, L) -> lane-dense (N, L*Cin), col = l*Cin + c.
    x2d = jnp.transpose(x_ncl, (0, 2, 1)).reshape(N, L * Cin).astype(jnp.float32)

    # Precompute banded/Toeplitz conv+pool weights (one matmul per layer).
    ws, bs = [], []
    L_cur, C_cur, in_width = L, Cin, L * Cin
    for w, b in zip(params["conv_w"], params["conv_b"]):
        W, B, L_cur, C_cur, in_width = _build_toeplitz_conv_pool(w, b, L_cur, in_width)
        ws.append(jnp.asarray(W))
        bs.append(jnp.asarray(B))

    L4, C4, P4 = L_cur, C_cur, in_width
    fc_w = np.asarray(params["fc_w"], np.float32)    # (F, C4*L4), torch layout
    fc_b = np.asarray(params["fc_b"], np.float32)    # (F,)
    F = fc_w.shape[0]
    assert fc_w.shape[1] == C4 * L4, "fc1 in_features must equal C4 * L4"
    # torch flatten(1) of (N, C4, L4) is channel-major (col = c*L4 + l);
    # re-order rows to l*C4 + c (the lane-dense layout); pad rows are zero.
    wf = np.zeros((P4, F), np.float32)
    wf[: L4 * C4, :] = (fc_w.reshape(F, C4, L4).transpose(2, 1, 0)
                        .reshape(L4 * C4, F))
    bf = fc_b.reshape(1, F)

    # Fully unroll small step counts; partially unroll (and hoist weight reads)
    # for long recurrences.
    full_unroll = num_steps <= 16
    kernel = _build_kernel(num_steps,
                           unroll=(True if full_unroll else 4),
                           hoist=(not full_unroll))

    smem = pl.BlockSpec(memory_space=pltpu.MemorySpace.SMEM)
    vmem = pl.BlockSpec(memory_space=pltpu.MemorySpace.VMEM)
    inputs = [betas, thrs, x2d,
              ws[0], bs[0], ws[1], bs[1], ws[2], bs[2], ws[3], bs[3],
              jnp.asarray(wf), jnp.asarray(bf)]

    out_shape = (jax.ShapeDtypeStruct((num_steps, N, F), jnp.float32),
                 jax.ShapeDtypeStruct((num_steps, N, F), jnp.float32),
                 jax.ShapeDtypeStruct((num_steps, N, F), jnp.float32))

    cur_rec, spk_rec, mem_rec = pl.pallas_call(
        kernel,
        out_shape=out_shape,
        in_specs=[smem, smem] + [vmem] * (len(inputs) - 2),
        out_specs=(vmem, vmem, vmem),
    )(*inputs)

    return cur_rec, spk_rec, mem_rec


if __name__ == "__main__":
    key = jax.random.PRNGKey(0)
    # topology: 4 conv layers (Cin, Cout, K) + fc (in_features, out_features);
    # input (N=2, Cin=4, L=64) -> lengths 64->31->14->6->2, fc in = 16*2 = 32.
    topology = [(4, 8, 3), (8, 8, 3), (8, 16, 3), (16, 16, 3), (32, 10)]
    N, L = 2, 64
    num_steps = 4

    keys = jax.random.split(key, 11)
    conv_w, conv_b = [], []
    for i, (cin, cout, kk) in enumerate(topology[:4]):
        bound = 1.0 / (cin * kk) ** 0.5
        conv_w.append(jax.random.uniform(keys[2 * i], (cout, cin, kk),
                                         jnp.float32, -bound, bound))
        conv_b.append(jax.random.uniform(keys[2 * i + 1], (cout,),
                                         jnp.float32, -bound, bound))
    fin, fout = topology[4]
    bound = 1.0 / fin ** 0.5
    fc_w = jax.random.uniform(keys[8], (fout, fin), jnp.float32, -bound, bound)
    fc_b = jax.random.uniform(keys[9], (fout,), jnp.float32, -bound, bound)
    x = jax.random.normal(keys[10], (N, topology[0][0], L), jnp.float32)

    params = dict(
        beta=[0.9, 0.85, 0.8, 0.9, 0.95],
        threshold=[1.0, 1.0, 0.5, 0.5, 1.0],
        slope=25,          # surrogate-gradient slope: backward-only, unused in forward
        step=num_steps,
        conv_w=conv_w, conv_b=conv_b, fc_w=fc_w, fc_b=fc_b,
    )

    cur_rec, spk_rec, mem_rec = net_csnn_4conv(x, params)
    jax.block_until_ready((cur_rec, spk_rec, mem_rec))
    assert cur_rec.shape == (num_steps, N, fout)
    assert spk_rec.shape == (num_steps, N, fout)
    assert mem_rec.shape == (num_steps, N, fout)
    print("KERNEL_OK")
</pallas_src>

<mosaic_0001>
module attributes {stable_mosaic.version = 11 : i64} {
  func.func @kernel(%arg0: memref<5xf32, #tpu.memory_space<smem>>, %arg1: memref<5xf32, #tpu.memory_space<smem>>, %arg2: memref<2x256xf32, #tpu.memory_space<vmem>>, %arg3: memref<256x512xf32, #tpu.memory_space<vmem>>, %arg4: memref<1x512xf32, #tpu.memory_space<vmem>>, %arg5: memref<256x256xf32, #tpu.memory_space<vmem>>, %arg6: memref<1x256xf32, #tpu.memory_space<vmem>>, %arg7: memref<128x256xf32, #tpu.memory_space<vmem>>, %arg8: memref<1x256xf32, #tpu.memory_space<vmem>>, %arg9: memref<128x256xf32, #tpu.memory_space<vmem>>, %arg10: memref<1x256xf32, #tpu.memory_space<vmem>>, %arg11: memref<128x10xf32, #tpu.memory_space<vmem>>, %arg12: memref<1x10xf32, #tpu.memory_space<vmem>>, %arg13: memref<4x2x10xf32, #tpu.memory_space<vmem>>, %arg14: memref<4x2x10xf32, #tpu.memory_space<vmem>>, %arg15: memref<4x2x10xf32, #tpu.memory_space<vmem>>) attributes {dimension_semantics = [], scalar_prefetch = 0 : i64, scratch_operands = 0 : i64, tpu.core_type = #tpu.core_type<tc>} {
    %c0 = arith.constant 0 : index
    %0 = memref.load %arg0[%c0] : memref<5xf32, #tpu.memory_space<smem>>
    %c1 = arith.constant 1 : index
    %1 = memref.load %arg0[%c1] : memref<5xf32, #tpu.memory_space<smem>>
    %c2 = arith.constant 2 : index
    %2 = memref.load %arg0[%c2] : memref<5xf32, #tpu.memory_space<smem>>
    %c3 = arith.constant 3 : index
    %3 = memref.load %arg0[%c3] : memref<5xf32, #tpu.memory_space<smem>>
    %c4 = arith.constant 4 : index
    %4 = memref.load %arg0[%c4] : memref<5xf32, #tpu.memory_space<smem>>
    %c0_0 = arith.constant 0 : index
    %5 = memref.load %arg1[%c0_0] : memref<5xf32, #tpu.memory_space<smem>>
    %c1_1 = arith.constant 1 : index
    %6 = memref.load %arg1[%c1_1] : memref<5xf32, #tpu.memory_space<smem>>
    %c2_2 = arith.constant 2 : index
    %7 = memref.load %arg1[%c2_2] : memref<5xf32, #tpu.memory_space<smem>>
    %c3_3 = arith.constant 3 : index
    %8 = memref.load %arg1[%c3_3] : memref<5xf32, #tpu.memory_space<smem>>
    %c4_4 = arith.constant 4 : index
    %9 = memref.load %arg1[%c4_4] : memref<5xf32, #tpu.memory_space<smem>>
    %c0_5 = arith.constant 0 : index
    %c0_6 = arith.constant 0 : index
    %10 = vector.load %arg2[%c0_5, %c0_6] : memref<2x256xf32, #tpu.memory_space<vmem>>, vector<2x256xf32>
    %c0_7 = arith.constant 0 : index
    %c0_8 = arith.constant 0 : index
    %11 = vector.load %arg3[%c0_7, %c0_8] : memref<256x512xf32, #tpu.memory_space<vmem>>, vector<256x512xf32>
    %c0_9 = arith.constant 0 : index
    %c0_10 = arith.constant 0 : index
    %12 = vector.load %arg4[%c0_9, %c0_10] : memref<1x512xf32, #tpu.memory_space<vmem>>, vector<1x512xf32>
    %cst = arith.constant dense<0.000000e+00> : vector<2x512xf32>
    %13 = tpu.matmul %10, %11, %cst {dimension_numbers = #tpu.dot_dimension_numbers<[1], [0], [0], [1], [0, 0, 1, 1], [], []>} : vector<2x256xf32>, vector<256x512xf32>, vector<2x512xf32> -> vector<2x512xf32>
    %14 = vector.broadcast %12 : vector<1x512xf32> to vector<2x512xf32>
    %15 = arith.addf %13, %14 : vector<2x512xf32>
    %16 = vector.extract_strided_slice %15 {offsets = [0, 0], sizes = [2, 256], strides = [1, 1]} : vector<2x512xf32> to vector<2x256xf32>
    %17 = vector.extract_strided_slice %15 {offsets = [0, 256], sizes = [2, 256], strides = [1, 1]} : vector<2x512xf32> to vector<2x256xf32>
    %18 = arith.maximumf %16, %17 : vector<2x256xf32>
    %cst_11 = arith.constant 0.000000e+00 : f32
    %19 = vector.broadcast %cst_11 : f32 to vector<2x256xf32>
    %cst_12 = arith.constant 0.000000e+00 : f32
    %20 = vector.broadcast %cst_12 : f32 to vector<2x128xf32>
    %cst_13 = arith.constant 0.000000e+00 : f32
    %21 = vector.broadcast %cst_13 : f32 to vector<2x128xf32>
    %cst_14 = arith.constant 0.000000e+00 : f32
    %22 = vector.broadcast %cst_14 : f32 to vector<2x128xf32>
    %cst_15 = arith.constant 0.000000e+00 : f32
    %23 = vector.broadcast %cst_15 : f32 to vector<2x10xf32>
    %c0_i32 = arith.constant 0 : i32
    %24 = vector.broadcast %5 : f32 to vector<2x256xf32>
    %25 = arith.cmpf ogt, %19, %24 : vector<2x256xf32>
    %26 = arith.extui %25 : vector<2x256xi1> to vector<2x256xi32>
    %27 = arith.sitofp %26 : vector<2x256xi32> to vector<2x256xf32>
    %28 = vector.broadcast %0 : f32 to vector<2x256xf32>
    %29 = arith.mulf %28, %19 : vector<2x256xf32>
    %30 = arith.addf %29, %18 : vector<2x256xf32>
    %31 = vector.broadcast %5 : f32 to vector<2x256xf32>
    %32 = arith.mulf %27, %31 : vector<2x256xf32>
    %33 = arith.subf %30, %32 : vector<2x256xf32>
    %34 = vector.broadcast %5 : f32 to vector<2x256xf32>
    %35 = arith.cmpf ogt, %33, %34 : vector<2x256xf32>
    %36 = arith.extui %35 : vector<2x256xi1> to vector<2x256xi32>
    %37 = arith.sitofp %36 : vector<2x256xi32> to vector<2x256xf32>
    %c0_16 = arith.constant 0 : index
    %c0_17 = arith.constant 0 : index
    %38 = vector.load %arg5[%c0_16, %c0_17] : memref<256x256xf32, #tpu.memory_space<vmem>>, vector<256x256xf32>
    %c0_18 = arith.constant 0 : index
    %c0_19 = arith.constant 0 : index
    %39 = vector.load %arg6[%c0_18, %c0_19] : memref<1x256xf32, #tpu.memory_space<vmem>>, vector<1x256xf32>
    %cst_20 = arith.constant dense<0.000000e+00> : vector<2x256xf32>
    %40 = tpu.matmul %37, %38, %cst_20 {dimension_numbers = #tpu.dot_dimension_numbers<[1], [0], [0], [1], [0, 0, 1, 1], [], []>} : vector<2x256xf32>, vector<256x256xf32>, vector<2x256xf32> -> vector<2x256xf32>
    %41 = vector.broadcast %39 : vector<1x256xf32> to vector<2x256xf32>
    %42 = arith.addf %40, %41 : vector<2x256xf32>
    %43 = vector.extract_strided_slice %42 {offsets = [0, 0], sizes = [2, 128], strides = [1, 1]} : vector<2x256xf32> to vector<2x128xf32>
    %44 = vector.extract_strided_slice %42 {offsets = [0, 128], sizes = [2, 128], strides = [1, 1]} : vector<2x256xf32> to vector<2x128xf32>
    %45 = arith.maximumf %43, %44 : vector<2x128xf32>
    %46 = vector.broadcast %6 : f32 to vector<2x128xf32>
    %47 = arith.cmpf ogt, %20, %46 : vector<2x128xf32>
    %48 = arith.extui %47 : vector<2x128xi1> to vector<2x128xi32>
    %49 = arith.sitofp %48 : vector<2x128xi32> to vector<2x128xf32>
    %50 = vector.broadcast %1 : f32 to vector<2x128xf32>
    %51 = arith.mulf %50, %20 : vector<2x128xf32>
    %52 = arith.addf %51, %45 : vector<2x128xf32>
    %53 = vector.broadcast %6 : f32 to vector<2x128xf32>
    %54 = arith.mulf %49, %53 : vector<2x128xf32>
    %55 = arith.subf %52, %54 : vector<2x128xf32>
    %56 = vector.broadcast %6 : f32 to vector<2x128xf32>
    %57 = arith.cmpf ogt, %55, %56 : vector<2x128xf32>
    %58 = arith.extui %57 : vector<2x128xi1> to vector<2x128xi32>
    %59 = arith.sitofp %58 : vector<2x128xi32> to vector<2x128xf32>
    %c0_21 = arith.constant 0 : index
    %c0_22 = arith.constant 0 : index
    %60 = vector.load %arg7[%c0_21, %c0_22] : memref<128x256xf32, #tpu.memory_space<vmem>>, vector<128x256xf32>
    %c0_23 = arith.constant 0 : index
    %c0_24 = arith.constant 0 : index
    %61 = vector.load %arg8[%c0_23, %c0_24] : memref<1x256xf32, #tpu.memory_space<vmem>>, vector<1x256xf32>
    %cst_25 = arith.constant dense<0.000000e+00> : vector<2x256xf32>
    %62 = tpu.matmul %59, %60, %cst_25 {dimension_numbers = #tpu.dot_dimension_numbers<[1], [0], [0], [1], [0, 0, 1, 1], [], []>} : vector<2x128xf32>, vector<128x256xf32>, vector<2x256xf32> -> vector<2x256xf32>
    %63 = vector.broadcast %61 : vector<1x256xf32> to vector<2x256xf32>
    %64 = arith.addf %62, %63 : vector<2x256xf32>
    %65 = vector.extract_strided_slice %64 {offsets = [0, 0], sizes = [2, 128], strides = [1, 1]} : vector<2x256xf32> to vector<2x128xf32>
    %66 = vector.extract_strided_slice %64 {offsets = [0, 128], sizes = [2, 128], strides = [1, 1]} : vector<2x256xf32> to vector<2x128xf32>
    %67 = arith.maximumf %65, %66 : vector<2x128xf32>
    %68 = vector.broadcast %7 : f32 to vector<2x128xf32>
    %69 = arith.cmpf ogt, %21, %68 : vector<2x128xf32>
    %70 = arith.extui %69 : vector<2x128xi1> to vector<2x128xi32>
    %71 = arith.sitofp %70 : vector<2x128xi32> to vector<2x128xf32>
    %72 = vector.broadcast %2 : f32 to vector<2x128xf32>
    %73 = arith.mulf %72, %21 : vector<2x128xf32>
    %74 = arith.addf %73, %67 : vector<2x128xf32>
    %75 = vector.broadcast %7 : f32 to vector<2x128xf32>
    %76 = arith.mulf %71, %75 : vector<2x128xf32>
    %77 = arith.subf %74, %76 : vector<2x128xf32>
    %78 = vector.broadcast %7 : f32 to vector<2x128xf32>
    %79 = arith.cmpf ogt, %77, %78 : vector<2x128xf32>
    %80 = arith.extui %79 : vector<2x128xi1> to vector<2x128xi32>
    %81 = arith.sitofp %80 : vector<2x128xi32> to vector<2x128xf32>
    %c0_26 = arith.constant 0 : index
    %c0_27 = arith.constant 0 : index
    %82 = vector.load %arg9[%c0_26, %c0_27] : memref<128x256xf32, #tpu.memory_space<vmem>>, vector<128x256xf32>
    %c0_28 = arith.constant 0 : index
    %c0_29 = arith.constant 0 : index
    %83 = vector.load %arg10[%c0_28, %c0_29] : memref<1x256xf32, #tpu.memory_space<vmem>>, vector<1x256xf32>
    %cst_30 = arith.constant dense<0.000000e+00> : vector<2x256xf32>
    %84 = tpu.matmul %81, %82, %cst_30 {dimension_numbers = #tpu.dot_dimension_numbers<[1], [0], [0], [1], [0, 0, 1, 1], [], []>} : vector<2x128xf32>, vector<128x256xf32>, vector<2x256xf32> -> vector<2x256xf32>
    %85 = vector.broadcast %83 : vector<1x256xf32> to vector<2x256xf32>
    %86 = arith.addf %84, %85 : vector<2x256xf32>
    %87 = vector.extract_strided_slice %86 {offsets = [0, 0], sizes = [2, 128], strides = [1, 1]} : vector<2x256xf32> to vector<2x128xf32>
    %88 = vector.extract_strided_slice %86 {offsets = [0, 128], sizes = [2, 128], strides = [1, 1]} : vector<2x256xf32> to vector<2x128xf32>
    %89 = arith.maximumf %87, %88 : vector<2x128xf32>
    %90 = vector.broadcast %8 : f32 to vector<2x128xf32>
    %91 = arith.cmpf ogt, %22, %90 : vector<2x128xf32>
    %92 = arith.extui %91 : vector<2x128xi1> to vector<2x128xi32>
    %93 = arith.sitofp %92 : vector<2x128xi32> to vector<2x128xf32>
    %94 = vector.broadcast %3 : f32 to vector<2x128xf32>
    %95 = arith.mulf %94, %22 : vector<2x128xf32>
    %96 = arith.addf %95, %89 : vector<2x128xf32>
    %97 = vector.broadcast %8 : f32 to vector<2x128xf32>
    %98 = arith.mulf %93, %97 : vector<2x128xf32>
    %99 = arith.subf %96, %98 : vector<2x128xf32>
    %100 = vector.broadcast %8 : f32 to vector<2x128xf32>
    %101 = arith.cmpf ogt, %99, %100 : vector<2x128xf32>
    %102 = arith.extui %101 : vector<2x128xi1> to vector<2x128xi32>
    %103 = arith.sitofp %102 : vector<2x128xi32> to vector<2x128xf32>
    %c0_31 = arith.constant 0 : index
    %c0_32 = arith.constant 0 : index
    %104 = vector.load %arg11[%c0_31, %c0_32] : memref<128x10xf32, #tpu.memory_space<vmem>>, vector<128x10xf32>
    %c0_33 = arith.constant 0 : index
    %c0_34 = arith.constant 0 : index
    %105 = vector.load %arg12[%c0_33, %c0_34] : memref<1x10xf32, #tpu.memory_space<vmem>>, vector<1x10xf32>
    %cst_35 = arith.constant dense<0.000000e+00> : vector<2x10xf32>
    %106 = tpu.matmul %103, %104, %cst_35 {dimension_numbers = #tpu.dot_dimension_numbers<[1], [0], [0], [1], [0, 0, 1, 1], [], []>} : vector<2x128xf32>, vector<128x10xf32>, vector<2x10xf32> -> vector<2x10xf32>
    %107 = vector.broadcast %105 : vector<1x10xf32> to vector<2x10xf32>
    %108 = arith.addf %106, %107 : vector<2x10xf32>
    %109 = vector.broadcast %9 : f32 to vector<2x10xf32>
    %110 = arith.cmpf ogt, %23, %109 : vector<2x10xf32>
    %111 = arith.extui %110 : vector<2x10xi1> to vector<2x10xi32>
    %112 = arith.sitofp %111 : vector<2x10xi32> to vector<2x10xf32>
    %113 = vector.broadcast %4 : f32 to vector<2x10xf32>
    %114 = arith.mulf %113, %23 : vector<2x10xf32>
    %115 = arith.addf %114, %108 : vector<2x10xf32>
    %116 = vector.broadcast %9 : f32 to vector<2x10xf32>
    %117 = arith.mulf %112, %116 : vector<2x10xf32>
    %118 = arith.subf %115, %117 : vector<2x10xf32>
    %119 = vector.broadcast %9 : f32 to vector<2x10xf32>
    %120 = arith.cmpf ogt, %118, %119 : vector<2x10xf32>
    %121 = arith.extui %120 : vector<2x10xi1> to vector<2x10xi32>
    %122 = arith.sitofp %121 : vector<2x10xi32> to vector<2x10xf32>
    %123 = arith.index_cast %c0_i32 : i32 to index
    %c0_36 = arith.constant 0 : index
    %c0_37 = arith.constant 0 : index
    %124 = vector.load %arg13[%123, %c0_36, %c0_37] : memref<4x2x10xf32, #tpu.memory_space<vmem>>, vector<1x2x10xf32>
    %125 = vector.shape_cast %124 : vector<1x2x10xf32> to vector<2x10xf32>
    %126 = vector.shape_cast %108 : vector<2x10xf32> to vector<1x2x10xf32>
    tpu.vector_store %arg13[%123, %c0_36, %c0_37], %126 {strides = array<i32>} : memref<4x2x10xf32, #tpu.memory_space<vmem>>, vector<1x2x10xf32>,
    %127 = arith.index_cast %c0_i32 : i32 to index
    %c0_38 = arith.constant 0 : index
    %c0_39 = arith.constant 0 : index
    %128 = vector.load %arg14[%127, %c0_38, %c0_39] : memref<4x2x10xf32, #tpu.memory_space<vmem>>, vector<1x2x10xf32>
    %129 = vector.shape_cast %128 : vector<1x2x10xf32> to vector<2x10xf32>
    %130 = vector.shape_cast %122 : vector<2x10xf32> to vector<1x2x10xf32>
    tpu.vector_store %arg14[%127, %c0_38, %c0_39], %130 {strides = array<i32>} : memref<4x2x10xf32, #tpu.memory_space<vmem>>, vector<1x2x10xf32>,
    %131 = arith.index_cast %c0_i32 : i32 to index
    %c0_40 = arith.constant 0 : index
    %c0_41 = arith.constant 0 : index
    %132 = vector.load %arg15[%131, %c0_40, %c0_41] : memref<4x2x10xf32, #tpu.memory_space<vmem>>, vector<1x2x10xf32>
    %133 = vector.shape_cast %132 : vector<1x2x10xf32> to vector<2x10xf32>
    %134 = vector.shape_cast %118 : vector<2x10xf32> to vector<1x2x10xf32>
    tpu.vector_store %arg15[%131, %c0_40, %c0_41], %134 {strides = array<i32>} : memref<4x2x10xf32, #tpu.memory_space<vmem>>, vector<1x2x10xf32>,
    %c1_i32 = arith.constant 1 : i32
    %135 = vector.broadcast %5 : f32 to vector<2x256xf32>
    %136 = arith.cmpf ogt, %33, %135 : vector<2x256xf32>
    %137 = arith.extui %136 : vector<2x256xi1> to vector<2x256xi32>
    %138 = arith.sitofp %137 : vector<2x256xi32> to vector<2x256xf32>
    %139 = vector.broadcast %0 : f32 to vector<2x256xf32>
    %140 = arith.mulf %139, %33 : vector<2x256xf32>
    %141 = arith.addf %140, %18 : vector<2x256xf32>
    %142 = vector.broadcast %5 : f32 to vector<2x256xf32>
    %143 = arith.mulf %138, %142 : vector<2x256xf32>
    %144 = arith.subf %141, %143 : vector<2x256xf32>
    %145 = vector.broadcast %5 : f32 to vector<2x256xf32>
    %146 = arith.cmpf ogt, %144, %145 : vector<2x256xf32>
    %147 = arith.extui %146 : vector<2x256xi1> to vector<2x256xi32>
    %148 = arith.sitofp %147 : vector<2x256xi32> to vector<2x256xf32>
    %c0_42 = arith.constant 0 : index
    %c0_43 = arith.constant 0 : index
    %149 = vector.load %arg5[%c0_42, %c0_43] : memref<256x256xf32, #tpu.memory_space<vmem>>, vector<256x256xf32>
    %c0_44 = arith.constant 0 : index
    %c0_45 = arith.constant 0 : index
    %150 = vector.load %arg6[%c0_44, %c0_45] : memref<1x256xf32, #tpu.memory_space<vmem>>, vector<1x256xf32>
    %cst_46 = arith.constant dense<0.000000e+00> : vector<2x256xf32>
    %151 = tpu.matmul %148, %149, %cst_46 {dimension_numbers = #tpu.dot_dimension_numbers<[1], [0], [0], [1], [0, 0, 1, 1], [], []>} : vector<2x256xf32>, vector<256x256xf32>, vector<2x256xf32> -> vector<2x256xf32>
    %152 = vector.broadcast %150 : vector<1x256xf32> to vector<2x256xf32>
    %153 = arith.addf %151, %152 : vector<2x256xf32>
    %154 = vector.extract_strided_slice %153 {offsets = [0, 0], sizes = [2, 128], strides = [1, 1]} : vector<2x256xf32> to vector<2x128xf32>
    %155 = vector.extract_strided_slice %153 {offsets = [0, 128], sizes = [2, 128], strides = [1, 1]} : vector<2x256xf32> to vector<2x128xf32>
    %156 = arith.maximumf %154, %155 : vector<2x128xf32>
    %157 = vector.broadcast %6 : f32 to vector<2x128xf32>
    %158 = arith.cmpf ogt, %55, %157 : vector<2x128xf32>
    %159 = arith.extui %158 : vector<2x128xi1> to vector<2x128xi32>
    %160 = arith.sitofp %159 : vector<2x128xi32> to vector<2x128xf32>
    %161 = vector.broadcast %1 : f32 to vector<2x128xf32>
    %162 = arith.mulf %161, %55 : vector<2x128xf32>
    %163 = arith.addf %162, %156 : vector<2x128xf32>
    %164 = vector.broadcast %6 : f32 to vector<2x128xf32>
    %165 = arith.mulf %160, %164 : vector<2x128xf32>
    %166 = arith.subf %163, %165 : vector<2x128xf32>
    %167 = vector.broadcast %6 : f32 to vector<2x128xf32>
    %168 = arith.cmpf ogt, %166, %167 : vector<2x128xf32>
    %169 = arith.extui %168 : vector<2x128xi1> to vector<2x128xi32>
    %170 = arith.sitofp %169 : vector<2x128xi32> to vector<2x128xf32>
    %c0_47 = arith.constant 0 : index
    %c0_48 = arith.constant 0 : index
    %171 = vector.load %arg7[%c0_47, %c0_48] : memref<128x256xf32, #tpu.memory_space<vmem>>, vector<128x256xf32>
    %c0_49 = arith.constant 0 : index
    %c0_50 = arith.constant 0 : index
    %172 = vector.load %arg8[%c0_49, %c0_50] : memref<1x256xf32, #tpu.memory_space<vmem>>, vector<1x256xf32>
    %cst_51 = arith.constant dense<0.000000e+00> : vector<2x256xf32>
    %173 = tpu.matmul %170, %171, %cst_51 {dimension_numbers = #tpu.dot_dimension_numbers<[1], [0], [0], [1], [0, 0, 1, 1], [], []>} : vector<2x128xf32>, vector<128x256xf32>, vector<2x256xf32> -> vector<2x256xf32>
    %174 = vector.broadcast %172 : vector<1x256xf32> to vector<2x256xf32>
    %175 = arith.addf %173, %174 : vector<2x256xf32>
    %176 = vector.extract_strided_slice %175 {offsets = [0, 0], sizes = [2, 128], strides = [1, 1]} : vector<2x256xf32> to vector<2x128xf32>
    %177 = vector.extract_strided_slice %175 {offsets = [0, 128], sizes = [2, 128], strides = [1, 1]} : vector<2x256xf32> to vector<2x128xf32>
    %178 = arith.maximumf %176, %177 : vector<2x128xf32>
    %179 = vector.broadcast %7 : f32 to vector<2x128xf32>
    %180 = arith.cmpf ogt, %77, %179 : vector<2x128xf32>
    %181 = arith.extui %180 : vector<2x128xi1> to vector<2x128xi32>
    %182 = arith.sitofp %181 : vector<2x128xi32> to vector<2x128xf32>
    %183 = vector.broadcast %2 : f32 to vector<2x128xf32>
    %184 = arith.mulf %183, %77 : vector<2x128xf32>
    %185 = arith.addf %184, %178 : vector<2x128xf32>
    %186 = vector.broadcast %7 : f32 to vector<2x128xf32>
    %187 = arith.mulf %182, %186 : vector<2x128xf32>
    %188 = arith.subf %185, %187 : vector<2x128xf32>
    %189 = vector.broadcast %7 : f32 to vector<2x128xf32>
    %190 = arith.cmpf ogt, %188, %189 : vector<2x128xf32>
    %191 = arith.extui %190 : vector<2x128xi1> to vector<2x128xi32>
    %192 = arith.sitofp %191 : vector<2x128xi32> to vector<2x128xf32>
    %c0_52 = arith.constant 0 : index
    %c0_53 = arith.constant 0 : index
    %193 = vector.load %arg9[%c0_52, %c0_53] : memref<128x256xf32, #tpu.memory_space<vmem>>, vector<128x256xf32>
    %c0_54 = arith.constant 0 : index
    %c0_55 = arith.constant 0 : index
    %194 = vector.load %arg10[%c0_54, %c0_55] : memref<1x256xf32, #tpu.memory_space<vmem>>, vector<1x256xf32>
    %cst_56 = arith.constant dense<0.000000e+00> : vector<2x256xf32>
    %195 = tpu.matmul %192, %193, %cst_56 {dimension_numbers = #tpu.dot_dimension_numbers<[1], [0], [0], [1], [0, 0, 1, 1], [], []>} : vector<2x128xf32>, vector<128x256xf32>, vector<2x256xf32> -> vector<2x256xf32>
    %196 = vector.broadcast %194 : vector<1x256xf32> to vector<2x256xf32>
    %197 = arith.addf %195, %196 : vector<2x256xf32>
    %198 = vector.extract_strided_slice %197 {offsets = [0, 0], sizes = [2, 128], strides = [1, 1]} : vector<2x256xf32> to vector<2x128xf32>
    %199 = vector.extract_strided_slice %197 {offsets = [0, 128], sizes = [2, 128], strides = [1, 1]} : vector<2x256xf32> to vector<2x128xf32>
    %200 = arith.maximumf %198, %199 : vector<2x128xf32>
    %201 = vector.broadcast %8 : f32 to vector<2x128xf32>
    %202 = arith.cmpf ogt, %99, %201 : vector<2x128xf32>
    %203 = arith.extui %202 : vector<2x128xi1> to vector<2x128xi32>
    %204 = arith.sitofp %203 : vector<2x128xi32> to vector<2x128xf32>
    %205 = vector.broadcast %3 : f32 to vector<2x128xf32>
    %206 = arith.mulf %205, %99 : vector<2x128xf32>
    %207 = arith.addf %206, %200 : vector<2x128xf32>
    %208 = vector.broadcast %8 : f32 to vector<2x128xf32>
    %209 = arith.mulf %204, %208 : vector<2x128xf32>
    %210 = arith.subf %207, %209 : vector<2x128xf32>
    %211 = vector.broadcast %8 : f32 to vector<2x128xf32>
    %212 = arith.cmpf ogt, %210, %211 : vector<2x128xf32>
    %213 = arith.extui %212 : vector<2x128xi1> to vector<2x128xi32>
    %214 = arith.sitofp %213 : vector<2x128xi32> to vector<2x128xf32>
    %c0_57 = arith.constant 0 : index
    %c0_58 = arith.constant 0 : index
    %215 = vector.load %arg11[%c0_57, %c0_58] : memref<128x10xf32, #tpu.memory_space<vmem>>, vector<128x10xf32>
    %c0_59 = arith.constant 0 : index
    %c0_60 = arith.constant 0 : index
    %216 = vector.load %arg12[%c0_59, %c0_60] : memref<1x10xf32, #tpu.memory_space<vmem>>, vector<1x10xf32>
    %cst_61 = arith.constant dense<0.000000e+00> : vector<2x10xf32>
    %217 = tpu.matmul %214, %215, %cst_61 {dimension_numbers = #tpu.dot_dimension_numbers<[1], [0], [0], [1], [0, 0, 1, 1], [], []>} : vector<2x128xf32>, vector<128x10xf32>, vector<2x10xf32> -> vector<2x10xf32>
    %218 = vector.broadcast %216 : vector<1x10xf32> to vector<2x10xf32>
    %219 = arith.addf %217, %218 : vector<2x10xf32>
    %220 = vector.broadcast %9 : f32 to vector<2x10xf32>
    %221 = arith.cmpf ogt, %118, %220 : vector<2x10xf32>
    %222 = arith.extui %221 : vector<2x10xi1> to vector<2x10xi32>
    %223 = arith.sitofp %222 : vector<2x10xi32> to vector<2x10xf32>
    %224 = vector.broadcast %4 : f32 to vector<2x10xf32>
    %225 = arith.mulf %224, %118 : vector<2x10xf32>
    %226 = arith.addf %225, %219 : vector<2x10xf32>
    %227 = vector.broadcast %9 : f32 to vector<2x10xf32>
    %228 = arith.mulf %223, %227 : vector<2x10xf32>
    %229 = arith.subf %226, %228 : vector<2x10xf32>
    %230 = vector.broadcast %9 : f32 to vector<2x10xf32>
    %231 = arith.cmpf ogt, %229, %230 : vector<2x10xf32>
    %232 = arith.extui %231 : vector<2x10xi1> to vector<2x10xi32>
    %233 = arith.sitofp %232 : vector<2x10xi32> to vector<2x10xf32>
    %234 = arith.index_cast %c1_i32 : i32 to index
    %c0_62 = arith.constant 0 : index
    %c0_63 = arith.constant 0 : index
    %235 = vector.load %arg13[%234, %c0_62, %c0_63] : memref<4x2x10xf32, #tpu.memory_space<vmem>>, vector<1x2x10xf32>
    %236 = vector.shape_cast %235 : vector<1x2x10xf32> to vector<2x10xf32>
    %237 = vector.shape_cast %219 : vector<2x10xf32> to vector<1x2x10xf32>
    tpu.vector_store %arg13[%234, %c0_62, %c0_63], %237 {strides = array<i32>} : memref<4x2x10xf32, #tpu.memory_space<vmem>>, vector<1x2x10xf32>,
    %238 = arith.index_cast %c1_i32 : i32 to index
    %c0_64 = arith.constant 0 : index
    %c0_65 = arith.constant 0 : index
    %239 = vector.load %arg14[%238, %c0_64, %c0_65] : memref<4x2x10xf32, #tpu.memory_space<vmem>>, vector<1x2x10xf32>
    %240 = vector.shape_cast %239 : vector<1x2x10xf32> to vector<2x10xf32>
    %241 = vector.shape_cast %233 : vector<2x10xf32> to vector<1x2x10xf32>
    tpu.vector_store %arg14[%238, %c0_64, %c0_65], %241 {strides = array<i32>} : memref<4x2x10xf32, #tpu.memory_space<vmem>>, vector<1x2x10xf32>,
    %242 = arith.index_cast %c1_i32 : i32 to index
    %c0_66 = arith.constant 0 : index
    %c0_67 = arith.constant 0 : index
    %243 = vector.load %arg15[%242, %c0_66, %c0_67] : memref<4x2x10xf32, #tpu.memory_space<vmem>>, vector<1x2x10xf32>
    %244 = vector.shape_cast %243 : vector<1x2x10xf32> to vector<2x10xf32>
    %245 = vector.shape_cast %229 : vector<2x10xf32> to vector<1x2x10xf32>
    tpu.vector_store %arg15[%242, %c0_66, %c0_67], %245 {strides = array<i32>} : memref<4x2x10xf32, #tpu.memory_space<vmem>>, vector<1x2x10xf32>,
    %c2_i32 = arith.constant 2 : i32
    %246 = vector.broadcast %5 : f32 to vector<2x256xf32>
    %247 = arith.cmpf ogt, %144, %246 : vector<2x256xf32>
    %248 = arith.extui %247 : vector<2x256xi1> to vector<2x256xi32>
    %249 = arith.sitofp %248 : vector<2x256xi32> to vector<2x256xf32>
    %250 = vector.broadcast %0 : f32 to vector<2x256xf32>
    %251 = arith.mulf %250, %144 : vector<2x256xf32>
    %252 = arith.addf %251, %18 : vector<2x256xf32>
    %253 = vector.broadcast %5 : f32 to vector<2x256xf32>
    %254 = arith.mulf %249, %253 : vector<2x256xf32>
    %255 = arith.subf %252, %254 : vector<2x256xf32>
    %256 = vector.broadcast %5 : f32 to vector<2x256xf32>
    %257 = arith.cmpf ogt, %255, %256 : vector<2x256xf32>
    %258 = arith.extui %257 : vector<2x256xi1> to vector<2x256xi32>
    %259 = arith.sitofp %258 : vector<2x256xi32> to vector<2x256xf32>
    %c0_68 = arith.constant 0 : index
    %c0_69 = arith.constant 0 : index
    %260 = vector.load %arg5[%c0_68, %c0_69] : memref<256x256xf32, #tpu.memory_space<vmem>>, vector<256x256xf32>
    %c0_70 = arith.constant 0 : index
    %c0_71 = arith.constant 0 : index
    %261 = vector.load %arg6[%c0_70, %c0_71] : memref<1x256xf32, #tpu.memory_space<vmem>>, vector<1x256xf32>
    %cst_72 = arith.constant dense<0.000000e+00> : vector<2x256xf32>
    %262 = tpu.matmul %259, %260, %cst_72 {dimension_numbers = #tpu.dot_dimension_numbers<[1], [0], [0], [1], [0, 0, 1, 1], [], []>} : vector<2x256xf32>, vector<256x256xf32>, vector<2x256xf32> -> vector<2x256xf32>
    %263 = vector.broadcast %261 : vector<1x256xf32> to vector<2x256xf32>
    %264 = arith.addf %262, %263 : vector<2x256xf32>
    %265 = vector.extract_strided_slice %264 {offsets = [0, 0], sizes = [2, 128], strides = [1, 1]} : vector<2x256xf32> to vector<2x128xf32>
    %266 = vector.extract_strided_slice %264 {offsets = [0, 128], sizes = [2, 128], strides = [1, 1]} : vector<2x256xf32> to vector<2x128xf32>
    %267 = arith.maximumf %265, %266 : vector<2x128xf32>
    %268 = vector.broadcast %6 : f32 to vector<2x128xf32>
    %269 = arith.cmpf ogt, %166, %268 : vector<2x128xf32>
    %270 = arith.extui %269 : vector<2x128xi1> to vector<2x128xi32>
    %271 = arith.sitofp %270 : vector<2x128xi32> to vector<2x128xf32>
    %272 = vector.broadcast %1 : f32 to vector<2x128xf32>
    %273 = arith.mulf %272, %166 : vector<2x128xf32>
    %274 = arith.addf %273, %267 : vector<2x128xf32>
    %275 = vector.broadcast %6 : f32 to vector<2x128xf32>
    %276 = arith.mulf %271, %275 : vector<2x128xf32>
    %277 = arith.subf %274, %276 : vector<2x128xf32>
    %278 = vector.broadcast %6 : f32 to vector<2x128xf32>
    %279 = arith.cmpf ogt, %277, %278 : vector<2x128xf32>
    %280 = arith.extui %279 : vector<2x128xi1> to vector<2x128xi32>
    %281 = arith.sitofp %280 : vector<2x128xi32> to vector<2x128xf32>
    %c0_73 = arith.constant 0 : index
    %c0_74 = arith.constant 0 : index
    %282 = vector.load %arg7[%c0_73, %c0_74] : memref<128x256xf32, #tpu.memory_space<vmem>>, vector<128x256xf32>
    %c0_75 = arith.constant 0 : index
    %c0_76 = arith.constant 0 : index
    %283 = vector.load %arg8[%c0_75, %c0_76] : memref<1x256xf32, #tpu.memory_space<vmem>>, vector<1x256xf32>
    %cst_77 = arith.constant dense<0.000000e+00> : vector<2x256xf32>
    %284 = tpu.matmul %281, %282, %cst_77 {dimension_numbers = #tpu.dot_dimension_numbers<[1], [0], [0], [1], [0, 0, 1, 1], [], []>} : vector<2x128xf32>, vector<128x256xf32>, vector<2x256xf32> -> vector<2x256xf32>
    %285 = vector.broadcast %283 : vector<1x256xf32> to vector<2x256xf32>
    %286 = arith.addf %284, %285 : vector<2x256xf32>
    %287 = vector.extract_strided_slice %286 {offsets = [0, 0], sizes = [2, 128], strides = [1, 1]} : vector<2x256xf32> to vector<2x128xf32>
    %288 = vector.extract_strided_slice %286 {offsets = [0, 128], sizes = [2, 128], strides = [1, 1]} : vector<2x256xf32> to vector<2x128xf32>
    %289 = arith.maximumf %287, %288 : vector<2x128xf32>
    %290 = vector.broadcast %7 : f32 to vector<2x128xf32>
    %291 = arith.cmpf ogt, %188, %290 : vector<2x128xf32>
    %292 = arith.extui %291 : vector<2x128xi1> to vector<2x128xi32>
    %293 = arith.sitofp %292 : vector<2x128xi32> to vector<2x128xf32>
    %294 = vector.broadcast %2 : f32 to vector<2x128xf32>
    %295 = arith.mulf %294, %188 : vector<2x128xf32>
    %296 = arith.addf %295, %289 : vector<2x128xf32>
    %297 = vector.broadcast %7 : f32 to vector<2x128xf32>
    %298 = arith.mulf %293, %297 : vector<2x128xf32>
    %299 = arith.subf %296, %298 : vector<2x128xf32>
    %300 = vector.broadcast %7 : f32 to vector<2x128xf32>
    %301 = arith.cmpf ogt, %299, %300 : vector<2x128xf32>
    %302 = arith.extui %301 : vector<2x128xi1> to vector<2x128xi32>
    %303 = arith.sitofp %302 : vector<2x128xi32> to vector<2x128xf32>
    %c0_78 = arith.constant 0 : index
    %c0_79 = arith.constant 0 : index
    %304 = vector.load %arg9[%c0_78, %c0_79] : memref<128x256xf32, #tpu.memory_space<vmem>>, vector<128x256xf32>
    %c0_80 = arith.constant 0 : index
    %c0_81 = arith.constant 0 : index
    %305 = vector.load %arg10[%c0_80, %c0_81] : memref<1x256xf32, #tpu.memory_space<vmem>>, vector<1x256xf32>
    %cst_82 = arith.constant dense<0.000000e+00> : vector<2x256xf32>
    %306 = tpu.matmul %303, %304, %cst_82 {dimension_numbers = #tpu.dot_dimension_numbers<[1], [0], [0], [1], [0, 0, 1, 1], [], []>} : vector<2x128xf32>, vector<128x256xf32>, vector<2x256xf32> -> vector<2x256xf32>
    %307 = vector.broadcast %305 : vector<1x256xf32> to vector<2x256xf32>
    %308 = arith.addf %306, %307 : vector<2x256xf32>
    %309 = vector.extract_strided_slice %308 {offsets = [0, 0], sizes = [2, 128], strides = [1, 1]} : vector<2x256xf32> to vector<2x128xf32>
    %310 = vector.extract_strided_slice %308 {offsets = [0, 128], sizes = [2, 128], strides = [1, 1]} : vector<2x256xf32> to vector<2x128xf32>
    %311 = arith.maximumf %309, %310 : vector<2x128xf32>
    %312 = vector.broadcast %8 : f32 to vector<2x128xf32>
    %313 = arith.cmpf ogt, %210, %312 : vector<2x128xf32>
    %314 = arith.extui %313 : vector<2x128xi1> to vector<2x128xi32>
    %315 = arith.sitofp %314 : vector<2x128xi32> to vector<2x128xf32>
    %316 = vector.broadcast %3 : f32 to vector<2x128xf32>
    %317 = arith.mulf %316, %210 : vector<2x128xf32>
    %318 = arith.addf %317, %311 : vector<2x128xf32>
    %319 = vector.broadcast %8 : f32 to vector<2x128xf32>
    %320 = arith.mulf %315, %319 : vector<2x128xf32>
    %321 = arith.subf %318, %320 : vector<2x128xf32>
    %322 = vector.broadcast %8 : f32 to vector<2x128xf32>
    %323 = arith.cmpf ogt, %321, %322 : vector<2x128xf32>
    %324 = arith.extui %323 : vector<2x128xi1> to vector<2x128xi32>
    %325 = arith.sitofp %324 : vector<2x128xi32> to vector<2x128xf32>
    %c0_83 = arith.constant 0 : index
    %c0_84 = arith.constant 0 : index
    %326 = vector.load %arg11[%c0_83, %c0_84] : memref<128x10xf32, #tpu.memory_space<vmem>>, vector<128x10xf32>
    %c0_85 = arith.constant 0 : index
    %c0_86 = arith.constant 0 : index
    %327 = vector.load %arg12[%c0_85, %c0_86] : memref<1x10xf32, #tpu.memory_space<vmem>>, vector<1x10xf32>
    %cst_87 = arith.constant dense<0.000000e+00> : vector<2x10xf32>
    %328 = tpu.matmul %325, %326, %cst_87 {dimension_numbers = #tpu.dot_dimension_numbers<[1], [0], [0], [1], [0, 0, 1, 1], [], []>} : vector<2x128xf32>, vector<128x10xf32>, vector<2x10xf32> -> vector<2x10xf32>
    %329 = vector.broadcast %327 : vector<1x10xf32> to vector<2x10xf32>
    %330 = arith.addf %328, %329 : vector<2x10xf32>
    %331 = vector.broadcast %9 : f32 to vector<2x10xf32>
    %332 = arith.cmpf ogt, %229, %331 : vector<2x10xf32>
    %333 = arith.extui %332 : vector<2x10xi1> to vector<2x10xi32>
    %334 = arith.sitofp %333 : vector<2x10xi32> to vector<2x10xf32>
    %335 = vector.broadcast %4 : f32 to vector<2x10xf32>
    %336 = arith.mulf %335, %229 : vector<2x10xf32>
    %337 = arith.addf %336, %330 : vector<2x10xf32>
    %338 = vector.broadcast %9 : f32 to vector<2x10xf32>
    %339 = arith.mulf %334, %338 : vector<2x10xf32>
    %340 = arith.subf %337, %339 : vector<2x10xf32>
    %341 = vector.broadcast %9 : f32 to vector<2x10xf32>
    %342 = arith.cmpf ogt, %340, %341 : vector<2x10xf32>
    %343 = arith.extui %342 : vector<2x10xi1> to vector<2x10xi32>
    %344 = arith.sitofp %343 : vector<2x10xi32> to vector<2x10xf32>
    %345 = arith.index_cast %c2_i32 : i32 to index
    %c0_88 = arith.constant 0 : index
    %c0_89 = arith.constant 0 : index
    %346 = vector.load %arg13[%345, %c0_88, %c0_89] : memref<4x2x10xf32, #tpu.memory_space<vmem>>, vector<1x2x10xf32>
    %347 = vector.shape_cast %346 : vector<1x2x10xf32> to vector<2x10xf32>
    %348 = vector.shape_cast %330 : vector<2x10xf32> to vector<1x2x10xf32>
    tpu.vector_store %arg13[%345, %c0_88, %c0_89], %348 {strides = array<i32>} : memref<4x2x10xf32, #tpu.memory_space<vmem>>, vector<1x2x10xf32>,
    %349 = arith.index_cast %c2_i32 : i32 to index
    %c0_90 = arith.constant 0 : index
    %c0_91 = arith.constant 0 : index
    %350 = vector.load %arg14[%349, %c0_90, %c0_91] : memref<4x2x10xf32, #tpu.memory_space<vmem>>, vector<1x2x10xf32>
    %351 = vector.shape_cast %350 : vector<1x2x10xf32> to vector<2x10xf32>
    %352 = vector.shape_cast %344 : vector<2x10xf32> to vector<1x2x10xf32>
    tpu.vector_store %arg14[%349, %c0_90, %c0_91], %352 {strides = array<i32>} : memref<4x2x10xf32, #tpu.memory_space<vmem>>, vector<1x2x10xf32>,
    %353 = arith.index_cast %c2_i32 : i32 to index
    %c0_92 = arith.constant 0 : index
    %c0_93 = arith.constant 0 : index
    %354 = vector.load %arg15[%353, %c0_92, %c0_93] : memref<4x2x10xf32, #tpu.memory_space<vmem>>, vector<1x2x10xf32>
    %355 = vector.shape_cast %354 : vector<1x2x10xf32> to vector<2x10xf32>
    %356 = vector.shape_cast %340 : vector<2x10xf32> to vector<1x2x10xf32>
    tpu.vector_store %arg15[%353, %c0_92, %c0_93], %356 {strides = array<i32>} : memref<4x2x10xf32, #tpu.memory_space<vmem>>, vector<1x2x10xf32>,
    %c3_i32 = arith.constant 3 : i32
    %357 = vector.broadcast %5 : f32 to vector<2x256xf32>
    %358 = arith.cmpf ogt, %255, %357 : vector<2x256xf32>
    %359 = arith.extui %358 : vector<2x256xi1> to vector<2x256xi32>
    %360 = arith.sitofp %359 : vector<2x256xi32> to vector<2x256xf32>
    %361 = vector.broadcast %0 : f32 to vector<2x256xf32>
    %362 = arith.mulf %361, %255 : vector<2x256xf32>
    %363 = arith.addf %362, %18 : vector<2x256xf32>
    %364 = vector.broadcast %5 : f32 to vector<2x256xf32>
    %365 = arith.mulf %360, %364 : vector<2x256xf32>
    %366 = arith.subf %363, %365 : vector<2x256xf32>
    %367 = vector.broadcast %5 : f32 to vector<2x256xf32>
    %368 = arith.cmpf ogt, %366, %367 : vector<2x256xf32>
    %369 = arith.extui %368 : vector<2x256xi1> to vector<2x256xi32>
    %370 = arith.sitofp %369 : vector<2x256xi32> to vector<2x256xf32>
    %c0_94 = arith.constant 0 : index
    %c0_95 = arith.constant 0 : index
    %371 = vector.load %arg5[%c0_94, %c0_95] : memref<256x256xf32, #tpu.memory_space<vmem>>, vector<256x256xf32>
    %c0_96 = arith.constant 0 : index
    %c0_97 = arith.constant 0 : index
    %372 = vector.load %arg6[%c0_96, %c0_97] : memref<1x256xf32, #tpu.memory_space<vmem>>, vector<1x256xf32>
    %cst_98 = arith.constant dense<0.000000e+00> : vector<2x256xf32>
    %373 = tpu.matmul %370, %371, %cst_98 {dimension_numbers = #tpu.dot_dimension_numbers<[1], [0], [0], [1], [0, 0, 1, 1], [], []>} : vector<2x256xf32>, vector<256x256xf32>, vector<2x256xf32> -> vector<2x256xf32>
    %374 = vector.broadcast %372 : vector<1x256xf32> to vector<2x256xf32>
    %375 = arith.addf %373, %374 : vector<2x256xf32>
    %376 = vector.extract_strided_slice %375 {offsets = [0, 0], sizes = [2, 128], strides = [1, 1]} : vector<2x256xf32> to vector<2x128xf32>
    %377 = vector.extract_strided_slice %375 {offsets = [0, 128], sizes = [2, 128], strides = [1, 1]} : vector<2x256xf32> to vector<2x128xf32>
    %378 = arith.maximumf %376, %377 : vector<2x128xf32>
    %379 = vector.broadcast %6 : f32 to vector<2x128xf32>
    %380 = arith.cmpf ogt, %277, %379 : vector<2x128xf32>
    %381 = arith.extui %380 : vector<2x128xi1> to vector<2x128xi32>
    %382 = arith.sitofp %381 : vector<2x128xi32> to vector<2x128xf32>
    %383 = vector.broadcast %1 : f32 to vector<2x128xf32>
    %384 = arith.mulf %383, %277 : vector<2x128xf32>
    %385 = arith.addf %384, %378 : vector<2x128xf32>
    %386 = vector.broadcast %6 : f32 to vector<2x128xf32>
    %387 = arith.mulf %382, %386 : vector<2x128xf32>
    %388 = arith.subf %385, %387 : vector<2x128xf32>
    %389 = vector.broadcast %6 : f32 to vector<2x128xf32>
    %390 = arith.cmpf ogt, %388, %389 : vector<2x128xf32>
    %391 = arith.extui %390 : vector<2x128xi1> to vector<2x128xi32>
    %392 = arith.sitofp %391 : vector<2x128xi32> to vector<2x128xf32>
    %c0_99 = arith.constant 0 : index
    %c0_100 = arith.constant 0 : index
    %393 = vector.load %arg7[%c0_99, %c0_100] : memref<128x256xf32, #tpu.memory_space<vmem>>, vector<128x256xf32>
    %c0_101 = arith.constant 0 : index
    %c0_102 = arith.constant 0 : index
    %394 = vector.load %arg8[%c0_101, %c0_102] : memref<1x256xf32, #tpu.memory_space<vmem>>, vector<1x256xf32>
    %cst_103 = arith.constant dense<0.000000e+00> : vector<2x256xf32>
    %395 = tpu.matmul %392, %393, %cst_103 {dimension_numbers = #tpu.dot_dimension_numbers<[1], [0], [0], [1], [0, 0, 1, 1], [], []>} : vector<2x128xf32>, vector<128x256xf32>, vector<2x256xf32> -> vector<2x256xf32>
    %396 = vector.broadcast %394 : vector<1x256xf32> to vector<2x256xf32>
    %397 = arith.addf %395, %396 : vector<2x256xf32>
    %398 = vector.extract_strided_slice %397 {offsets = [0, 0], sizes = [2, 128], strides = [1, 1]} : vector<2x256xf32> to vector<2x128xf32>
    %399 = vector.extract_strided_slice %397 {offsets = [0, 128], sizes = [2, 128], strides = [1, 1]} : vector<2x256xf32> to vector<2x128xf32>
    %400 = arith.maximumf %398, %399 : vector<2x128xf32>
    %401 = vector.broadcast %7 : f32 to vector<2x128xf32>
    %402 = arith.cmpf ogt, %299, %401 : vector<2x128xf32>
    %403 = arith.extui %402 : vector<2x128xi1> to vector<2x128xi32>
    %404 = arith.sitofp %403 : vector<2x128xi32> to vector<2x128xf32>
    %405 = vector.broadcast %2 : f32 to vector<2x128xf32>
    %406 = arith.mulf %405, %299 : vector<2x128xf32>
    %407 = arith.addf %406, %400 : vector<2x128xf32>
    %408 = vector.broadcast %7 : f32 to vector<2x128xf32>
    %409 = arith.mulf %404, %408 : vector<2x128xf32>
    %410 = arith.subf %407, %409 : vector<2x128xf32>
    %411 = vector.broadcast %7 : f32 to vector<2x128xf32>
    %412 = arith.cmpf ogt, %410, %411 : vector<2x128xf32>
    %413 = arith.extui %412 : vector<2x128xi1> to vector<2x128xi32>
    %414 = arith.sitofp %413 : vector<2x128xi32> to vector<2x128xf32>
    %c0_104 = arith.constant 0 : index
    %c0_105 = arith.constant 0 : index
    %415 = vector.load %arg9[%c0_104, %c0_105] : memref<128x256xf32, #tpu.memory_space<vmem>>, vector<128x256xf32>
    %c0_106 = arith.constant 0 : index
    %c0_107 = arith.constant 0 : index
    %416 = vector.load %arg10[%c0_106, %c0_107] : memref<1x256xf32, #tpu.memory_space<vmem>>, vector<1x256xf32>
    %cst_108 = arith.constant dense<0.000000e+00> : vector<2x256xf32>
    %417 = tpu.matmul %414, %415, %cst_108 {dimension_numbers = #tpu.dot_dimension_numbers<[1], [0], [0], [1], [0, 0, 1, 1], [], []>} : vector<2x128xf32>, vector<128x256xf32>, vector<2x256xf32> -> vector<2x256xf32>
    %418 = vector.broadcast %416 : vector<1x256xf32> to vector<2x256xf32>
    %419 = arith.addf %417, %418 : vector<2x256xf32>
    %420 = vector.extract_strided_slice %419 {offsets = [0, 0], sizes = [2, 128], strides = [1, 1]} : vector<2x256xf32> to vector<2x128xf32>
    %421 = vector.extract_strided_slice %419 {offsets = [0, 128], sizes = [2, 128], strides = [1, 1]} : vector<2x256xf32> to vector<2x128xf32>
    %422 = arith.maximumf %420, %421 : vector<2x128xf32>
    %423 = vector.broadcast %8 : f32 to vector<2x128xf32>
    %424 = arith.cmpf ogt, %321, %423 : vector<2x128xf32>
    %425 = arith.extui %424 : vector<2x128xi1> to vector<2x128xi32>
    %426 = arith.sitofp %425 : vector<2x128xi32> to vector<2x128xf32>
    %427 = vector.broadcast %3 : f32 to vector<2x128xf32>
    %428 = arith.mulf %427, %321 : vector<2x128xf32>
    %429 = arith.addf %428, %422 : vector<2x128xf32>
    %430 = vector.broadcast %8 : f32 to vector<2x128xf32>
    %431 = arith.mulf %426, %430 : vector<2x128xf32>
    %432 = arith.subf %429, %431 : vector<2x128xf32>
    %433 = vector.broadcast %8 : f32 to vector<2x128xf32>
    %434 = arith.cmpf ogt, %432, %433 : vector<2x128xf32>
    %435 = arith.extui %434 : vector<2x128xi1> to vector<2x128xi32>
    %436 = arith.sitofp %435 : vector<2x128xi32> to vector<2x128xf32>
    %c0_109 = arith.constant 0 : index
    %c0_110 = arith.constant 0 : index
    %437 = vector.load %arg11[%c0_109, %c0_110] : memref<128x10xf32, #tpu.memory_space<vmem>>, vector<128x10xf32>
    %c0_111 = arith.constant 0 : index
    %c0_112 = arith.constant 0 : index
    %438 = vector.load %arg12[%c0_111, %c0_112] : memref<1x10xf32, #tpu.memory_space<vmem>>, vector<1x10xf32>
    %cst_113 = arith.constant dense<0.000000e+00> : vector<2x10xf32>
    %439 = tpu.matmul %436, %437, %cst_113 {dimension_numbers = #tpu.dot_dimension_numbers<[1], [0], [0], [1], [0, 0, 1, 1], [], []>} : vector<2x128xf32>, vector<128x10xf32>, vector<2x10xf32> -> vector<2x10xf32>
    %440 = vector.broadcast %438 : vector<1x10xf32> to vector<2x10xf32>
    %441 = arith.addf %439, %440 : vector<2x10xf32>
    %442 = vector.broadcast %9 : f32 to vector<2x10xf32>
    %443 = arith.cmpf ogt, %340, %442 : vector<2x10xf32>
    %444 = arith.extui %443 : vector<2x10xi1> to vector<2x10xi32>
    %445 = arith.sitofp %444 : vector<2x10xi32> to vector<2x10xf32>
    %446 = vector.broadcast %4 : f32 to vector<2x10xf32>
    %447 = arith.mulf %446, %340 : vector<2x10xf32>
    %448 = arith.addf %447, %441 : vector<2x10xf32>
    %449 = vector.broadcast %9 : f32 to vector<2x10xf32>
    %450 = arith.mulf %445, %449 : vector<2x10xf32>
    %451 = arith.subf %448, %450 : vector<2x10xf32>
    %452 = vector.broadcast %9 : f32 to vector<2x10xf32>
    %453 = arith.cmpf ogt, %451, %452 : vector<2x10xf32>
    %454 = arith.extui %453 : vector<2x10xi1> to vector<2x10xi32>
    %455 = arith.sitofp %454 : vector<2x10xi32> to vector<2x10xf32>
    %456 = arith.index_cast %c3_i32 : i32 to index
    %c0_114 = arith.constant 0 : index
    %c0_115 = arith.constant 0 : index
    %457 = vector.load %arg13[%456, %c0_114, %c0_115] : memref<4x2x10xf32, #tpu.memory_space<vmem>>, vector<1x2x10xf32>
    %458 = vector.shape_cast %457 : vector<1x2x10xf32> to vector<2x10xf32>
    %459 = vector.shape_cast %441 : vector<2x10xf32> to vector<1x2x10xf32>
    tpu.vector_store %arg13[%456, %c0_114, %c0_115], %459 {strides = array<i32>} : memref<4x2x10xf32, #tpu.memory_space<vmem>>, vector<1x2x10xf32>,
    %460 = arith.index_cast %c3_i32 : i32 to index
    %c0_116 = arith.constant 0 : index
    %c0_117 = arith.constant 0 : index
    %461 = vector.load %arg14[%460, %c0_116, %c0_117] : memref<4x2x10xf32, #tpu.memory_space<vmem>>, vector<1x2x10xf32>
    %462 = vector.shape_cast %461 : vector<1x2x10xf32> to vector<2x10xf32>
    %463 = vector.shape_cast %455 : vector<2x10xf32> to vector<1x2x10xf32>
    tpu.vector_store %arg14[%460, %c0_116, %c0_117], %463 {strides = array<i32>} : memref<4x2x10xf32, #tpu.memory_space<vmem>>, vector<1x2x10xf32>,
    %464 = arith.index_cast %c3_i32 : i32 to index
    %c0_118 = arith.constant 0 : index
    %c0_119 = arith.constant 0 : index
    %465 = vector.load %arg15[%464, %c0_118, %c0_119] : memref<4x2x10xf32, #tpu.memory_space<vmem>>, vector<1x2x10xf32>
    %466 = vector.shape_cast %465 : vector<1x2x10xf32> to vector<2x10xf32>
    %467 = vector.shape_cast %451 : vector<2x10xf32> to vector<1x2x10xf32>
    tpu.vector_store %arg15[%464, %c0_118, %c0_119], %467 {strides = array<i32>} : memref<4x2x10xf32, #tpu.memory_space<vmem>>, vector<1x2x10xf32>,
    %c4_i32 = arith.constant 4 : i32
    return
  }
}

</mosaic_0001>

<bundles_post_ra>
// kernel: tpu_custom_call.1
= control target key start
LH: loop header
LB: loop body
LE: loop exit
PB: predicated region body
PF: predicated region fallthrough
CT: control target
= control target key end

     0   :  { %21 = vsyncpa [#allocation5], 0  ;;  %s5124_s0 = inlined_call_operand.vmem [shape: f32[5], index: 0, kind: input, shape index: {}]   ;;  %s5125_s1 = inlined_call_operand.vmem [shape: f32[5], index: 1, kind: input, shape index: {}]   ;;  %s5126_s2 = inlined_call_operand.vmem [shape: f32[2,256], index: 2, kind: input, shape index: {}]   ;;  %s5127_s3 = inlined_call_operand.hbm [shape: f32[256,512], index: 3, kind: input, shape index: {}]   ;;  %s5128_s4 = inlined_call_operand.vmem [shape: f32[1,512], index: 4, kind: input, shape index: {}]   ;;  %s5129_s5 = inlined_call_operand.hbm [shape: f32[256,256], index: 5, kind: input, shape index: {}]   ;;  %s5130_s6 = inlined_call_operand.vmem [shape: f32[1,256], index: 6, kind: input, shape index: {}]   ;;  %s5131_s7 = inlined_call_operand.hbm [shape: f32[128,256], index: 7, kind: input, shape index: {}]   ;;  %s5132_s8 = inlined_call_operand.vmem [shape: f32[1,256], index: 8, kind: input, shape index: {}]   ;;  %s5133_s9 = inlined_call_operand.hbm [shape: f32[128,256], index: 9, kind: input, shape index: {}]   ;;  %s5134_s10 = inlined_call_operand.vmem [shape: f32[1,256], index: 10, kind: input, shape index: {}]   ;;  %s5135_s11 = inlined_call_operand.vmem [shape: f32[128,10], index: 11, kind: input, shape index: {}]   ;;  %s5136_s12 = inlined_call_operand.vmem [shape: f32[1,10], index: 12, kind: input, shape index: {}]   ;;  %s5137_s13 = inlined_call_operand.hbm [shape: f32[4,2,10], index: 13, kind: output, shape index: {0}]   ;;  %s5138_s14 = inlined_call_operand.hbm [shape: f32[4,2,10], index: 14, kind: output, shape index: {1}]   ;;  %s5139_s15 = inlined_call_operand.hbm [shape: f32[4,2,10], index: 15, kind: output, shape index: {2}]  }
   0x1   :  { %22 = vsyncpa [#allocation7], 0 }
   0x2   :  { %23 = vsyncpa [#allocation3], 0 }
   0x3   :  { %24 = vsyncpa [#allocation10], 0 }
   0x4   :  { %25 = vsyncpa [#allocation13], 0 }
   0x5   :  { %26 = vsyncpa [#allocation4], 0 }
   0x6   :  { %27 = vsyncpa [#allocation16], 0  ;;  %s3823_s18 = smov [#allocation9]   ;;  %s34_s22 = sshll.u32 %s5124_s0, 4  ;;  %s35_s22 = int_to_ptr.vmem [resolvable:$true] %s34_s22 }
   0x7   :  { %s69_s19 = sshll.u32 %s3823_s18, 4  ;;  %s3631_s25 = scalar_lea.hbm %s5129_s5, 8192  ;;  %s70_s19 = int_to_ptr.vmem [resolvable:$true] %s69_s19 }
   0x8   :  { %p3632_p0 = scmp.ne.s32.totalorder %s5129_s5, %s3631_s25  ;;  %p3635_p1 = scmp.lt.u32.totalorder %s3631_s25, %s5129_s5 }
   0xa   :  { %p3637_p2 = pnand %p3635_p1, %p3632_p0 }
   0xc   :  { %3640 = shalt.err (!%p3637_p2)
}
   0xd   :  { %s3641_s30 = scalar_lea.vmem %s70_s19, 8192  ;;  %p3646_p4 = scmp.lt.s32.totalorder %s70_s19, %s70_s19 }
   0xe   :  { %p3642_p3 = scmp.ne.s32.totalorder %s70_s19, %s3641_s30  ;;  %p3647_p5 = scmp.lt.s32.totalorder %s3641_s30, %s3641_s30 }
  0x10   :  { %p3648_p6 = por %p3647_p5, %p3646_p4 }
  0x12   :  { %p3649_p7 = pnand %p3648_p6, %p3642_p3 }
  0x14   :  { %3652 = shalt.err (!%p3649_p7)
}
  0x15   :  { %s3824_s0 = smov 256   ;;  %s3825_s16 = smov 16  }
  0x16   :  { %75 = dma.hbm_to_vmem [thread:$0]  %s5129_s5, 8192, %s70_s19, [#allocation10], %s3824_s0, %s3824_s0, %s3825_s16  }
  0x17   :  { %s3653_s20 = scalar_lea.vmem %s35_s22, 16  ;;  %p3658_p9 = scmp.lt.s32.totalorder %s35_s22, %s35_s22 }
  0x18   :  { %p3654_p8 = scmp.ne.s32.totalorder %s35_s22, %s3653_s20  ;;  %p3659_p10 = scmp.lt.s32.totalorder %s3653_s20, %s3653_s20 }
  0x1a   :  { %p3660_p11 = por %p3659_p10, %p3658_p9 }
  0x1c   :  { %p3661_p12 = pnand %p3660_p11, %p3654_p8 }
  0x1e   :  { %3664 = shalt.err (!%p3661_p12)
}
  0x1f   :  { %s3826_s21 = smov [#allocation2]   ;;  %s44_s25 = sshll.u32 %s5125_s1, 4  ;;  %s45_s25 = int_to_ptr.vmem [resolvable:$true] %s44_s25 }
  0x20   :  { %37 = dma.vmem_to_smem %s35_s22, 16, %s3826_s21, [#allocation5]  }
  0x21   :  { %s3665_s26 = scalar_lea.vmem %s45_s25, 16  ;;  %p3670_p0 = scmp.lt.s32.totalorder %s45_s25, %s45_s25 }
  0x22   :  { %p3666_p13 = scmp.ne.s32.totalorder %s45_s25, %s3665_s26  ;;  %p3671_p1 = scmp.lt.s32.totalorder %s3665_s26, %s3665_s26 }
  0x24   :  { %p3672_p2 = por %p3671_p1, %p3670_p0 }
  0x26   :  { %p3673_p3 = pnand %p3672_p2, %p3666_p13 }
  0x28   :  { %3676 = shalt.err (!%p3673_p3)
}
  0x29   :  { %s3827_s5 = smov [#allocation6]   ;;  %s3828_s19 = smov [#allocation8]  }
  0x2a   :  { %47 = dma.vmem_to_smem %s45_s25, 16, %s3827_s5, [#allocation7]  }
  0x2b   :  { %s55_s27 = sshll.u32 %s3828_s19, 4  ;;  %s3677_s22 = scalar_lea.hbm %s5127_s3, 16384  ;;  %s56_s27 = int_to_ptr.vmem [resolvable:$true] %s55_s27 }
  0x2c   :  { %p3678_p4 = scmp.ne.s32.totalorder %s5127_s3, %s3677_s22  ;;  %p3681_p5 = scmp.lt.u32.totalorder %s3677_s22, %s5127_s3 }
  0x2e   :  { %p3683_p6 = pnand %p3681_p5, %p3678_p4 }
  0x30   :  { %3686 = shalt.err (!%p3683_p6)
}
  0x31   :  { %s3687_s20 = scalar_lea.vmem %s56_s27, 16384  ;;  %p3692_p8 = scmp.lt.s32.totalorder %s56_s27, %s56_s27 }
  0x32   :  { %p3688_p7 = scmp.ne.s32.totalorder %s56_s27, %s3687_s20  ;;  %p3693_p9 = scmp.lt.s32.totalorder %s3687_s20, %s3687_s20 }
  0x34   :  { %p3694_p10 = por %p3693_p9, %p3692_p8 }
  0x36   :  { %p3695_p11 = pnand %p3694_p10, %p3688_p7 }
  0x38   :  { %3698 = shalt.err (!%p3695_p11)
}
  0x39   :  { %s3829_s21 = smov 512   ;;  %s3830_s23 = smov 32  }
  0x3a   :  { %61 = dma.hbm_to_vmem [thread:$0]  %s5127_s3, 16384, %s56_s27, [#allocation3], %s3829_s21, %s3829_s21, %s3830_s23  }
  0x3b   :  { %s3831_s26 = smov [#allocation11]   ;;  %s3832_s19 = smov [#allocation12]  }
  0x3c   :  { %s83_s5 = sshll.u32 %s3831_s26, 4  ;;  %s97_s28 = sshll.u32 %s3832_s19, 4  ;;  %s84_s5 = int_to_ptr.vmem [resolvable:$true] %s83_s5  ;;  %s3955_s28 = int_to_ptr.vmem [resolvable:$true] %s97_s28 }
  0x3d   :  { %s3699_s30 = scalar_lea.hbm %s5131_s7, 4096 }
  0x3e   :  { %p3700_p12 = scmp.ne.s32.totalorder %s5131_s7, %s3699_s30  ;;  %p3703_p13 = scmp.lt.u32.totalorder %s3699_s30, %s5131_s7 }
  0x40   :  { %p3705_p0 = pnand %p3703_p13, %p3700_p12 }
  0x42   :  { %3708 = shalt.err (!%p3705_p0)
}
  0x43   :  { %s3709_s3 = scalar_lea.vmem %s84_s5, 4096  ;;  %p3714_p2 = scmp.lt.s32.totalorder %s84_s5, %s84_s5 }
  0x44   :  { %p3710_p1 = scmp.ne.s32.totalorder %s84_s5, %s3709_s3  ;;  %p3715_p3 = scmp.lt.s32.totalorder %s3709_s3, %s3709_s3 }
  0x46   :  { %p3716_p4 = por %p3715_p3, %p3714_p2 }
  0x48   :  { %p3717_p5 = pnand %p3716_p4, %p3710_p1 }
  0x4a   :  { %3720 = shalt.err (!%p3717_p5)
}
  0x4b   :  { %89 = dma.hbm_to_vmem [thread:$0]  %s5131_s7, 4096, %s84_s5, [#allocation10], %s3824_s0, %s3824_s0, %s3825_s16  }
  0x4c   :  { %s3721_s26 = scalar_lea.hbm %s5133_s9, 4096 }
  0x4d   :  { %p3722_p6 = scmp.ne.s32.totalorder %s5133_s9, %s3721_s26  ;;  %p3725_p7 = scmp.lt.u32.totalorder %s3721_s26, %s5133_s9 }
  0x4f   :  { %p3727_p8 = pnand %p3725_p7, %p3722_p6 }
  0x51   :  { %3730 = shalt.err (!%p3727_p8)
}
  0x52   :  { %s3731_s17 = scalar_lea.vmem %s3955_s28, 4096  ;;  %p3736_p10 = scmp.lt.s32.totalorder %s3955_s28, %s3955_s28 }
  0x53   :  { %p3732_p9 = scmp.ne.s32.totalorder %s3955_s28, %s3731_s17  ;;  %p3737_p11 = scmp.lt.s32.totalorder %s3731_s17, %s3731_s17 }
  0x55   :  { %p3738_p12 = por %p3737_p11, %p3736_p10 }
  0x57   :  { %p3739_p13 = pnand %p3738_p12, %p3732_p9 }
  0x59   :  { %3742 = shalt.err (!%p3739_p13)
}
  0x5a   :  { %103 = dma.hbm_to_vmem [thread:$0]  %s5133_s9, 4096, %s3955_s28, [#allocation13], %s3824_s0, %s3824_s0, %s3825_s16  }
  0x5b   :  { %3809 = dma.done.wait [#allocation5], 16  }
  0x5c   :  { %3810 = vsyncadd [#allocation5], 4294967280 }
  0x5d   :  { %3811 = dma.done.wait [#allocation7], 16  }
  0x5e   :  { %3812 = vsyncadd [#allocation7], 4294967280 }
  0x5f   :  { %3813 = dma.done.wait [#allocation3], 16384  }
  0x60   :  { %3814 = vsyncadd [#allocation3], 4294950912 }
  0x61   :  { %3815 = dma.done.wait [#allocation10], 12288  }
  0x62   :  { %3816 = vsyncadd [#allocation10], 4294955008 }
  0x63   :  { %3817 = dma.done.wait [#allocation13], 4096  }
  0x64   :  { %3818 = vsyncadd [#allocation13], 4294963200 }
  0x65   :  { %128 = sfence }
  0x66   :  { %v141_v0 = vld [vmem:[#allocation8 + $0x8] sm:$0xff]  ;;  %v143_v2 = vld [vmem:[#allocation8 + $0x18] sm:$0xff]  ;;  %v140_v5 = vld [vmem:[#allocation8] sm:$0xff]  ;;  %s129_s16 = sld [smem:[#allocation2]]  ;;  %s2602_s18 = sld [smem:[#allocation2 + $0x1]]  ;;  %vm3836_vm9 = vmmov 0  }
  0x67   :  { %v145_v1 = vld [vmem:[#allocation8 + $0x28] sm:$0xff]  ;;  %v147_v4 = vld [vmem:[#allocation8 + $0x38] sm:$0xff]  ;;  %v144_v6 = vld [vmem:[#allocation8 + $0x20] sm:$0xff]  ;;  %s2607_s20 = sld [smem:[#allocation6 + $0x2]]  ;;  %vm983_vm14 = vcmask 74752   ;;  %s3838_s19 = smov [#allocation15]  }
  0x68   :  { %v2877_v3 = vpack.c.bf16 %v145_v1, %v141_v0  ;;  %v2941_v7 = vpack.c.bf16 %v147_v4, %v143_v2  ;;  %v2879_v8 = vpack.c.bf16 %v144_v6, %v140_v5  ;;  %v142_v9 = vld [vmem:[#allocation8 + $0x10] sm:$0xff]  ;;  %v149_v11 = vld [vmem:[#allocation8 + $0x48] sm:$0xff]  ;;  %v151_v14 = vld [vmem:[#allocation8 + $0x58] sm:$0xff]  ;;  %s2603_s3 = sld [smem:[#allocation2 + $0x2]]  ;;  %s2567_s29 = sshll.u32 %s3838_s19, 4  ;;  %s2568_s29 = int_to_ptr.vmem [resolvable:$true] %s2567_s29 }
  0x69   :  { %v146_v10 = vld [vmem:[#allocation8 + $0x30] sm:$0xff]  ;;  %v153_v13 = vld [vmem:[#allocation8 + $0x68] sm:$0xff]  ;;  %v155_v15 = vld [vmem:[#allocation8 + $0x78] sm:$0xff] }
  0x6a   :  { %2878 = vmatprep.subr.bf16.mxu0 %v2877_v3  ;;  %v2943_v12 = vpack.c.bf16 %v146_v10, %v142_v9  ;;  %2942 = vmatprep.subr.bf16.mxu1 %v2941_v7  ;;  %v2881_v16 = vpack.c.bf16 %v153_v13, %v149_v11  ;;  %v2945_v17 = vpack.c.bf16 %v155_v15, %v151_v14  ;;  %v148_v18 = vld [vmem:[#allocation8 + $0x40] sm:$0xff]  ;;  %v150_v20 = vld [vmem:[#allocation8 + $0x50] sm:$0xff]  ;;  %v157_v23 = vld [vmem:[#allocation8 + $0x88] sm:$0xff] }
  0x6b   :  { %2880 = vmatpush1.bf16.msra.mxu0 %v2879_v8  ;;  %v152_v19 = vld [vmem:[#allocation8 + $0x60] sm:$0xff]  ;;  %v154_v22 = vld [vmem:[#allocation8 + $0x70] sm:$0xff]  ;;  %v161_v24 = vld [vmem:[#allocation8 + $0xa8] sm:$0xff] }
  0x6c   :  { %2944 = vmatpush1.bf16.msra.mxu1 %v2943_v12  ;;  %v2883_v21 = vpack.c.bf16 %v152_v19, %v148_v18  ;;  %2882 = vmatprep.subr.bf16.mxu0 %v2881_v16  ;;  %v2947_v25 = vpack.c.bf16 %v154_v22, %v150_v20  ;;  %v2885_v26 = vpack.c.bf16 %v161_v24, %v157_v23  ;;  %v159_v27 = vld [vmem:[#allocation8 + $0x98] sm:$0xff]  ;;  %v156_v29 = vld [vmem:[#allocation8 + $0x80] sm:$0xff]  ;;  %v158_v32 = vld [vmem:[#allocation8 + $0x90] sm:$0xff] }
  0x6d   :  { %2946 = vmatprep.subr.bf16.mxu1 %v2945_v17  ;;  %v163_v28 = vld [vmem:[#allocation8 + $0xb8] sm:$0xff]  ;;  %v160_v31 = vld [vmem:[#allocation8 + $0xa0] sm:$0xff]  ;;  %v162_v33 = vld [vmem:[#allocation8 + $0xb0] sm:$0xff] }
  0x6e   :  { %v2949_v30 = vpack.c.bf16 %v163_v28, %v159_v27  ;;  %v2887_v34 = vpack.c.bf16 %v160_v31, %v156_v29  ;;  %v165_v35 = vld [vmem:[#allocation8 + $0xc8] sm:$0xff]  ;;  %v167_v37 = vld [vmem:[#allocation8 + $0xd8] sm:$0xff]  ;;  %v2951_v38 = vpack.c.bf16 %v162_v33, %v158_v32  ;;  %v164_v41 = vld [vmem:[#allocation8 + $0xc0] sm:$0xff] }
  0x6f   :  { %2884 = vmatpush1.bf16.msra.mxu0 %v2883_v21  ;;  %v169_v36 = vld [vmem:[#allocation8 + $0xe8] sm:$0xff]  ;;  %v171_v40 = vld [vmem:[#allocation8 + $0xf8] sm:$0xff]  ;;  %v168_v42 = vld [vmem:[#allocation8 + $0xe0] sm:$0xff] }
  0x70   :  { %2948 = vmatpush1.bf16.msra.mxu1 %v2947_v25  ;;  %2886 = vmatprep.subr.bf16.mxu0 %v2885_v26  ;;  %v2889_v39 = vpack.c.bf16 %v169_v36, %v165_v35  ;;  %v2953_v43 = vpack.c.bf16 %v171_v40, %v167_v37  ;;  %v166_v44 = vld [vmem:[#allocation8 + $0xd0] sm:$0xff]  ;;  %v173_v46 = vld [vmem:[#allocation8 + $0x108] sm:$0xff]  ;;  %v175_v48 = vld [vmem:[#allocation8 + $0x118] sm:$0xff]  ;;  %v2891_v50 = vpack.c.bf16 %v168_v42, %v164_v41 }
  0x71   :  { %2950 = vmatprep.subr.bf16.mxu1 %v2949_v30  ;;  %v170_v45 = vld [vmem:[#allocation8 + $0xf0] sm:$0xff]  ;;  %v177_v47 = vld [vmem:[#allocation8 + $0x128] sm:$0xff]  ;;  %v179_v49 = vld [vmem:[#allocation8 + $0x138] sm:$0xff] }
  0x72   :  { %v2955_v51 = vpack.c.bf16 %v170_v45, %v166_v44  ;;  %v2893_v52 = vpack.c.bf16 %v177_v47, %v173_v46  ;;  %v172_v53 = vld [vmem:[#allocation8 + $0x100] sm:$0xff]  ;;  %v174_v55 = vld [vmem:[#allocation8 + $0x110] sm:$0xff]  ;;  %v2957_v56 = vpack.c.bf16 %v179_v49, %v175_v48  ;;  %v181_v58 = vld [vmem:[#allocation8 + $0x148] sm:$0xff] }
  0x73   :  { %2888 = vmatpush1.bf16.msra.mxu0 %v2887_v34  ;;  %v176_v54 = vld [vmem:[#allocation8 + $0x120] sm:$0xff]  ;;  %v178_v57 = vld [vmem:[#allocation8 + $0x130] sm:$0xff]  ;;  %v185_v59 = vld [vmem:[#allocation8 + $0x168] sm:$0xff] }
  0x74   :  { %2952 = vmatpush1.bf16.msra.mxu1 %v2951_v38  ;;  %2890 = vmatprep.subr.bf16.mxu0 %v2889_v39  ;;  %v183_v60 = vld [vmem:[#allocation8 + $0x158] sm:$0xff]  ;;  %v2895_v62 = vpack.c.bf16 %v176_v54, %v172_v53  ;;  %v2959_v63 = vpack.c.bf16 %v178_v57, %v174_v55  ;;  %v2897_v0 = vpack.c.bf16 %v185_v59, %v181_v58  ;;  %v180_v1 = vld [vmem:[#allocation8 + $0x140] sm:$0xff]  ;;  %v182_v3 = vld [vmem:[#allocation8 + $0x150] sm:$0xff] }
  0x75   :  { %2954 = vmatprep.subr.bf16.mxu1 %v2953_v43  ;;  %v187_v61 = vld [vmem:[#allocation8 + $0x178] sm:$0xff]  ;;  %v184_v2 = vld [vmem:[#allocation8 + $0x160] sm:$0xff]  ;;  %v186_v5 = vld [vmem:[#allocation8 + $0x170] sm:$0xff] }
  0x76   :  { %v2961_v4 = vpack.c.bf16 %v187_v61, %v183_v60  ;;  %v189_v6 = vld [vmem:[#allocation8 + $0x188] sm:$0xff]  ;;  %v191_v8 = vld [vmem:[#allocation8 + $0x198] sm:$0xff]  ;;  %v2899_v10 = vpack.c.bf16 %v184_v2, %v180_v1  ;;  %v2963_v11 = vpack.c.bf16 %v186_v5, %v182_v3  ;;  %v188_v13 = vld [vmem:[#allocation8 + $0x180] sm:$0xff] }
  0x77   :  { %2892 = vmatpush1.bf16.msra.mxu0 %v2891_v50  ;;  %v193_v7 = vld [vmem:[#allocation8 + $0x1a8] sm:$0xff]  ;;  %v195_v9 = vld [vmem:[#allocation8 + $0x1b8] sm:$0xff]  ;;  %v192_v14 = vld [vmem:[#allocation8 + $0x1a0] sm:$0xff] }
  0x78   :  { %2956 = vmatpush1.bf16.msra.mxu1 %v2955_v51  ;;  %2894 = vmatprep.subr.bf16.mxu0 %v2893_v52  ;;  %v2901_v12 = vpack.c.bf16 %v193_v7, %v189_v6  ;;  %v190_v15 = vld [vmem:[#allocation8 + $0x190] sm:$0xff]  ;;  %v2965_v16 = vpack.c.bf16 %v195_v9, %v191_v8  ;;  %v197_v18 = vld [vmem:[#allocation8 + $0x1c8] sm:$0xff]  ;;  %v199_v20 = vld [vmem:[#allocation8 + $0x1d8] sm:$0xff]  ;;  %v2903_v22 = vpack.c.bf16 %v192_v14, %v188_v13 }
  0x79   :  { %2958 = vmatprep.subr.bf16.mxu1 %v2957_v56  ;;  %v194_v17 = vld [vmem:[#allocation8 + $0x1b0] sm:$0xff]  ;;  %v201_v19 = vld [vmem:[#allocation8 + $0x1e8] sm:$0xff]  ;;  %v203_v21 = vld [vmem:[#allocation8 + $0x1f8] sm:$0xff] }
  0x7a   :  { %v2967_v23 = vpack.c.bf16 %v194_v17, %v190_v15  ;;  %v2905_v24 = vpack.c.bf16 %v201_v19, %v197_v18  ;;  %v196_v25 = vld [vmem:[#allocation8 + $0x1c0] sm:$0xff]  ;;  %v198_v27 = vld [vmem:[#allocation8 + $0x1d0] sm:$0xff]  ;;  %v2969_v28 = vpack.c.bf16 %v203_v21, %v199_v20  ;;  %v205_v30 = vld [vmem:[#allocation8 + $0x208] sm:$0xff] }
  0x7b   :  { %2896 = vmatpush1.bf16.msra.mxu0 %v2895_v62  ;;  %v200_v26 = vld [vmem:[#allocation8 + $0x1e0] sm:$0xff]  ;;  %v202_v29 = vld [vmem:[#allocation8 + $0x1f0] sm:$0xff]  ;;  %v209_v31 = vld [vmem:[#allocation8 + $0x228] sm:$0xff] }
  0x7c   :  { %2960 = vmatpush1.bf16.msra.mxu1 %v2959_v63  ;;  %2898 = vmatprep.subr.bf16.mxu0 %v2897_v0  ;;  %v207_v32 = vld [vmem:[#allocation8 + $0x218] sm:$0xff]  ;;  %v2907_v34 = vpack.c.bf16 %v200_v26, %v196_v25  ;;  %v2971_v35 = vpack.c.bf16 %v202_v29, %v198_v27  ;;  %v2909_v36 = vpack.c.bf16 %v209_v31, %v205_v30  ;;  %v204_v37 = vld [vmem:[#allocation8 + $0x200] sm:$0xff]  ;;  %v206_v39 = vld [vmem:[#allocation8 + $0x210] sm:$0xff] }
  0x7d   :  { %2962 = vmatprep.subr.bf16.mxu1 %v2961_v4  ;;  %v211_v33 = vld [vmem:[#allocation8 + $0x238] sm:$0xff]  ;;  %v208_v38 = vld [vmem:[#allocation8 + $0x220] sm:$0xff]  ;;  %v210_v41 = vld [vmem:[#allocation8 + $0x230] sm:$0xff] }
  0x7e   :  { %v2973_v40 = vpack.c.bf16 %v211_v33, %v207_v32  ;;  %v213_v42 = vld [vmem:[#allocation8 + $0x248] sm:$0xff]  ;;  %v215_v44 = vld [vmem:[#allocation8 + $0x258] sm:$0xff]  ;;  %v2911_v46 = vpack.c.bf16 %v208_v38, %v204_v37  ;;  %v2975_v47 = vpack.c.bf16 %v210_v41, %v206_v39  ;;  %v212_v49 = vld [vmem:[#allocation8 + $0x240] sm:$0xff] }
  0x7f   :  { %2900 = vmatpush1.bf16.msra.mxu0 %v2899_v10  ;;  %v217_v43 = vld [vmem:[#allocation8 + $0x268] sm:$0xff]  ;;  %v219_v45 = vld [vmem:[#allocation8 + $0x278] sm:$0xff]  ;;  %v216_v50 = vld [vmem:[#allocation8 + $0x260] sm:$0xff] }
  0x80   :  { %2964 = vmatpush1.bf16.msra.mxu1 %v2963_v11  ;;  %2902 = vmatprep.subr.bf16.mxu0 %v2901_v12  ;;  %v2913_v48 = vpack.c.bf16 %v217_v43, %v213_v42  ;;  %v214_v51 = vld [vmem:[#allocation8 + $0x250] sm:$0xff]  ;;  %v2977_v52 = vpack.c.bf16 %v219_v45, %v215_v44  ;;  %v221_v54 = vld [vmem:[#allocation8 + $0x288] sm:$0xff]  ;;  %v223_v56 = vld [vmem:[#allocation8 + $0x298] sm:$0xff]  ;;  %v2915_v58 = vpack.c.bf16 %v216_v50, %v212_v49 }
  0x81   :  { %2966 = vmatprep.subr.bf16.mxu1 %v2965_v16  ;;  %v218_v53 = vld [vmem:[#allocation8 + $0x270] sm:$0xff]  ;;  %v225_v55 = vld [vmem:[#allocation8 + $0x2a8] sm:$0xff]  ;;  %v227_v57 = vld [vmem:[#allocation8 + $0x2b8] sm:$0xff] }
  0x82   :  { %v2979_v59 = vpack.c.bf16 %v218_v53, %v214_v51  ;;  %v2917_v60 = vpack.c.bf16 %v225_v55, %v221_v54  ;;  %v220_v61 = vld [vmem:[#allocation8 + $0x280] sm:$0xff]  ;;  %v222_v63 = vld [vmem:[#allocation8 + $0x290] sm:$0xff]  ;;  %v2981_v0 = vpack.c.bf16 %v227_v57, %v223_v56  ;;  %v229_v2 = vld [vmem:[#allocation8 + $0x2c8] sm:$0xff] }
  0x83   :  { %2904 = vmatpush1.bf16.msra.mxu0 %v2903_v22  ;;  %v224_v62 = vld [vmem:[#allocation8 + $0x2a0] sm:$0xff]  ;;  %v226_v1 = vld [vmem:[#allocation8 + $0x2b0] sm:$0xff]  ;;  %v233_v3 = vld [vmem:[#allocation8 + $0x2e8] sm:$0xff] }
  0x84   :  { %2968 = vmatpush1.bf16.msra.mxu1 %v2967_v23  ;;  %2906 = vmatprep.subr.bf16.mxu0 %v2905_v24  ;;  %v231_v4 = vld [vmem:[#allocation8 + $0x2d8] sm:$0xff]  ;;  %v2919_v6 = vpack.c.bf16 %v224_v62, %v220_v61  ;;  %v228_v7 = vld [vmem:[#allocation8 + $0x2c0] sm:$0xff]  ;;  %v2983_v8 = vpack.c.bf16 %v226_v1, %v222_v63  ;;  %v2921_v9 = vpack.c.bf16 %v233_v3, %v229_v2  ;;  %v230_v11 = vld [vmem:[#allocation8 + $0x2d0] sm:$0xff] }
  0x85   :  { %2970 = vmatprep.subr.bf16.mxu1 %v2969_v28  ;;  %v235_v5 = vld [vmem:[#allocation8 + $0x2f8] sm:$0xff]  ;;  %v232_v10 = vld [vmem:[#allocation8 + $0x2e0] sm:$0xff]  ;;  %v234_v12 = vld [vmem:[#allocation8 + $0x2f0] sm:$0xff] }
  0x86   :  { %v2985_v13 = vpack.c.bf16 %v235_v5, %v231_v4  ;;  %v237_v14 = vld [vmem:[#allocation8 + $0x308] sm:$0xff]  ;;  %v3995_v16 = vld.sshfl [vmem:[%s5126_s2] sm:$0x33 pattern:$0x76325410]  ;;  %v239_v17 = vld [vmem:[#allocation8 + $0x318] sm:$0xff]  ;;  %v2923_v20 = vpack.c.bf16 %v232_v10, %v228_v7  ;;  %v2987_v21 = vpack.c.bf16 %v234_v12, %v230_v11 }
  0x87   :  { %2908 = vmatpush1.bf16.msra.mxu0 %v2907_v34  ;;  %v241_v15 = vld [vmem:[#allocation8 + $0x328] sm:$0xff]  ;;  %v243_v18 = vld [vmem:[#allocation8 + $0x338] sm:$0xff]  ;;  %v298_v19 = vcombine.high %v3995_v16, %v3995_v16  ;;  %v236_v23 = vld [vmem:[#allocation8 + $0x300] sm:$0xff]  ;;  %s134_s2 = sld [smem:[#allocation6]] }
  0x88   :  { %2972 = vmatpush1.bf16.msra.mxu1 %v2971_v35  ;;  %2910 = vmatprep.subr.bf16.mxu0 %v2909_v36  ;;  %v2925_v22 = vpack.c.bf16 %v241_v15, %v237_v14  ;;  %v240_v24 = vld [vmem:[#allocation8 + $0x320] sm:$0xff]  ;;  %v238_v25 = vld [vmem:[#allocation8 + $0x310] sm:$0xff]  ;;  %v2989_v26 = vpack.c.bf16 %v243_v18, %v239_v17  ;;  %v245_v28 = vld [vmem:[#allocation8 + $0x348] sm:$0xff] }
  0x89   :  { %2974 = vmatprep.subr.bf16.mxu1 %v2973_v40  ;;  %v242_v27 = vld [vmem:[#allocation8 + $0x330] sm:$0xff]  ;;  %v249_v29 = vld [vmem:[#allocation8 + $0x368] sm:$0xff]  ;;  %365 = vmatprep.mubr.f32.mxu0 %v298_v19  ;;  %v247_v30 = vld [vmem:[#allocation8 + $0x358] sm:$0xff]  ;;  %v2927_v32 = vpack.c.bf16 %v240_v24, %v236_v23 }
  0x8a   :  { %v251_v31 = vld [vmem:[#allocation8 + $0x378] sm:$0xff]  ;;  %436 = vmatprep.mubr.f32.mxu1 %v298_v19  ;;  %v2991_v33 = vpack.c.bf16 %v242_v27, %v238_v25  ;;  %v2929_v34 = vpack.c.bf16 %v249_v29, %v245_v28  ;;  %v244_v35 = vld [vmem:[#allocation8 + $0x340] sm:$0xff]  ;;  %v246_v37 = vld [vmem:[#allocation8 + $0x350] sm:$0xff] }
  0x8b   :  { %2912 = vmatpush1.bf16.msra.mxu0 %v2911_v46  ;;  %v248_v36 = vld [vmem:[#allocation8 + $0x360] sm:$0xff]  ;;  %v2993_v38 = vpack.c.bf16 %v251_v31, %v247_v30  ;;  %v250_v39 = vld [vmem:[#allocation8 + $0x370] sm:$0xff]  ;;  %v253_v40 = vld [vmem:[#allocation8 + $0x388] sm:$0xff] }
  0x8c   :  { %2976 = vmatpush1.bf16.msra.mxu1 %v2975_v47  ;;  %2914 = vmatprep.subr.bf16.mxu0 %v2913_v48  ;;  %v257_v41 = vld [vmem:[#allocation8 + $0x3a8] sm:$0xff]  ;;  %v255_v42 = vld [vmem:[#allocation8 + $0x398] sm:$0xff]  ;;  %v2931_v44 = vpack.c.bf16 %v248_v36, %v244_v35  ;;  %v2995_v45 = vpack.c.bf16 %v250_v39, %v246_v37  ;;  %v252_v47 = vld [vmem:[#allocation8 + $0x380] sm:$0xff] }
  0x8d   :  { %2978 = vmatprep.subr.bf16.mxu1 %v2977_v52  ;;  %v259_v43 = vld [vmem:[#allocation8 + $0x3b8] sm:$0xff]  ;;  %v2933_v46 = vpack.c.bf16 %v257_v41, %v253_v40  ;;  %v256_v48 = vld [vmem:[#allocation8 + $0x3a0] sm:$0xff]  ;;  %v254_v49 = vld [vmem:[#allocation8 + $0x390] sm:$0xff] }
  0x8e   :  { %v2997_v50 = vpack.c.bf16 %v259_v43, %v255_v42  ;;  %v258_v51 = vld [vmem:[#allocation8 + $0x3b0] sm:$0xff]  ;;  %v261_v52 = vld [vmem:[#allocation8 + $0x3c8] sm:$0xff]  ;;  %v263_v54 = vld [vmem:[#allocation8 + $0x3d8] sm:$0xff]  ;;  %v2935_v56 = vpack.c.bf16 %v256_v48, %v252_v47 }
  0x8f   :  { %2916 = vmatpush1.bf16.msra.mxu0 %v2915_v58  ;;  %v265_v53 = vld [vmem:[#allocation8 + $0x3e8] sm:$0xff]  ;;  %v267_v55 = vld [vmem:[#allocation8 + $0x3f8] sm:$0xff]  ;;  %v2999_v57 = vpack.c.bf16 %v258_v51, %v254_v49  ;;  %v262_v61 = vld [vmem:[#allocation8 + $0x3d0] sm:$0xff] }
  0x90   :  { %2980 = vmatpush1.bf16.msra.mxu1 %v2979_v59  ;;  %2918 = vmatprep.subr.bf16.mxu0 %v2917_v60  ;;  %v2937_v58 = vpack.c.bf16 %v265_v53, %v261_v52  ;;  %v260_v59 = vld [vmem:[#allocation8 + $0x3c0] sm:$0xff]  ;;  %v3001_v62 = vpack.c.bf16 %v267_v55, %v263_v54  ;;  %v266_v63 = vld [vmem:[#allocation8 + $0x3f0] sm:$0xff]  ;;  %v465_v1 = vld [vmem:[#allocation9 + $0x18] sm:$0xff] }
  0x91   :  { %2982 = vmatprep.subr.bf16.mxu1 %v2981_v0  ;;  %v264_v60 = vld [vmem:[#allocation8 + $0x3e0] sm:$0xff]  ;;  %v463_v0 = vld [vmem:[#allocation9 + $0x8] sm:$0xff]  ;;  %v3003_v3 = vpack.c.bf16 %v266_v63, %v262_v61  ;;  %v468_v12 = vld [vmem:[#allocation9 + $0x30] sm:$0xff] }
  0x92   :  { %v2939_v2 = vpack.c.bf16 %v264_v60, %v260_v59  ;;  %v3999_v4 = vpack.c.bf16 %v465_v1, %v463_v0  ;;  %v462_v5 = vld [vmem:[#allocation9] sm:$0xff]  ;;  %v467_v7 = vld [vmem:[#allocation9 + $0x28] sm:$0xff]  ;;  %v473_v14 = vld [vmem:[#allocation9 + $0x58] sm:$0xff] }
  0x93   :  { %2920 = vmatpush1.bf16.msra.mxu0 %v2919_v6  ;;  %v464_v6 = vld [vmem:[#allocation9 + $0x10] sm:$0xff]  ;;  %v466_v11 = vld [vmem:[#allocation9 + $0x20] sm:$0xff]  ;;  %v479_v25 = vld [vmem:[#allocation9 + $0x88] sm:$0xff] }
  0x94   :  { %2984 = vmatpush1.bf16.msra.mxu1 %v2983_v8  ;;  %2922 = vmatprep.subr.bf16.mxu0 %v2921_v9  ;;  %v469_v8 = vld [vmem:[#allocation9 + $0x38] sm:$0xff]  ;;  %v4001_v9 = vpack.c.bf16 %v464_v6, %v462_v5  ;;  %v4009_v15 = vpack.c.bf16 %v468_v12, %v466_v11  ;;  %v470_v18 = vld [vmem:[#allocation9 + $0x40] sm:$0xff]  ;;  %v472_v19 = vld [vmem:[#allocation9 + $0x50] sm:$0xff] }
  0x95   :  { %2986 = vmatprep.subr.bf16.mxu1 %v2985_v13  ;;  %v4004_v10 = vpack.c.bf16 %v469_v8, %v467_v7  ;;  %v471_v13 = vld [vmem:[#allocation9 + $0x48] sm:$0xff]  ;;  %v476_v24 = vld [vmem:[#allocation9 + $0x70] sm:$0xff]  ;;  %v478_v29 = vld [vmem:[#allocation9 + $0x80] sm:$0xff] }
  0x96   :  { %v4012_v17 = vpack.c.bf16 %v473_v14, %v471_v13  ;;  %v480_v30 = vld [vmem:[#allocation9 + $0x90] sm:$0xff]  ;;  %v483_v31 = vld [vmem:[#allocation9 + $0xa8] sm:$0xff]  ;;  %v482_v35 = vld [vmem:[#allocation9 + $0xa0] sm:$0xff] }
  0x97   :  { %2924 = vmatpush1.bf16.msra.mxu0 %v2923_v20  ;;  %v475_v20 = vld [vmem:[#allocation9 + $0x68] sm:$0xff]  ;;  %v484_v36 = vld [vmem:[#allocation9 + $0xb0] sm:$0xff]  ;;  %v486_v41 = vld [vmem:[#allocation9 + $0xc0] sm:$0xff] }
  0x98   :  { %2988 = vmatpush1.bf16.msra.mxu1 %v2987_v21  ;;  %2926 = vmatprep.subr.bf16.mxu0 %v2925_v22  ;;  %v477_v21 = vld [vmem:[#allocation9 + $0x78] sm:$0xff]  ;;  %v4015_v22 = vpack.c.bf16 %v472_v19, %v470_v18  ;;  %v487_v37 = vld [vmem:[#allocation9 + $0xc8] sm:$0xff]  ;;  %v4033_v39 = vpack.c.bf16 %v484_v36, %v482_v35  ;;  %v488_v42 = vld [vmem:[#allocation9 + $0xd0] sm:$0xff] }
  0x99   :  { %2990 = vmatprep.subr.bf16.mxu1 %v2989_v26  ;;  %v4018_v23 = vpack.c.bf16 %v477_v21, %v475_v20  ;;  %v481_v26 = vld [vmem:[#allocation9 + $0x98] sm:$0xff]  ;;  %v491_v43 = vld [vmem:[#allocation9 + $0xe8] sm:$0xff]  ;;  %v490_v47 = vld [vmem:[#allocation9 + $0xe0] sm:$0xff] }
  0x9a   :  { %v4024_v28 = vpack.c.bf16 %v481_v26, %v479_v25  ;;  %v492_v48 = vld [vmem:[#allocation9 + $0xf0] sm:$0xff]  ;;  %v495_v49 = vld [vmem:[#allocation9 + $0x108] sm:$0xff]  ;;  %v494_v53 = vld [vmem:[#allocation9 + $0x100] sm:$0xff] }
  0x9b   :  { %2928 = vmatpush1.bf16.msra.mxu0 %v2927_v32  ;;  %v485_v32 = vld [vmem:[#allocation9 + $0xb8] sm:$0xff]  ;;  %v4045_v51 = vpack.c.bf16 %v492_v48, %v490_v47  ;;  %v496_v54 = vld [vmem:[#allocation9 + $0x110] sm:$0xff]  ;;  %v499_v55 = vld [vmem:[#allocation9 + $0x128] sm:$0xff] }
  0x9c   :  { %2992 = vmatpush1.bf16.msra.mxu1 %v2991_v33  ;;  %2930 = vmatprep.subr.bf16.mxu0 %v2929_v34  ;;  %v4027_v33 = vpack.c.bf16 %v480_v30, %v478_v29  ;;  %v4030_v34 = vpack.c.bf16 %v485_v32, %v483_v31  ;;  %v498_v59 = vld [vmem:[#allocation9 + $0x120] sm:$0xff]  ;;  %v500_v60 = vld [vmem:[#allocation9 + $0x130] sm:$0xff]  ;;  %v503_v61 = vld [vmem:[#allocation9 + $0x148] sm:$0xff] }
  0x9d   :  { %2994 = vmatprep.subr.bf16.mxu1 %v2993_v38  ;;  %v489_v38 = vld [vmem:[#allocation9 + $0xd8] sm:$0xff]  ;;  %v4057_v63 = vpack.c.bf16 %v500_v60, %v498_v59  ;;  %v502_v1 = vld [vmem:[#allocation9 + $0x140] sm:$0xff]  ;;  %v508_v11 = vld [vmem:[#allocation9 + $0x170] sm:$0xff] }
  0x9e   :  { %v4036_v40 = vpack.c.bf16 %v489_v38, %v487_v37  ;;  %v509_v5 = vld [vmem:[#allocation9 + $0x178] sm:$0xff]  ;;  %v506_v8 = vld [vmem:[#allocation9 + $0x160] sm:$0xff]  ;;  %v511_v12 = vld [vmem:[#allocation9 + $0x188] sm:$0xff] }
  0x9f   :  { %2932 = vmatpush1.bf16.msra.mxu0 %v2931_v44  ;;  %v493_v44 = vld [vmem:[#allocation9 + $0xf8] sm:$0xff]  ;;  %v4069_v14 = vpack.c.bf16 %v508_v11, %v506_v8  ;;  %v510_v19 = vld [vmem:[#allocation9 + $0x180] sm:$0xff]  ;;  %v512_v20 = vld [vmem:[#allocation9 + $0x190] sm:$0xff] }
  0xa0   :  { %2996 = vmatpush1.bf16.msra.mxu1 %v2995_v45  ;;  %2934 = vmatprep.subr.bf16.mxu0 %v2933_v46  ;;  %v4039_v45 = vpack.c.bf16 %v488_v42, %v486_v41  ;;  %v4042_v46 = vpack.c.bf16 %v493_v44, %v491_v43  ;;  %v513_v13 = vld [vmem:[#allocation9 + $0x198] sm:$0xff]  ;;  %v4075_v21 = vpack.c.bf16 %v512_v20, %v510_v19  ;;  %v514_v26 = vld [vmem:[#allocation9 + $0x1a0] sm:$0xff]  ;;  %v516_v29 = vld [vmem:[#allocation9 + $0x1b0] sm:$0xff]  ;;  %v5157_v44 = vmov 0.0  }
  0xa1   :  { %2998 = vmatprep.subr.bf16.mxu1 %v2997_v50  ;;  %v497_v50 = vld [vmem:[#allocation9 + $0x118] sm:$0xff]  ;;  %v4072_v18 = vpack.c.bf16 %v513_v13, %v511_v12  ;;  %v4081_v30 = vpack.c.bf16 %v516_v29, %v514_v26  ;;  %v519_v31 = vld [vmem:[#allocation9 + $0x1c8] sm:$0xff]  ;;  %v518_v36 = vld [vmem:[#allocation9 + $0x1c0] sm:$0xff] }
  0xa2   :  { %v4048_v52 = vpack.c.bf16 %v497_v50, %v495_v49  ;;  %v521_v32 = vld [vmem:[#allocation9 + $0x1d8] sm:$0xff]  ;;  %v520_v37 = vld [vmem:[#allocation9 + $0x1d0] sm:$0xff]  ;;  %v523_v41 = vld [vmem:[#allocation9 + $0x1e8] sm:$0xff] }
  0xa3   :  { %2936 = vmatpush1.bf16.msra.mxu0 %v2935_v56  ;;  %v501_v56 = vld [vmem:[#allocation9 + $0x138] sm:$0xff]  ;;  %v4085_v35 = vpack.c.bf16 %v521_v32, %v519_v31  ;;  %v4087_v38 = vpack.c.bf16 %v520_v37, %v518_v36  ;;  %v522_v43 = vld [vmem:[#allocation9 + $0x1e0] sm:$0xff]  ;;  %v524_v48 = vld [vmem:[#allocation9 + $0x1f0] sm:$0xff] }
  0xa4   :  { %3000 = vmatpush1.bf16.msra.mxu1 %v2999_v57  ;;  %2938 = vmatprep.subr.bf16.mxu0 %v2937_v58  ;;  %v4051_v57 = vpack.c.bf16 %v496_v54, %v494_v53  ;;  %v4054_v58 = vpack.c.bf16 %v501_v56, %v499_v55  ;;  %v525_v42 = vld [vmem:[#allocation9 + $0x1f8] sm:$0xff]  ;;  %v4094_v49 = vpack.c.bf16 %v524_v48, %v522_v43  ;;  %v623_v50 = vld [vmem:[#allocation11 + $0x8] sm:$0xff]  ;;  %v622_v54 = vld [vmem:[#allocation11] sm:$0xff] }
  0xa5   :  { %3002 = vmatprep.subr.bf16.mxu1 %v3001_v62  ;;  %v505_v62 = vld [vmem:[#allocation9 + $0x158] sm:$0xff]  ;;  %v4092_v47 = vpack.c.bf16 %v525_v42, %v523_v41  ;;  %v624_v56 = vld [vmem:[#allocation11 + $0x10] sm:$0xff]  ;;  %v627_v59 = vld [vmem:[#allocation11 + $0x28] sm:$0xff] }
  0xa6   :  { %v4060_v0 = vpack.c.bf16 %v505_v62, %v503_v61  ;;  %v625_v53 = vld [vmem:[#allocation11 + $0x18] sm:$0xff]  ;;  %v4100_v61 = vpack.c.bf16 %v624_v56, %v622_v54  ;;  %v630_v12 = vld [vmem:[#allocation11 + $0x40] sm:$0xff]  ;;  %v632_v13 = vld [vmem:[#allocation11 + $0x50] sm:$0xff]  ;;  %v270_v54 = vlaneseq }
  0xa7   :  { %2940 = vmatpush1.bf16.msra.mxu0 %v2939_v2  ;;  %v504_v2 = vld [vmem:[#allocation9 + $0x150] sm:$0xff]  ;;  %v4098_v55 = vpack.c.bf16 %v625_v53, %v623_v50  ;;  %v629_v60 = vld [vmem:[#allocation11 + $0x38] sm:$0xff]  ;;  %v635_v19 = vld [vmem:[#allocation11 + $0x68] sm:$0xff] }
  0xa8   :  { %3004 = vmatpush1.bf16.msra.mxu1 %v3003_v3  ;;  %3006 = vmatprep.subr.bf16.mxu0 %v3999_v4  ;;  %v507_v3 = vld [vmem:[#allocation9 + $0x168] sm:$0xff]  ;;  %v4063_v6 = vpack.c.bf16 %v504_v2, %v502_v1  ;;  %v4102_v62 = vpack.c.bf16 %v629_v60, %v627_v59  ;;  %v626_v1 = vld [vmem:[#allocation11 + $0x20] sm:$0xff]  ;;  %v628_v2 = vld [vmem:[#allocation11 + $0x30] sm:$0xff]  ;;  %v271_v56 = vshrl.u32 %v270_v54, 7 }
  0xa9   :  { %v4066_v7 = vpack.c.bf16 %v509_v5, %v507_v3  ;;  %v631_v3 = vld [vmem:[#allocation11 + $0x48] sm:$0xff]  ;;  %3070 = vmatprep.subr.bf16.mxu1 %v4098_v55  ;;  %v633_v5 = vld [vmem:[#allocation11 + $0x58] sm:$0xff]  ;;  %v4106_v8 = vpack.c.bf16 %v628_v2, %v626_v1  ;;  %v634_v26 = vld [vmem:[#allocation11 + $0x60] sm:$0xff] }
  0xaa   :  { %366 = vmatmul.mubr.f32.vlgmr.msra.gmra.mrb[0].mxu0 %v3995_v16  ;;  %v4109_v11 = vpack.c.bf16 %v633_v5, %v631_v3  ;;  %v637_v20 = vld [vmem:[#allocation11 + $0x78] sm:$0xff]  ;;  %v636_v29 = vld [vmem:[#allocation11 + $0x70] sm:$0xff]  ;;  %v639_v31 = vld [vmem:[#allocation11 + $0x88] sm:$0xff]  ;;  %v4131_v59 = vsub.s32 0, %v271_v56  ;;  %v280_v1 = vsub.s32 2, %v271_v56  ;;  %v4136_v2 = vsub.s32 1, %v271_v56 }
  0xab   :  { %437 = vmatmul.mubr.f32.vlgmr.msra.gmra.mrb[0].mxu1 %v3995_v16  ;;  %3008 = vmatpush1.bf16.msra.mxu0 %v4001_v9  ;;  %v474_v16 = vld [vmem:[#allocation9 + $0x60] sm:$0xff]  ;;  %v641_v32 = vld [vmem:[#allocation11 + $0x98] sm:$0xff]  ;;  %v4118_v36 = vpack.c.bf16 %v636_v29, %v634_v26  ;;  %v640_v42 = vld [vmem:[#allocation11 + $0x90] sm:$0xff]  ;;  %v284_v3 = vsub.s32 3, %v271_v56  ;;  %v4138_v5 = vstv %s134_s2  ;;  %v449_v26 = vstv %s129_s16  ;;  %s2608_s2 = sld [smem:[#allocation6 + $0x3]] }
  0xac   :  { %3010 = vmatprep.subr.bf16.mxu0 %v4004_v10  ;;  %v4021_v27 = vpack.c.bf16 %v476_v24, %v474_v16  ;;  %v515_v16 = vld [vmem:[#allocation9 + $0x1a8] sm:$0xff]  ;;  %v517_v24 = vld [vmem:[#allocation9 + $0x1b8] sm:$0xff]  ;;  %730 = vmatprep.mubr.f32.mxu1 %v5157_v44  ;;  %v4121_v37 = vpack.c.bf16 %v641_v32, %v639_v31  ;;  %v638_v41 = vld [vmem:[#allocation11 + $0x80] sm:$0xff]  ;;  %vm2611_vm0 = vcmp.lt.f32.partialorder %v4138_v5, 0.0  ;;  %v450_v56 = vmul.f32 0.0, %v449_v26  ;;  %s2604_s16 = sld [smem:[#allocation2 + $0x3]] }
  0xad   :  { %v4079_v25 = vpack.c.bf16 %v517_v24, %v515_v16  ;;  %3072 = vmatpush1.bf16.msra.mxu1 %v4100_v61  ;;  %v4112_v16 = vpack.c.bf16 %v632_v13, %v630_v12  ;;  %v4115_v24 = vpack.c.bf16 %v637_v20, %v635_v19  ;;  %5227 = vst [vmem:[#allocation27_spill] sm:$0xff] %v4118_v36  ;;  %v643_v43 = vld [vmem:[#allocation11 + $0xa8] sm:$0xff]  ;;  %v645_v48 = vld [vmem:[#allocation11 + $0xb8] sm:$0xff]  ;;  %v268_v60 = vld [vmem:[%s5128_s4] sm:$0xf]  ;;  %s2606_s4 = sld [smem:[#allocation6 + $0x1]] }
  0xae   :  { %3074 = vmatprep.subr.bf16.mxu1 %v4102_v62  ;;  %5228 = vst [vmem:[#allocation28_spill] sm:$0xff] %v4121_v37  ;;  %v4124_v50 = vpack.c.bf16 %v640_v42, %v638_v41  ;;  %v4127_v53 = vpack.c.bf16 %v645_v48, %v643_v43  ;;  %v273_v12 = vrot.slane %v268_v60, %v4131_v59  ;;  %v2612_v42 = vsel %vm2611_vm0, 1.0, %v5157_v44 }
  0xaf   :  { %3012 = vmatpush1.bf16.msra.mxu0 %v4009_v15  ;;  %5225 = vst [vmem:[#allocation25_spill] sm:$0xff] %v4112_v16  ;;  %5226 = vst [vmem:[#allocation26_spill] sm:$0xff] %v4115_v24  ;;  %v281_v13 = vrot.slane %v268_v60, %v280_v1  ;;  %v277_v19 = vrot.slane %v268_v60, %v4136_v2  ;;  %v285_v20 = vrot.slane %v268_v60, %v284_v3 }
  0xb0   :  { %3014 = vmatprep.subr.bf16.mxu0 %v4012_v17  ;;  %5229 = vst [vmem:[#allocation29_spill] sm:$0xff] %v4124_v50  ;;  %5230 = vst [vmem:[#allocation30_spill] sm:$0xff] %v4127_v53  ;;  %v453_v1 = vmul.f32 %v2612_v42, %v4138_v5 }
  0xb1   :  { %3076 = vmatpush1.bf16.msra.mxu1 %v4106_v8 }
  0xb2   :  { %3078 = vmatprep.subr.bf16.mxu1 %v4109_v11 }
  0xb3   :  { %3016 = vmatpush1.bf16.msra.mxu0 %v4015_v22 }
  0xb4   :  { %3018 = vmatprep.subr.bf16.mxu0 %v4018_v23 }
  0xb5   :  { %3080 = vmatpush1.bf16.msra.mxu1 %v4112_v16 }
  0xb6   :  { %3082 = vmatprep.subr.bf16.mxu1 %v4115_v24 }
  0xb7   :  { %3020 = vmatpush1.bf16.msra.mxu0 %v4021_v27 }
  0xb8   :  { %3022 = vmatprep.subr.bf16.mxu0 %v4024_v28 }
  0xb9   :  { %3084 = vmatpush1.bf16.msra.mxu1 %v4118_v36 }
  0xba   :  { %3086 = vmatprep.subr.bf16.mxu1 %v4121_v37 }
  0xbb   :  { %3024 = vmatpush1.bf16.msra.mxu0 %v4027_v33 }
  0xbc   :  { %3026 = vmatprep.subr.bf16.mxu0 %v4030_v34 }
  0xbd   :  { %3088 = vmatpush1.bf16.msra.mxu1 %v4124_v50 }
  0xbe   :  { %3090 = vmatprep.subr.bf16.mxu1 %v4127_v53 }
  0xbf   :  { %3028 = vmatpush1.bf16.msra.mxu0 %v4033_v39 }
  0xc0   :  { %3030 = vmatprep.subr.bf16.mxu0 %v4036_v40 }
  0xc3   :  { %3032 = vmatpush1.bf16.msra.mxu0 %v4039_v45 }
  0xc4   :  { %3034 = vmatprep.subr.bf16.mxu0 %v4042_v46 }
  0xc7   :  { %3036 = vmatpush1.bf16.msra.mxu0 %v4045_v51 }
  0xc8   :  { %3038 = vmatprep.subr.bf16.mxu0 %v4048_v52 }
  0xcb   :  { %3040 = vmatpush1.bf16.msra.mxu0 %v4051_v57 }
  0xcc   :  { %3042 = vmatprep.subr.bf16.mxu0 %v4054_v58 }
  0xcf   :  { %3044 = vmatpush1.bf16.msra.mxu0 %v4057_v63 }
  0xd0   :  { %3046 = vmatprep.subr.bf16.mxu0 %v4060_v0 }
  0xd3   :  { %3048 = vmatpush1.bf16.msra.mxu0 %v4063_v6 }
  0xd4   :  { %3050 = vmatprep.subr.bf16.mxu0 %v4066_v7 }
  0xd7   :  { %3052 = vmatpush1.bf16.msra.mxu0 %v4069_v14 }
  0xd8   :  { %3054 = vmatprep.subr.bf16.mxu0 %v4072_v18 }
  0xdb   :  { %3056 = vmatpush1.bf16.msra.mxu0 %v4075_v21 }
  0xdc   :  { %3058 = vmatprep.subr.bf16.mxu0 %v4079_v25 }
  0xdf   :  { %3060 = vmatpush1.bf16.msra.mxu0 %v4081_v30 }
  0xe0   :  { %3062 = vmatprep.subr.bf16.mxu0 %v4085_v35 }
  0xe3   :  { %3064 = vmatpush1.bf16.msra.mxu0 %v4087_v38 }
  0xe4   :  { %3066 = vmatprep.subr.bf16.mxu0 %v4092_v47 }
  0xe7   :  { %3068 = vmatpush1.bf16.msra.mxu0 %v4094_v49 }
 0x17d   :  { %v367_v29 = vpop.f32.mrb[0].mxu0 }
 0x17e   :  { %v368_v31 = vadd.f32 %v367_v29, %v273_v12  ;;  %v438_v32 = vpop.f32.mrb[0].mxu1  ;;  %v369_v41 = vpop.f32.mrb[1].mxu0  ;;  %v5146_v29 = vmov 1.0  }
 0x17f   :  { %v439_v43 = vadd.f32 %v438_v32, %v281_v13  ;;  %v370_v48 = vadd.f32 %v369_v41, %v277_v19  ;;  %v440_v54 = vpop.f32.mrb[1].mxu1 }
 0x180   :  { %v441_v53 = vadd.f32 %v440_v54, %v285_v20 }
 0x181   :  { %v443_v50 = vmax.f32 %v368_v31, %v439_v43 }
 0x182   :  { %v444_v37 = vmax.f32 %v370_v48, %v441_v53 }
 0x183   :  { %v451_v36 = vadd.f32 %v450_v56, %v443_v50 }
 0x184   :  { %v452_v24 = vadd.f32 %v450_v56, %v444_v37 }
 0x185   :  { %v454_v16 = vsub.f32 %v451_v36, %v453_v1 }
 0x186   :  { %v455_v60 = vsub.f32 %v452_v24, %v453_v1 }
 0x187   :  { %vm456_vm1 = vcmp.gt.f32.partialorder %v454_v16, %v4138_v5  ;;  %v987_v3 = vmul.f32 %v454_v16, %v449_v26 }
 0x188   :  { %vm457_vm2 = vcmp.gt.f32.partialorder %v455_v60, %v4138_v5  ;;  %v988_v12 = vmul.f32 %v455_v60, %v449_v26  ;;  %v2613_v13 = vsel %vm456_vm1, 1.0, %v5157_v44 }
 0x189   :  { %v2614_v19 = vsel %vm457_vm2, 1.0, %v5157_v44  ;;  %2615 = vmatprep.mubr.msk.f32.mxu0 %vm457_vm2, %v5146_v29  ;;  %v991_v20 = vmul.f32 %v2613_v13, %v4138_v5  ;;  %v989_v53 = vadd.f32 %v987_v3, %v443_v50 }
 0x18a   :  { %v992_v31 = vmul.f32 %v2614_v19, %v4138_v5  ;;  %2616 = vmatmul.mubr.msk.f32.vlgmr.msra.gmra.mrb[2].mxu0 %vm456_vm1, %v5146_v29  ;;  %v990_v24 = vadd.f32 %v988_v12, %v444_v37 }
 0x18b   :  { %v4153_v36 = vsub.f32 %v989_v53, %v991_v20  ;;  %v642_v53 = vld [vmem:[#allocation11 + $0xa0] sm:$0xff] }
 0x18c   :  { %v4155_v16 = vsub.f32 %v990_v24, %v992_v31  ;;  %v644_v31 = vld [vmem:[#allocation11 + $0xb0] sm:$0xff] }
 0x18d   :  { %vm995_vm3 = vcmp.gt.f32.partialorder %v4153_v36, %v4138_v5  ;;  %v1508_v32 = vmul.f32 %v4153_v36, %v449_v26  ;;  %v4183_v24 = vpack.c.bf16 %v644_v31, %v642_v53  ;;  %v753_v53 = vld [vmem:[#allocation12 + $0x18] sm:$0xff]  ;;  %v1065_v36 = vld [vmem:[%s5130_s6] sm:$0x3] }
 0x18e   :  { %vm996_vm4 = vcmp.gt.f32.partialorder %v4155_v16, %v4138_v5  ;;  %v1509_v41 = vmul.f32 %v4155_v16, %v449_v26  ;;  %v2633_v42 = vsel %vm995_vm3, 1.0, %v5157_v44  ;;  %v1070_v16 = vrot.slane %v1065_v36, %v4131_v59 }
 0x18f   :  { %v2634_v43 = vsel %vm996_vm4, 1.0, %v5157_v44  ;;  %v1512_v48 = vmul.f32 %v2633_v42, %v4138_v5  ;;  %v1510_v54 = vadd.f32 %v1508_v32, %v443_v50  ;;  %3092 = vmatpush1.bf16.msra.mxu1 %v4183_v24  ;;  %v647_v32 = vld [vmem:[#allocation11 + $0xc8] sm:$0xff] }
 0x190   :  { %v1513_v56 = vmul.f32 %v2634_v43, %v4138_v5  ;;  %v1511_v1 = vadd.f32 %v1509_v41, %v444_v37  ;;  %v649_v41 = vld [vmem:[#allocation11 + $0xd8] sm:$0xff]  ;;  %v646_v43 = vld [vmem:[#allocation11 + $0xc0] sm:$0xff] }
 0x191   :  { %v4173_v60 = vsub.f32 %v1510_v54, %v1512_v48  ;;  %v4186_v42 = vpack.c.bf16 %v649_v41, %v647_v32  ;;  %v648_v48 = vld [vmem:[#allocation11 + $0xd0] sm:$0xff]  ;;  %v526_v32 = vld [vmem:[%s5130_s6] sm:$0x3]  ;;  %v4204_v41 = vstv %s2606_s4 }
 0x192   :  { %v4175_v3 = vsub.f32 %v1511_v1, %v1513_v56  ;;  %v4188_v54 = vpack.c.bf16 %v648_v48, %v646_v43  ;;  %v650_v56 = vld [vmem:[#allocation11 + $0xe0] sm:$0xff]  ;;  %v652_v1 = vld [vmem:[#allocation11 + $0xf0] sm:$0xff]  ;;  %5240 = vst [vmem:[#allocation40_spill] sm:$0xff] %v4204_v41  ;;  %v531_v43 = vrot.slane %v526_v32, %v4131_v59  ;;  %v535_v48 = vrot.slane %v526_v32, %v4136_v2  ;;  %v757_v32 = vld [vmem:[#allocation12 + $0x38] sm:$0xff] }
 0x193   :  { %5231 = vst [vmem:[#allocation31_spill] sm:$0xff] %v4173_v60  ;;  %v2029_v12 = vmul.f32 %v4173_v60, %v449_v26  ;;  %5235 = vst [vmem:[#allocation35_spill] sm:$0xff] %v4186_v42  ;;  %3094 = vmatprep.subr.bf16.mxu1 %v4186_v42  ;;  %vm2617_vm5 = vcmp.lt.f32.partialorder %v4204_v41, 0.0  ;;  %v750_v60 = vld [vmem:[#allocation12] sm:$0xff] }
 0x194   :  { %5232 = vst [vmem:[#allocation32_spill] sm:$0xff] %v4175_v3  ;;  %v2030_v13 = vmul.f32 %v4175_v3, %v449_v26  ;;  %5236 = vst [vmem:[#allocation36_spill] sm:$0xff] %v4188_v54  ;;  %3096 = vmatpush1.bf16.msra.mxu1 %v4188_v54  ;;  %v752_v3 = vld [vmem:[#allocation12 + $0x10] sm:$0xff] }
 0x195   :  { %v4179_v19 = vadd.f32 %v2029_v12, %v443_v50  ;;  %v653_v50 = vld [vmem:[#allocation11 + $0xf8] sm:$0xff]  ;;  %v4194_v12 = vpack.c.bf16 %v652_v1, %v650_v56  ;;  %v4216_v54 = vpack.c.bf16 %v752_v3, %v750_v60  ;;  %v758_v3 = vld [vmem:[#allocation12 + $0x40] sm:$0xff] }
 0x196   :  { %v4181_v20 = vadd.f32 %v2030_v13, %v444_v37  ;;  %v651_v37 = vld [vmem:[#allocation11 + $0xe8] sm:$0xff] }
 0x197   :  { %5233 = vst [vmem:[#allocation33_spill] sm:$0xff] %v4179_v19  ;;  %v4192_v26 = vpack.c.bf16 %v653_v50, %v651_v37  ;;  %5238 = vst [vmem:[#allocation38_spill] sm:$0xff] %v4194_v12  ;;  %v751_v13 = vld [vmem:[#allocation12 + $0x8] sm:$0xff]  ;;  %v4209_v37 = vstv %s2602_s18 }
 0x198   :  { %5234 = vst [vmem:[#allocation34_spill] sm:$0xff] %v4181_v20  ;;  %v4198_v31 = vpack.c.bf16 %v753_v53, %v751_v13  ;;  %5241 = vst [vmem:[#allocation41_spill] sm:$0xff] %v4209_v37  ;;  %v2618_v13 = vsel %vm2617_vm5, 1.0, %v5157_v44  ;;  %v615_v29 = vmul.f32 0.0, %v4209_v37 }
 0x199   :  { %5237 = vst [vmem:[#allocation37_spill] sm:$0xff] %v4192_v26  ;;  %3098 = vmatprep.subr.bf16.mxu1 %v4192_v26  ;;  %v617_v20 = vmul.f32 %v2618_v13, %v4204_v41  ;;  %5243 = vst [vmem:[#allocation43_spill] sm:$0xff] %v4216_v54 }
 0x19a   :  { %3100 = vmatpush1.bf16.msra.mxu1 %v4194_v12  ;;  %5239 = vst [vmem:[#allocation39_spill] sm:$0xff] %v4198_v31  ;;  %v755_v12 = vld [vmem:[#allocation12 + $0x28] sm:$0xff] }
 0x19b   :  { %3102 = vmatprep.subr.bf16.mxu1 %v4198_v31  ;;  %v4218_v42 = vpack.c.bf16 %v757_v32, %v755_v12  ;;  %v765_v12 = vld [vmem:[#allocation12 + $0x78] sm:$0xff]  ;;  %v764_v32 = vld [vmem:[#allocation12 + $0x70] sm:$0xff] }
 0x19d   :  { %5244 = vst [vmem:[#allocation44_spill] sm:$0xff] %v4218_v42 }
 0x25d   :  { %v604_v50 = vpop.f32.mrb[2].mxu0 }
 0x25e   :  { %v605_v56 = vadd.f32 %v604_v50, %v531_v43  ;;  %v606_v1 = vpop.f32.mrb[3].mxu0  ;;  %v754_v43 = vld [vmem:[#allocation12 + $0x20] sm:$0xff]  ;;  %v756_v50 = vld [vmem:[#allocation12 + $0x30] sm:$0xff] }
 0x25f   :  { %v607_v53 = vadd.f32 %v606_v1, %v535_v48  ;;  %v759_v48 = vld [vmem:[#allocation12 + $0x48] sm:$0xff]  ;;  %v5245_v1 = vmov 1.0  }
 0x261   :  { %v609_v19 = vmax.f32 %v605_v56, %v607_v53  ;;  %v761_v56 = vld [vmem:[#allocation12 + $0x58] sm:$0xff]  ;;  %v762_v53 = vld [vmem:[#allocation12 + $0x60] sm:$0xff] }
 0x262   :  { %v4231_v60 = vpack.c.bf16 %v761_v56, %v759_v48  ;;  %v4240_v48 = vpack.c.bf16 %v764_v32, %v762_v53  ;;  %v775_v32 = vld [vmem:[#allocation12 + $0xc8] sm:$0xff] }
 0x263   :  { %v616_v31 = vadd.f32 %v615_v29, %v609_v19  ;;  %v4227_v29 = vpack.c.bf16 %v756_v50, %v754_v43  ;;  %v760_v19 = vld [vmem:[#allocation12 + $0x50] sm:$0xff]  ;;  %v767_v43 = vld [vmem:[#allocation12 + $0x88] sm:$0xff]  ;;  %v769_v50 = vld [vmem:[#allocation12 + $0x98] sm:$0xff] }
 0x264   :  { %5247 = vst [vmem:[#allocation46_spill] sm:$0xff] %v4231_v60  ;;  %5250 = vst [vmem:[#allocation49_spill] sm:$0xff] %v4240_v48  ;;  %v4243_v56 = vpack.c.bf16 %v769_v50, %v767_v43  ;;  %v777_v43 = vld [vmem:[#allocation12 + $0xd8] sm:$0xff] }
 0x265   :  { %v4214_v26 = vsub.f32 %v616_v31, %v617_v20  ;;  %5246 = vst [vmem:[#allocation45_spill] sm:$0xff] %v4227_v29  ;;  %v763_v20 = vld [vmem:[#allocation12 + $0x68] sm:$0xff]  ;;  %v4234_v31 = vpack.c.bf16 %v760_v19, %v758_v3  ;;  %v773_v19 = vld [vmem:[#allocation12 + $0xb8] sm:$0xff]  ;;  %v4256_v50 = vpack.c.bf16 %v777_v43, %v775_v32  ;;  %v878_v32 = vld [vmem:[%s5135_s11] sm:$0xff] }
 0x266   :  { %v4237_v13 = vpack.c.bf16 %v765_v12, %v763_v20  ;;  %5251 = vst [vmem:[#allocation50_spill] sm:$0xff] %v4243_v56  ;;  %v771_v3 = vld [vmem:[#allocation12 + $0xa8] sm:$0xff] }
 0x267   :  { %5242 = vst [vmem:[#allocation42_spill] sm:$0xff] %v4214_v26  ;;  %vm619_vm6 = vcmp.gt.f32.partialorder %v4214_v26, %v4204_v41  ;;  %5248 = vst [vmem:[#allocation47_spill] sm:$0xff] %v4234_v31  ;;  %v4249_v12 = vpack.c.bf16 %v773_v19, %v771_v3  ;;  %v779_v3 = vld [vmem:[#allocation12 + $0xe8] sm:$0xff]  ;;  %v781_v19 = vld [vmem:[#allocation12 + $0xf8] sm:$0xff] }
 0x268   :  { %2620 = vmatmul.mubr.msk.f32.vlgmr.msra.gmra.mrb[2].mxu1 %vm619_vm6, %v5245_v1  ;;  %5249 = vst [vmem:[#allocation48_spill] sm:$0xff] %v4237_v13  ;;  %5255 = vst [vmem:[#allocation54_spill] sm:$0xff] %v4256_v50  ;;  %v879_v43 = vld [vmem:[%s5135_s11 + $0x8] sm:$0xff] }
 0x269   :  { %3104 = vmatpush1.bf16.msra.mxu1 %v4216_v54  ;;  %858 = vmatprep.mubr.f32.mxu1 %v5157_v44  ;;  %v766_v44 = vld [vmem:[#allocation12 + $0x80] sm:$0xff]  ;;  %5253 = vst [vmem:[#allocation52_spill] sm:$0xff] %v4249_v12 }
 0x26a   :  { %3106 = vmatprep.subr.bf16.mxu1 %v4218_v42 }
 0x26d   :  { %3108 = vmatpush1.bf16.msra.mxu1 %v4227_v29  ;;  %v768_v29 = vld [vmem:[#allocation12 + $0x90] sm:$0xff] }
 0x26e   :  { %3110 = vmatprep.subr.bf16.mxu1 %v4231_v60  ;;  %v4246_v20 = vpack.c.bf16 %v768_v29, %v766_v44  ;;  %v770_v60 = vld [vmem:[#allocation12 + $0xa0] sm:$0xff]  ;;  %v776_v29 = vld [vmem:[#allocation12 + $0xd0] sm:$0xff] }
 0x26f   :  { %v774_v44 = vld [vmem:[#allocation12 + $0xc0] sm:$0xff] }
 0x270   :  { %5252 = vst [vmem:[#allocation51_spill] sm:$0xff] %v4246_v20 }
 0x271   :  { %3112 = vmatpush1.bf16.msra.mxu1 %v4234_v31  ;;  %v772_v31 = vld [vmem:[#allocation12 + $0xb0] sm:$0xff] }
 0x272   :  { %3114 = vmatprep.subr.bf16.mxu1 %v4237_v13  ;;  %v4252_v53 = vpack.c.bf16 %v772_v31, %v770_v60  ;;  %v4262_v60 = vpack.c.bf16 %v781_v19, %v779_v3  ;;  %v778_v31 = vld [vmem:[#allocation12 + $0xe0] sm:$0xff] }
 0x273   :  { %v882_v19 = vld [vmem:[%s5135_s11 + $0x20] sm:$0xff] }
 0x274   :  { %5254 = vst [vmem:[#allocation53_spill] sm:$0xff] %v4252_v53  ;;  %5257 = vst [vmem:[#allocation56_spill] sm:$0xff] %v4262_v60 }
 0x275   :  { %3116 = vmatpush1.bf16.msra.mxu1 %v4240_v48  ;;  %v4258_v48 = vpack.c.bf16 %v776_v29, %v774_v44  ;;  %v880_v44 = vld [vmem:[%s5135_s11 + $0x10] sm:$0xff]  ;;  %v4279_v29 = vpack.c.bf16 %v879_v43, %v878_v32 }
 0x276   :  { %3118 = vmatprep.subr.bf16.mxu1 %v4243_v56  ;;  %v884_v43 = vld [vmem:[%s5135_s11 + $0x30] sm:$0xff] }
 0x277   :  { %5256 = vst [vmem:[#allocation55_spill] sm:$0xff] %v4258_v48 }
 0x279   :  { %3120 = vmatpush1.bf16.msra.mxu1 %v4246_v20 }
 0x27a   :  { %3122 = vmatprep.subr.bf16.mxu1 %v4249_v12  ;;  %v780_v12 = vld [vmem:[#allocation12 + $0xf0] sm:$0xff] }
 0x27b   :  { %v4264_v20 = vpack.c.bf16 %v780_v12, %v778_v31  ;;  %v5170_v12 = vmov 0.0|0.0   ;;  %v883_v31 = vld [vmem:[%s5135_s11 + $0x28] sm:$0xff] }
 0x27c   :  { %3133 = vmatprep.subr.bf16.mxu0 %v5170_v12  ;;  %v4295_v32 = vpack.c.bf16 %v883_v31, %v882_v19  ;;  %v886_v19 = vld [vmem:[%s5135_s11 + $0x40] sm:$0xff]  ;;  %v887_v31 = vld [vmem:[%s5135_s11 + $0x48] sm:$0xff] }
 0x27d   :  { %3124 = vmatpush1.bf16.msra.mxu1 %v4252_v53  ;;  %5258 = vst [vmem:[#allocation57_spill] sm:$0xff] %v4264_v20  ;;  %3135 = vmatpush3.bf16.msra.mxu0 %v4279_v29 }
 0x27e   :  { %3126 = vmatprep.subr.bf16.mxu1 %v4256_v50  ;;  %3136 = vmatprep.subr.bf16.mxu0 %v5170_v12 }
 0x281   :  { %3128 = vmatpush1.bf16.msra.mxu1 %v4258_v48 }
 0x282   :  { %3130 = vmatprep.subr.bf16.mxu1 %v4262_v60 }
 0x285   :  { %3132 = vmatpush1.bf16.msra.mxu1 %v4264_v20  ;;  %v4315_v20 = vpack.c.bf16 %v887_v31, %v886_v19  ;;  %v4328_v19 = vstv %s2603_s3  ;;  %s2605_s3 = sld [smem:[#allocation2 + $0x4]] }
 0x286   :  { %3158 = vmatprep.subr.bf16.mxu1 %v3999_v4  ;;  %v881_v4 = vld [vmem:[%s5135_s11 + $0x18] sm:$0xff]  ;;  %v743_v42 = vmul.f32 0.0, %v4328_v19 }
 0x287   :  { %v4285_v3 = vpack.c.bf16 %v881_v4, %v880_v44  ;;  %v885_v44 = vld [vmem:[%s5135_s11 + $0x38] sm:$0xff] }
 0x288   :  { %v4305_v4 = vpack.c.bf16 %v885_v44, %v884_v43  ;;  %v654_v43 = vld [vmem:[%s5132_s8] sm:$0x3]  ;;  %v4323_v44 = vstv %s2607_s20  ;;  %s2609_s20 = sld [smem:[#allocation6 + $0x4]] }
 0x289   :  { %3138 = vmatpush3.bf16.msra.mxu0 %v4285_v3  ;;  %v659_v60 = vrot.slane %v654_v43, %v4131_v59  ;;  %v663_v48 = vrot.slane %v654_v43, %v4136_v2  ;;  %vm2621_vm7 = vcmp.lt.f32.partialorder %v4323_v44, 0.0  ;;  %v5277_v43 = vld [vmem:[#allocation45_spill] sm:$0xff] }
 0x28a   :  { %3139 = vmatprep.subr.bf16.mxu0 %v5170_v12 }
 0x28d   :  { %3141 = vmatpush3.bf16.msra.mxu0 %v4295_v32 }
 0x28e   :  { %3142 = vmatprep.subr.bf16.mxu0 %v5170_v12 }
 0x291   :  { %3144 = vmatpush3.bf16.msra.mxu0 %v4305_v4 }
 0x292   :  { %3145 = vmatprep.subr.bf16.mxu0 %v5170_v12 }
 0x295   :  { %3147 = vmatpush3.bf16.msra.mxu0 %v4315_v20 }
 0x296   :  { %3148 = vmatprep.subr.bf16.mxu0 %v5170_v12  ;;  %v5259_v12 = vmov 0.0  }
 0x297   :  { %v2622_v56 = vsel %vm2621_vm7, 1.0, %v5259_v12  ;;  %2769 = vmatprep.mubr.msk.f32.mxu0 %vm3836_vm9, %v5259_v12 }
 0x298   :  { %v745_v37 = vmul.f32 %v2622_v56, %v4323_v44  ;;  %v2619_v56 = vsel %vm619_vm6, 1.0, %v5259_v12 }
 0x33b   :  { %v732_v31 = vpop.f32.mrb[2].mxu1 }
 0x33c   :  { %v733_v50 = vadd.f32 %v732_v31, %v659_v60  ;;  %v734_v53 = vpop.f32.mrb[3].mxu1  ;;  %v5278_v31 = vld [vmem:[#allocation46_spill] sm:$0xff] }
 0x33d   :  { %v735_v13 = vadd.f32 %v734_v53, %v663_v48  ;;  %v5273_v48 = vld [vmem:[#allocation40_spill] sm:$0xff]  ;;  %v5274_v53 = vld [vmem:[#allocation41_spill] sm:$0xff] }
 0x33e   :  { %v1151_v60 = vmul.f32 %v2619_v56, %v5273_v48  ;;  %v1527_v56 = vld [vmem:[#allocation9 + $0x28] sm:$0xff] }
 0x33f   :  { %v737_v54 = vmax.f32 %v733_v50, %v735_v13  ;;  %v5272_v13 = vld [vmem:[#allocation42_spill] sm:$0xff] }
 0x340   :  { %v1149_v50 = vmul.f32 %v5272_v13, %v5274_v53 }
 0x341   :  { %v744_v41 = vadd.f32 %v743_v42, %v737_v54  ;;  %v1074_v42 = vrot.slane %v1065_v36, %v4136_v2 }
 0x343   :  { %v4333_v26 = vsub.f32 %v744_v41, %v745_v37 }
 0x345   :  { %vm747_vm8 = vcmp.gt.f32.partialorder %v4333_v26, %v4323_v44 }
 0x346   :  { %2624 = vmatmul.mubr.msk.f32.vlgmr.msra.gmra.mrb[4].mxu1 %vm747_vm8, %v5245_v1 }
 0x347   :  { %3160 = vmatpush1.bf16.msra.mxu1 %v4001_v9  ;;  %2635 = vmatprep.mubr.msk.f32.mxu1 %vm996_vm4, %v5245_v1  ;;  %v5260_v9 = vmov 0.0|0.0  }
 0x348   :  { %3162 = vmatprep.subr.bf16.mxu1 %v4004_v10  ;;  %v888_v10 = vld [vmem:[%s5135_s11 + $0x50] sm:$0xff] }
 0x34b   :  { %3164 = vmatpush1.bf16.msra.mxu1 %v4009_v15  ;;  %v889_v15 = vld [vmem:[%s5135_s11 + $0x58] sm:$0xff] }
 0x34c   :  { %3166 = vmatprep.subr.bf16.mxu1 %v4012_v17  ;;  %v3149_v17 = vpack.c.bf16 %v889_v15, %v888_v10  ;;  %v5279_v10 = vld [vmem:[#allocation47_spill] sm:$0xff]  ;;  %v5280_v15 = vld [vmem:[#allocation48_spill] sm:$0xff] }
 0x34e   :  { %3150 = vmatpush3.bf16.msra.mxu0 %v3149_v17 }
 0x34f   :  { %3168 = vmatpush1.bf16.msra.mxu1 %v4015_v22  ;;  %3151 = vmatprep.subr.bf16.mxu0 %v5260_v9  ;;  %v890_v22 = vld [vmem:[%s5135_s11 + $0x60] sm:$0xff] }
 0x350   :  { %3170 = vmatprep.subr.bf16.mxu1 %v4018_v23  ;;  %v891_v23 = vld [vmem:[%s5135_s11 + $0x68] sm:$0xff] }
 0x353   :  { %3172 = vmatpush1.bf16.msra.mxu1 %v4021_v27  ;;  %v3152_v27 = vpack.c.bf16 %v891_v23, %v890_v22  ;;  %v5282_v22 = vld [vmem:[#allocation50_spill] sm:$0xff]  ;;  %v5283_v23 = vld [vmem:[#allocation51_spill] sm:$0xff] }
 0x354   :  { %3174 = vmatprep.subr.bf16.mxu1 %v4024_v28  ;;  %v892_v28 = vld [vmem:[%s5135_s11 + $0x70] sm:$0xff] }
 0x355   :  { %3153 = vmatpush3.bf16.msra.mxu0 %v3152_v27 }
 0x356   :  { %3154 = vmatprep.subr.bf16.mxu0 %v5260_v9 }
 0x357   :  { %3176 = vmatpush1.bf16.msra.mxu1 %v4027_v33  ;;  %v893_v33 = vld [vmem:[%s5135_s11 + $0x78] sm:$0xff] }
 0x358   :  { %3178 = vmatprep.subr.bf16.mxu1 %v4030_v34  ;;  %v3155_v34 = vpack.c.bf16 %v893_v33, %v892_v28  ;;  %v5285_v28 = vld [vmem:[#allocation53_spill] sm:$0xff]  ;;  %v5286_v33 = vld [vmem:[#allocation54_spill] sm:$0xff] }
 0x35a   :  { %3156 = vmatpush3.bf16.msra.mxu0 %v3155_v34 }
 0x35b   :  { %3180 = vmatpush1.bf16.msra.mxu1 %v4033_v39  ;;  %3222 = vmatprep.subr.bf16.mxu0 %v4098_v55  ;;  %v782_v39 = vld [vmem:[%s5134_s10] sm:$0x3]  ;;  %v5267_v55 = vld [vmem:[#allocation35_spill] sm:$0xff] }
 0x35c   :  { %3182 = vmatprep.subr.bf16.mxu1 %v4036_v40  ;;  %v4421_v40 = vstv %s2608_s2 }
 0x35d   :  { %vm2625_vm10 = vcmp.lt.f32.partialorder %v4421_v40, 0.0 }
 0x35f   :  { %3184 = vmatpush1.bf16.msra.mxu1 %v4039_v45  ;;  %v787_v45 = vrot.slane %v782_v39, %v4131_v59 }
 0x360   :  { %3186 = vmatprep.subr.bf16.mxu1 %v4042_v46  ;;  %v791_v46 = vrot.slane %v782_v39, %v4136_v2  ;;  %v5288_v39 = vld [vmem:[#allocation56_spill] sm:$0xff] }
 0x363   :  { %3188 = vmatpush1.bf16.msra.mxu1 %v4045_v51  ;;  %v4426_v51 = vstv %s2604_s16 }
 0x364   :  { %3190 = vmatprep.subr.bf16.mxu1 %v4048_v52 }
 0x367   :  { %3192 = vmatpush1.bf16.msra.mxu1 %v4051_v57 }
 0x368   :  { %3194 = vmatprep.subr.bf16.mxu1 %v4054_v58 }
 0x36b   :  { %3196 = vmatpush1.bf16.msra.mxu1 %v4057_v63  ;;  %v2626_v63 = vsel %vm2625_vm10, 1.0, %v5259_v12 }
 0x36c   :  { %3198 = vmatprep.subr.bf16.mxu1 %v4060_v0 }
 0x36f   :  { %3200 = vmatpush1.bf16.msra.mxu1 %v4063_v6  ;;  %v871_v6 = vmul.f32 0.0, %v4426_v51 }
 0x370   :  { %3202 = vmatprep.subr.bf16.mxu1 %v4066_v7 }
 0x373   :  { %3204 = vmatpush1.bf16.msra.mxu1 %v4069_v14  ;;  %v873_v14 = vmul.f32 %v2626_v63, %v4421_v40  ;;  %v4498_v63 = vstv %s2605_s3 }
 0x374   :  { %3206 = vmatprep.subr.bf16.mxu1 %v4072_v18 }
 0x377   :  { %3208 = vmatpush1.bf16.msra.mxu1 %v4075_v21 }
 0x378   :  { %3210 = vmatprep.subr.bf16.mxu1 %v4079_v25  ;;  %v5261_v25 = vld [vmem:[#allocation25_spill] sm:$0xff] }
 0x37b   :  { %3212 = vmatpush1.bf16.msra.mxu1 %v4081_v30  ;;  %v5262_v30 = vld [vmem:[#allocation26_spill] sm:$0xff] }
 0x37c   :  { %3214 = vmatprep.subr.bf16.mxu1 %v4085_v35  ;;  %v5263_v35 = vld [vmem:[#allocation27_spill] sm:$0xff]  ;;  %5291 = vst [vmem:[#allocation26_spill] sm:$0xff] %v4498_v63 }
 0x37f   :  { %3216 = vmatpush1.bf16.msra.mxu1 %v4087_v38  ;;  %v5264_v38 = vld [vmem:[#allocation28_spill] sm:$0xff] }
 0x380   :  { %3218 = vmatprep.subr.bf16.mxu1 %v4092_v47  ;;  %v5265_v47 = vld [vmem:[#allocation29_spill] sm:$0xff] }
 0x383   :  { %3220 = vmatpush1.bf16.msra.mxu1 %v4094_v49  ;;  %v5266_v49 = vld [vmem:[#allocation30_spill] sm:$0xff] }
 0x384   :  { %3285 = vmatprep.subr.bf16.mxu1 %v5260_v9 }
 0x386   :  { %2636 = vmatmul.mubr.msk.f32.vlgmr.msra.gmra.mrb[6].mxu1 %vm995_vm3, %v5245_v1 }
 0x387   :  { %3287 = vmatpush3.bf16.msra.mxu1 %v4279_v29  ;;  %2804 = vmatprep.mubr.msk.f32.mxu1 %vm3836_vm9, %v5259_v12 }
 0x388   :  { %3288 = vmatprep.subr.bf16.mxu1 %v5260_v9 }
 0x38b   :  { %3290 = vmatpush3.bf16.msra.mxu1 %v4285_v3 }
 0x38c   :  { %3291 = vmatprep.subr.bf16.mxu1 %v5260_v9 }
 0x38f   :  { %3293 = vmatpush3.bf16.msra.mxu1 %v4295_v32  ;;  %v5275_v32 = vld [vmem:[#allocation43_spill] sm:$0xff] }
 0x390   :  { %3294 = vmatprep.subr.bf16.mxu1 %v5260_v9 }
 0x393   :  { %3296 = vmatpush3.bf16.msra.mxu1 %v4305_v4  ;;  %v5276_v4 = vld [vmem:[#allocation44_spill] sm:$0xff] }
 0x394   :  { %3297 = vmatprep.subr.bf16.mxu1 %v5260_v9 }
 0x397   :  { %3299 = vmatpush3.bf16.msra.mxu1 %v4315_v20 }
 0x398   :  { %3300 = vmatprep.subr.bf16.mxu1 %v5260_v9 }
 0x39b   :  { %3302 = vmatpush3.bf16.msra.mxu1 %v3149_v17  ;;  %v5281_v17 = vld [vmem:[#allocation49_spill] sm:$0xff] }
 0x39c   :  { %3303 = vmatprep.subr.bf16.mxu1 %v5260_v9 }
 0x39f   :  { %3305 = vmatpush3.bf16.msra.mxu1 %v3152_v27  ;;  %v5284_v27 = vld [vmem:[#allocation52_spill] sm:$0xff] }
 0x3a0   :  { %3306 = vmatprep.subr.bf16.mxu1 %v5260_v9 }
 0x3a3   :  { %3308 = vmatpush3.bf16.msra.mxu1 %v3155_v34  ;;  %v5287_v34 = vld [vmem:[#allocation55_spill] sm:$0xff] }
 0x419   :  { %v860_v52 = vpop.f32.mrb[4].mxu1 }
 0x41a   :  { %v861_v57 = vadd.f32 %v860_v52, %v787_v45  ;;  %v862_v58 = vpop.f32.mrb[5].mxu1  ;;  %v5289_v45 = vld [vmem:[#allocation57_spill] sm:$0xff] }
 0x41b   :  { %v863_v0 = vadd.f32 %v862_v58, %v791_v46  ;;  %v1523_v46 = vld [vmem:[#allocation9 + $0x8] sm:$0xff]  ;;  %v1525_v52 = vld [vmem:[#allocation9 + $0x18] sm:$0xff]  ;;  %v4495_v58 = vstv %s2609_s20 }
 0x41c   :  { %5290 = vst [vmem:[#allocation25_spill] sm:$0xff] %v4495_v58  ;;  %vm2630_vm13 = vcmp.lt.f32.partialorder %v4495_v58, 0.0 }
 0x41d   :  { %v865_v7 = vmax.f32 %v861_v57, %v863_v0  ;;  %v4492_v57 = vpack.c.bf16 %v1525_v52, %v1523_v46  ;;  %v4503_v0 = vld [vmem:[%s5136_s12] ss:$0 sm:$0xff]  ;;  %v1541_v46 = vld [vmem:[#allocation9 + $0x98] sm:$0xff] }
 0x41f   :  { %v872_v18 = vadd.f32 %v871_v6, %v865_v7  ;;  %v2631_v6 = vsel %vm2630_vm13, 1.0, %v5259_v12  ;;  %v976_v7 = vmul.f32 0.0, %v4498_v63 }
 0x421   :  { %v4431_v21 = vsub.f32 %v872_v18, %v873_v14 }
 0x423   :  { %vm875_vm11 = vcmp.gt.f32.partialorder %v4431_v21, %v4421_v40 }
 0x424   :  { %2770 = vmatmul.mubr.msk.f32.vlgmr.msra.gmra.mrb[4].mxu0 %vm875_vm11, %v5245_v1 }
 0x425   :  { %3224 = vmatpush1.bf16.msra.mxu0 %v4100_v61  ;;  %1264 = vmatprep.mubr.f32.mxu0 %v5259_v12  ;;  %v5268_v61 = vld [vmem:[#allocation36_spill] sm:$0xff] }
 0x426   :  { %3226 = vmatprep.subr.bf16.mxu0 %v4102_v62  ;;  %v5269_v62 = vld [vmem:[#allocation37_spill] sm:$0xff] }
 0x429   :  { %3228 = vmatpush1.bf16.msra.mxu0 %v4106_v8  ;;  %v5270_v8 = vld [vmem:[#allocation38_spill] sm:$0xff] }
 0x42a   :  { %3230 = vmatprep.subr.bf16.mxu0 %v4109_v11  ;;  %v5271_v11 = vld [vmem:[#allocation39_spill] sm:$0xff] }
 0x42d   :  { %3232 = vmatpush1.bf16.msra.mxu0 %v5261_v25  ;;  %v978_v25 = vmul.f32 %v2631_v6, %v4495_v58 }
 0x42e   :  { %3234 = vmatprep.subr.bf16.mxu0 %v5262_v30 }
 0x431   :  { %3236 = vmatpush1.bf16.msra.mxu0 %v5263_v35 }
 0x432   :  { %3238 = vmatprep.subr.bf16.mxu0 %v5264_v38 }
 0x435   :  { %3240 = vmatpush1.bf16.msra.mxu0 %v5265_v47 }
 0x436   :  { %3242 = vmatprep.subr.bf16.mxu0 %v5266_v49  ;;  %v1188_v49 = vld [vmem:[%s5132_s8] sm:$0x3] }
 0x439   :  { %3244 = vmatpush1.bf16.msra.mxu0 %v4183_v24 }
 0x43a   :  { %3246 = vmatprep.subr.bf16.mxu0 %v5267_v55  ;;  %v1193_v55 = vrot.slane %v1188_v49, %v4131_v59 }
 0x43d   :  { %3248 = vmatpush1.bf16.msra.mxu0 %v5268_v61  ;;  %v1197_v61 = vrot.slane %v1188_v49, %v4136_v2  ;;  %v1542_v49 = vld [vmem:[#allocation9 + $0xa0] sm:$0xff] }
 0x43e   :  { %3250 = vmatprep.subr.bf16.mxu0 %v5269_v62 }
 0x441   :  { %3252 = vmatpush1.bf16.msra.mxu0 %v5270_v8 }
 0x442   :  { %3254 = vmatprep.subr.bf16.mxu0 %v5271_v11 }
 0x459   :  { %v1143_v54 = vpop.f32.mrb[6].mxu1 }
 0x45a   :  { %v1144_v24 = vadd.f32 %v1143_v54, %v1070_v16  ;;  %v1145_v41 = vpop.f32.mrb[7].mxu1  ;;  %v2623_v16 = vsel %vm747_vm8, 1.0, %v5259_v12  ;;  %v1272_v54 = vmul.f32 %v4333_v26, %v4328_v19  ;;  %v1533_v26 = vld [vmem:[#allocation9 + $0x58] sm:$0xff] }
 0x45b   :  { %v1146_v37 = vadd.f32 %v1145_v41, %v1074_v42  ;;  %v1524_v41 = vld [vmem:[#allocation9 + $0x10] sm:$0xff] }
 0x45d   :  { %v1148_v20 = vmax.f32 %v1144_v24, %v1146_v37  ;;  %v1522_v24 = vld [vmem:[#allocation9] sm:$0xff]  ;;  %v1274_v37 = vmul.f32 %v2623_v16, %v4323_v44  ;;  %v1548_v16 = vld [vmem:[#allocation9 + $0xd0] sm:$0xff] }
 0x45f   :  { %v1150_v29 = vadd.f32 %v1149_v50, %v1148_v20  ;;  %v1529_v20 = vld [vmem:[#allocation9 + $0x38] sm:$0xff] }
 0x461   :  { %v4468_v3 = vsub.f32 %v1150_v29, %v1151_v60  ;;  %v4535_v60 = vpack.c.bf16 %v1524_v41, %v1522_v24  ;;  %v4537_v29 = vpack.c.bf16 %v1529_v20, %v1527_v56  ;;  %v1555_v56 = vld [vmem:[#allocation9 + $0x108] sm:$0xff]  ;;  %v1557_v20 = vld [vmem:[#allocation9 + $0x118] sm:$0xff] }
 0x463   :  { %vm1153_vm12 = vcmp.gt.f32.partialorder %v4468_v3, %v5273_v48 }
 0x464   :  { %2638 = vmatmul.mubr.msk.f32.vlgmr.msra.gmra.mrb[6].mxu0 %vm1153_vm12, %v5245_v1 }
 0x465   :  { %3256 = vmatpush1.bf16.msra.mxu0 %v5275_v32  ;;  %1387 = vmatprep.mubr.f32.mxu0 %v5259_v12  ;;  %v1526_v32 = vld [vmem:[#allocation9 + $0x20] sm:$0xff] }
 0x466   :  { %3258 = vmatprep.subr.bf16.mxu0 %v5276_v4  ;;  %v1528_v4 = vld [vmem:[#allocation9 + $0x30] sm:$0xff] }
 0x469   :  { %3260 = vmatpush1.bf16.msra.mxu0 %v5277_v43  ;;  %v1531_v43 = vld [vmem:[#allocation9 + $0x48] sm:$0xff] }
 0x46a   :  { %3262 = vmatprep.subr.bf16.mxu0 %v5278_v31  ;;  %v5292_v31 = vld [vmem:[#allocation32_spill] sm:$0xff] }
 0x46b   :  { %vm1517_vm1 = vcmp.gt.f32.partialorder %v5292_v31, %v4138_v5  ;;  %v5329_v31 = vld [vmem:[#allocation34_spill] sm:$0xff] }
 0x46d   :  { %3264 = vmatpush1.bf16.msra.mxu0 %v5279_v10  ;;  %v4552_v10 = vpack.c.bf16 %v1528_v4, %v1526_v32  ;;  %v4591_v4 = vpack.c.bf16 %v1557_v20, %v1555_v56  ;;  %v1570_v56 = vld [vmem:[#allocation9 + $0x180] sm:$0xff]  ;;  %v1572_v20 = vld [vmem:[#allocation9 + $0x190] sm:$0xff] }
 0x46e   :  { %3266 = vmatprep.subr.bf16.mxu0 %v5280_v15  ;;  %v4555_v15 = vpack.c.bf16 %v1533_v26, %v1531_v43  ;;  %v1554_v43 = vld [vmem:[#allocation9 + $0x100] sm:$0xff]  ;;  %v1556_v26 = vld [vmem:[#allocation9 + $0x110] sm:$0xff] }
 0x471   :  { %3268 = vmatpush1.bf16.msra.mxu0 %v5281_v17  ;;  %v1530_v17 = vld [vmem:[#allocation9 + $0x40] sm:$0xff] }
 0x472   :  { %3270 = vmatprep.subr.bf16.mxu0 %v5282_v22  ;;  %v1532_v22 = vld [vmem:[#allocation9 + $0x50] sm:$0xff] }
 0x475   :  { %3272 = vmatpush1.bf16.msra.mxu0 %v5283_v23  ;;  %v1535_v23 = vld [vmem:[#allocation9 + $0x68] sm:$0xff] }
 0x476   :  { %3274 = vmatprep.subr.bf16.mxu0 %v5284_v27  ;;  %v1537_v27 = vld [vmem:[#allocation9 + $0x78] sm:$0xff] }
 0x479   :  { %3276 = vmatpush1.bf16.msra.mxu0 %v5285_v28  ;;  %v4558_v28 = vpack.c.bf16 %v1532_v22, %v1530_v17  ;;  %v1559_v17 = vld [vmem:[#allocation9 + $0x128] sm:$0xff]  ;;  %v1561_v22 = vld [vmem:[#allocation9 + $0x138] sm:$0xff] }
 0x47a   :  { %3278 = vmatprep.subr.bf16.mxu0 %v5286_v33  ;;  %v4561_v33 = vpack.c.bf16 %v1537_v27, %v1535_v23  ;;  %v4594_v23 = vpack.c.bf16 %v1556_v26, %v1554_v43  ;;  %v4597_v27 = vpack.c.bf16 %v1561_v22, %v1559_v17  ;;  %v1575_v43 = vld [vmem:[#allocation9 + $0x1a8] sm:$0xff]  ;;  %v1577_v26 = vld [vmem:[#allocation9 + $0x1b8] sm:$0xff]  ;;  %v4618_v17 = vpack.c.bf16 %v1572_v20, %v1570_v56  ;;  %v1582_v56 = vld [vmem:[#allocation9 + $0x1e0] sm:$0xff] }
 0x47b   :  { %v4621_v22 = vpack.c.bf16 %v1577_v26, %v1575_v43  ;;  %v1584_v20 = vld [vmem:[#allocation9 + $0x1f0] sm:$0xff]  ;;  %v5298_v26 = vld [vmem:[#allocation31_spill] sm:$0xff] }
 0x47c   :  { %v4636_v43 = vpack.c.bf16 %v1584_v20, %v1582_v56  ;;  %vm1516_vm2 = vcmp.gt.f32.partialorder %v5298_v26, %v4138_v5 }
 0x47d   :  { %3280 = vmatpush1.bf16.msra.mxu0 %v5287_v34  ;;  %v1534_v34 = vld [vmem:[#allocation9 + $0x60] sm:$0xff] }
 0x47e   :  { %3282 = vmatprep.subr.bf16.mxu0 %v5288_v39  ;;  %v1536_v39 = vld [vmem:[#allocation9 + $0x70] sm:$0xff]  ;;  %5297 = vst [vmem:[#allocation35_spill] sm:$0xff] %v4636_v43 }
 0x47f   :  { %v4564_v52 = vpack.c.bf16 %v1536_v39, %v1534_v34  ;;  %v1558_v34 = vld [vmem:[#allocation9 + $0x120] sm:$0xff]  ;;  %v1560_v39 = vld [vmem:[#allocation9 + $0x130] sm:$0xff] }
 0x481   :  { %3284 = vmatpush1.bf16.msra.mxu0 %v5289_v45  ;;  %v1539_v45 = vld [vmem:[#allocation9 + $0x88] sm:$0xff] }
 0x482   :  { %3310 = vmatprep.subr.bf16.mxu0 %v4492_v57  ;;  %v4567_v6 = vpack.c.bf16 %v1541_v46, %v1539_v45  ;;  %v1563_v45 = vld [vmem:[#allocation9 + $0x148] sm:$0xff]  ;;  %v1565_v46 = vld [vmem:[#allocation9 + $0x158] sm:$0xff] }
 0x4f7   :  { %v967_v14 = vpop.f32.mrb[4].mxu0 }
 0x4f8   :  { %v968_v18 = vadd.f32 %v4503_v0, %v967_v14  ;;  %v2771_v30 = vpop.f32.mrb[5].mxu0  ;;  %v1540_v14 = vld [vmem:[#allocation9 + $0x90] sm:$0xff] }
 0x4fa   :  { %v977_v35 = vadd.f32 %v976_v7, %v968_v18  ;;  %984 = vst.msk [vmem:[#allocation14] sm:$0x3] %vm983_vm14, %v968_v18  ;;  %v1538_v7 = vld [vmem:[#allocation9 + $0x80] sm:$0xff]  ;;  %v1543_v18 = vld [vmem:[#allocation9 + $0xa8] sm:$0xff] }
 0x4fb   :  { %v4570_v30 = vpack.c.bf16 %v1540_v14, %v1538_v7  ;;  %v4600_v7 = vpack.c.bf16 %v1560_v39, %v1558_v34  ;;  %v4603_v14 = vpack.c.bf16 %v1565_v46, %v1563_v45  ;;  %v1574_v34 = vld [vmem:[#allocation9 + $0x1a0] sm:$0xff]  ;;  %v1576_v39 = vld [vmem:[#allocation9 + $0x1b0] sm:$0xff]  ;;  %v1579_v45 = vld [vmem:[#allocation9 + $0x1c8] sm:$0xff] }
 0x4fc   :  { %v4510_v38 = vsub.f32 %v977_v35, %v978_v25  ;;  %v1545_v25 = vld [vmem:[#allocation9 + $0xb8] sm:$0xff] }
 0x4fd   :  { %v4573_v35 = vpack.c.bf16 %v1545_v25, %v1543_v18  ;;  %v1562_v18 = vld [vmem:[#allocation9 + $0x140] sm:$0xff]  ;;  %v1564_v25 = vld [vmem:[#allocation9 + $0x150] sm:$0xff]  ;;  %v1581_v46 = vld [vmem:[#allocation9 + $0x1d8] sm:$0xff] }
 0x4fe   :  { %986 = vst.msk [vmem:[#allocation17] sm:$0x3] %vm983_vm14, %v4510_v38  ;;  %vm980_vm15 = vcmp.gt.f32.partialorder %v4510_v38, %v4495_v58 }
 0x4ff   :  { %v4517_v47 = vsel %vm980_vm15, 1.0, %v5259_v12 }
 0x500   :  { %985 = vst.msk [vmem:[#allocation15] sm:$0x3] %vm983_vm14, %v4517_v47 }
 0x537   :  { %v1266_v62 = vpop.f32.mrb[6].mxu0 }
 0x538   :  { %v1267_v8 = vadd.f32 %v1266_v62, %v1193_v55  ;;  %v1268_v11 = vpop.f32.mrb[7].mxu0  ;;  %v1544_v55 = vld [vmem:[#allocation9 + $0xb0] sm:$0xff]  ;;  %v1549_v62 = vld [vmem:[#allocation9 + $0xd8] sm:$0xff] }
 0x539   :  { %v1269_v36 = vadd.f32 %v1268_v11, %v1197_v61  ;;  %v1547_v61 = vld [vmem:[#allocation9 + $0xc8] sm:$0xff] }
 0x53a   :  { %v4579_v11 = vpack.c.bf16 %v1549_v62, %v1547_v61  ;;  %v4606_v61 = vpack.c.bf16 %v1564_v25, %v1562_v18  ;;  %v4624_v18 = vpack.c.bf16 %v1576_v39, %v1574_v34  ;;  %v4627_v25 = vpack.c.bf16 %v1581_v46, %v1579_v45  ;;  %v1678_v34 = vld [vmem:[#allocation11 + $0x8] sm:$0xff]  ;;  %v1680_v39 = vld [vmem:[#allocation11 + $0x18] sm:$0xff]  ;;  %v1311_v46 = vld [vmem:[%s5134_s10] sm:$0x3] }
 0x53b   :  { %v1271_v42 = vmax.f32 %v1267_v8, %v1269_v36  ;;  %v4576_v8 = vpack.c.bf16 %v1544_v55, %v1542_v49  ;;  %v1546_v36 = vld [vmem:[#allocation9 + $0xc0] sm:$0xff]  ;;  %v1567_v49 = vld [vmem:[#allocation9 + $0x168] sm:$0xff]  ;;  %v1569_v55 = vld [vmem:[#allocation9 + $0x178] sm:$0xff]  ;;  %v4649_v45 = vpack.c.bf16 %v1680_v39, %v1678_v34  ;;  %v2627_v34 = vsel %vm875_vm11, 1.0, %v5259_v12 }
 0x53c   :  { %v4582_v24 = vpack.c.bf16 %v1548_v16, %v1546_v36  ;;  %v4609_v62 = vpack.c.bf16 %v1569_v55, %v1567_v49  ;;  %v1566_v36 = vld [vmem:[#allocation9 + $0x160] sm:$0xff]  ;;  %v1568_v16 = vld [vmem:[#allocation9 + $0x170] sm:$0xff]  ;;  %5293 = vst [vmem:[#allocation27_spill] sm:$0xff] %v4624_v18  ;;  %5294 = vst [vmem:[#allocation28_spill] sm:$0xff] %v4627_v25 }
 0x53d   :  { %v1273_v13 = vadd.f32 %v1272_v54, %v1271_v42  ;;  %v1551_v42 = vld [vmem:[#allocation9 + $0xe8] sm:$0xff]  ;;  %v1553_v54 = vld [vmem:[#allocation9 + $0xf8] sm:$0xff]  ;;  %v1578_v49 = vld [vmem:[#allocation9 + $0x1c0] sm:$0xff]  ;;  %5299 = vst [vmem:[#allocation36_spill] sm:$0xff] %v4649_v45  ;;  %3374 = vmatprep.subr.bf16.mxu1 %v4649_v45  ;;  %v1395_v45 = vmul.f32 %v4431_v21, %v4426_v51 }
 0x53e   :  { %v4585_v41 = vpack.c.bf16 %v1553_v54, %v1551_v42  ;;  %v1571_v42 = vld [vmem:[#allocation9 + $0x188] sm:$0xff]  ;;  %v1573_v54 = vld [vmem:[#allocation9 + $0x198] sm:$0xff]  ;;  %v1580_v55 = vld [vmem:[#allocation9 + $0x1d0] sm:$0xff] }
 0x53f   :  { %v4533_v50 = vsub.f32 %v1273_v13, %v1274_v37  ;;  %v1550_v37 = vld [vmem:[#allocation9 + $0xe0] sm:$0xff]  ;;  %v1552_v13 = vld [vmem:[#allocation9 + $0xf0] sm:$0xff]  ;;  %v1688_v21 = vld [vmem:[#allocation11 + $0x58] sm:$0xff] }
 0x540   :  { %v4588_v32 = vpack.c.bf16 %v1552_v13, %v1550_v37  ;;  %v4612_v37 = vpack.c.bf16 %v1568_v16, %v1566_v36  ;;  %v4615_v13 = vpack.c.bf16 %v1573_v54, %v1571_v42  ;;  %v1583_v36 = vld [vmem:[#allocation9 + $0x1e8] sm:$0xff]  ;;  %v1585_v16 = vld [vmem:[#allocation9 + $0x1f8] sm:$0xff]  ;;  %v4630_v42 = vpack.c.bf16 %v1580_v55, %v1578_v49 }
 0x541   :  { %vm1276_vm0 = vcmp.gt.f32.partialorder %v4533_v50, %v4323_v44  ;;  %v4633_v54 = vpack.c.bf16 %v1585_v16, %v1583_v36  ;;  %v1316_v49 = vrot.slane %v1311_v46, %v4131_v59  ;;  %v1320_v55 = vrot.slane %v1311_v46, %v4136_v2  ;;  %v1684_v46 = vld [vmem:[#allocation11 + $0x38] sm:$0xff] }
 0x542   :  { %2640 = vmatmul.mubr.msk.f32.vlgmr.msra.gmra.mrb[8].mxu0 %vm1276_vm0, %v5245_v1  ;;  %5295 = vst [vmem:[#allocation29_spill] sm:$0xff] %v4630_v42 }
 0x543   :  { %3312 = vmatpush1.bf16.msra.mxu0 %v4535_v60  ;;  %2647 = vmatprep.mubr.msk.f32.mxu0 %vm1517_vm1, %v5245_v1  ;;  %5296 = vst [vmem:[#allocation30_spill] sm:$0xff] %v4633_v54 }
 0x544   :  { %3314 = vmatprep.subr.bf16.mxu0 %v4537_v29 }
 0x547   :  { %3316 = vmatpush1.bf16.msra.mxu0 %v4552_v10 }
 0x548   :  { %3318 = vmatprep.subr.bf16.mxu0 %v4555_v15 }
 0x54b   :  { %3320 = vmatpush1.bf16.msra.mxu0 %v4558_v28 }
 0x54c   :  { %3322 = vmatprep.subr.bf16.mxu0 %v4561_v33 }
 0x54f   :  { %3324 = vmatpush1.bf16.msra.mxu0 %v4564_v52 }
 0x550   :  { %3326 = vmatprep.subr.bf16.mxu0 %v4567_v6 }
 0x553   :  { %3328 = vmatpush1.bf16.msra.mxu0 %v4570_v30 }
 0x554   :  { %3330 = vmatprep.subr.bf16.mxu0 %v4573_v35 }
 0x557   :  { %3332 = vmatpush1.bf16.msra.mxu0 %v4576_v8 }
 0x558   :  { %3334 = vmatprep.subr.bf16.mxu0 %v4579_v11 }
 0x55b   :  { %3336 = vmatpush1.bf16.msra.mxu0 %v4582_v24 }
 0x55c   :  { %3338 = vmatprep.subr.bf16.mxu0 %v4585_v41 }
 0x55f   :  { %3340 = vmatpush1.bf16.msra.mxu0 %v4588_v32 }
 0x560   :  { %3342 = vmatprep.subr.bf16.mxu0 %v4591_v4 }
 0x563   :  { %3344 = vmatpush1.bf16.msra.mxu0 %v4594_v23 }
 0x564   :  { %3346 = vmatprep.subr.bf16.mxu0 %v4597_v27 }
 0x567   :  { %3348 = vmatpush1.bf16.msra.mxu0 %v4600_v7 }
 0x568   :  { %3350 = vmatprep.subr.bf16.mxu0 %v4603_v14 }
 0x56b   :  { %3352 = vmatpush1.bf16.msra.mxu0 %v4606_v61 }
 0x56c   :  { %3354 = vmatprep.subr.bf16.mxu0 %v4609_v62 }
 0x56f   :  { %3356 = vmatpush1.bf16.msra.mxu0 %v4612_v37 }
 0x570   :  { %3358 = vmatprep.subr.bf16.mxu0 %v4615_v13 }
 0x573   :  { %3360 = vmatpush1.bf16.msra.mxu0 %v4618_v17 }
 0x574   :  { %3362 = vmatprep.subr.bf16.mxu0 %v4621_v22 }
 0x577   :  { %3364 = vmatpush1.bf16.msra.mxu0 %v4624_v18  ;;  %v1682_v18 = vld [vmem:[#allocation11 + $0x28] sm:$0xff] }
 0x578   :  { %3366 = vmatprep.subr.bf16.mxu0 %v4627_v25 }
 0x57b   :  { %3368 = vmatpush1.bf16.msra.mxu0 %v4630_v42  ;;  %v1397_v42 = vmul.f32 %v2627_v34, %v4421_v40 }
 0x57c   :  { %3370 = vmatprep.subr.bf16.mxu0 %v4633_v54  ;;  %v1679_v54 = vld [vmem:[#allocation11 + $0x10] sm:$0xff] }
 0x57f   :  { %3372 = vmatpush1.bf16.msra.mxu0 %v4636_v43  ;;  %v1677_v43 = vld [vmem:[#allocation11] sm:$0xff] }
 0x580   :  { %3437 = vmatprep.subr.bf16.mxu0 %v5260_v9 }
 0x582   :  { %2648 = vmatmul.mubr.msk.f32.vlgmr.msra.gmra.mrb[10].mxu0 %vm1516_vm2, %v5245_v1 }
 0x583   :  { %2839 = vmatprep.mubr.msk.f32.mxu0 %vm3836_vm9, %v5259_v12 }
 0x615   :  { %v1389_v36 = vpop.f32.mrb[8].mxu0 }
 0x616   :  { %v1390_v16 = vadd.f32 %v1389_v36, %v1316_v49  ;;  %v1391_v56 = vpop.f32.mrb[9].mxu0  ;;  %v4666_v49 = vpack.c.bf16 %v1679_v54, %v1677_v43  ;;  %v1681_v36 = vld [vmem:[#allocation11 + $0x20] sm:$0xff]  ;;  %v1687_v54 = vld [vmem:[#allocation11 + $0x50] sm:$0xff]  ;;  %v1690_v43 = vld [vmem:[#allocation11 + $0x68] sm:$0xff] }
 0x617   :  { %v1392_v20 = vadd.f32 %v1391_v56, %v1320_v55  ;;  %v4668_v55 = vpack.c.bf16 %v1684_v46, %v1682_v18  ;;  %v1683_v56 = vld [vmem:[#allocation11 + $0x30] sm:$0xff] }
 0x618   :  { %v1691_v46 = vld [vmem:[#allocation11 + $0x70] sm:$0xff] }
 0x619   :  { %v1394_v39 = vmax.f32 %v1390_v16, %v1392_v20  ;;  %5300 = vst [vmem:[#allocation37_spill] sm:$0xff] %v4668_v55  ;;  %v1686_v16 = vld [vmem:[#allocation11 + $0x48] sm:$0xff] }
 0x61a   :  { %v4681_v18 = vpack.c.bf16 %v1688_v21, %v1686_v16 }
 0x61b   :  { %v1396_v25 = vadd.f32 %v1395_v45, %v1394_v39  ;;  %v1692_v45 = vld [vmem:[#allocation11 + $0x78] sm:$0xff]  ;;  %v1689_v39 = vld [vmem:[#allocation11 + $0x60] sm:$0xff] }
 0x61c   :  { %5302 = vst [vmem:[#allocation39_spill] sm:$0xff] %v4681_v18  ;;  %v4687_v34 = vpack.c.bf16 %v1692_v45, %v1690_v43  ;;  %v4690_v16 = vpack.c.bf16 %v1691_v46, %v1689_v39  ;;  %v1702_v39 = vld [vmem:[#allocation11 + $0xc8] sm:$0xff]  ;;  %v1704_v46 = vld [vmem:[#allocation11 + $0xd8] sm:$0xff] }
 0x61d   :  { %v4664_v26 = vsub.f32 %v1396_v25, %v1397_v42  ;;  %v4677_v25 = vpack.c.bf16 %v1683_v56, %v1681_v36  ;;  %v1685_v42 = vld [vmem:[#allocation11 + $0x40] sm:$0xff]  ;;  %v1694_v36 = vld [vmem:[#allocation11 + $0x88] sm:$0xff]  ;;  %v1696_v56 = vld [vmem:[#allocation11 + $0x98] sm:$0xff] }
 0x61e   :  { %v4684_v20 = vpack.c.bf16 %v1687_v54, %v1685_v42  ;;  %5304 = vst [vmem:[#allocation43_spill] sm:$0xff] %v4687_v34  ;;  %5305 = vst [vmem:[#allocation44_spill] sm:$0xff] %v4690_v16  ;;  %v4693_v21 = vpack.c.bf16 %v1696_v56, %v1694_v36  ;;  %v1698_v42 = vld [vmem:[#allocation11 + $0xa8] sm:$0xff]  ;;  %v1700_v54 = vld [vmem:[#allocation11 + $0xb8] sm:$0xff]  ;;  %v4705_v56 = vpack.c.bf16 %v1704_v46, %v1702_v39 }
 0x61f   :  { %vm1399_vm3 = vcmp.gt.f32.partialorder %v4664_v26, %v4421_v40  ;;  %5301 = vst [vmem:[#allocation38_spill] sm:$0xff] %v4677_v25  ;;  %v4699_v45 = vpack.c.bf16 %v1700_v54, %v1698_v42 }
 0x620   :  { %2805 = vmatmul.mubr.msk.f32.vlgmr.msra.gmra.mrb[8].mxu1 %vm1399_vm3, %v5245_v1  ;;  %5303 = vst [vmem:[#allocation42_spill] sm:$0xff] %v4684_v20  ;;  %5306 = vst [vmem:[#allocation45_spill] sm:$0xff] %v4693_v21 }
 0x621   :  { %3376 = vmatpush1.bf16.msra.mxu1 %v4666_v49  ;;  %1785 = vmatprep.mubr.f32.mxu1 %v5259_v12  ;;  %5308 = vst [vmem:[#allocation47_spill] sm:$0xff] %v4705_v56 }
 0x622   :  { %3378 = vmatprep.subr.bf16.mxu1 %v4668_v55  ;;  %v1693_v55 = vld [vmem:[#allocation11 + $0x80] sm:$0xff] }
 0x625   :  { %3380 = vmatpush1.bf16.msra.mxu1 %v4677_v25  ;;  %v1695_v25 = vld [vmem:[#allocation11 + $0x90] sm:$0xff] }
 0x626   :  { %3382 = vmatprep.subr.bf16.mxu1 %v4681_v18  ;;  %v4696_v43 = vpack.c.bf16 %v1695_v25, %v1693_v55  ;;  %v1697_v18 = vld [vmem:[#allocation11 + $0xa0] sm:$0xff]  ;;  %v1706_v55 = vld [vmem:[#allocation11 + $0xe8] sm:$0xff]  ;;  %v1708_v25 = vld [vmem:[#allocation11 + $0xf8] sm:$0xff] }
 0x627   :  { %v4711_v54 = vpack.c.bf16 %v1708_v25, %v1706_v55 }
 0x628   :  { %5307 = vst [vmem:[#allocation46_spill] sm:$0xff] %v4696_v43 }
 0x629   :  { %3384 = vmatpush1.bf16.msra.mxu1 %v4684_v20  ;;  %v1699_v20 = vld [vmem:[#allocation11 + $0xb0] sm:$0xff]  ;;  %5310 = vst [vmem:[#allocation49_spill] sm:$0xff] %v4711_v54 }
 0x62a   :  { %3386 = vmatprep.subr.bf16.mxu1 %v4687_v34  ;;  %v4702_v36 = vpack.c.bf16 %v1699_v20, %v1697_v18  ;;  %v1701_v34 = vld [vmem:[#allocation11 + $0xc0] sm:$0xff] }
 0x62b   :  { %v1586_v20 = vld [vmem:[%s5130_s6] sm:$0x3] }
 0x62d   :  { %3388 = vmatpush1.bf16.msra.mxu1 %v4690_v16  ;;  %v1703_v16 = vld [vmem:[#allocation11 + $0xd0] sm:$0xff] }
 0x62e   :  { %3390 = vmatprep.subr.bf16.mxu1 %v4693_v21  ;;  %v4708_v42 = vpack.c.bf16 %v1703_v16, %v1701_v34  ;;  %v1705_v21 = vld [vmem:[#allocation11 + $0xe0] sm:$0xff]  ;;  %v1591_v34 = vrot.slane %v1586_v20, %v4131_v59  ;;  %v1595_v16 = vrot.slane %v1586_v20, %v4136_v2  ;;  %v1801_v20 = vld [vmem:[#allocation12 + $0x8] sm:$0xff] }
 0x630   :  { %5309 = vst [vmem:[#allocation48_spill] sm:$0xff] %v4708_v42 }
 0x631   :  { %3392 = vmatpush1.bf16.msra.mxu1 %v4696_v43  ;;  %v1707_v43 = vld [vmem:[#allocation11 + $0xf0] sm:$0xff] }
 0x632   :  { %3394 = vmatprep.subr.bf16.mxu1 %v4699_v45  ;;  %v4714_v18 = vpack.c.bf16 %v1707_v43, %v1705_v21  ;;  %v2637_v21 = vsel %vm1153_vm12, 1.0, %v5259_v12 }
 0x634   :  { %5311 = vst [vmem:[#allocation50_spill] sm:$0xff] %v4714_v18 }
 0x635   :  { %3396 = vmatpush1.bf16.msra.mxu1 %v4702_v36 }
 0x636   :  { %3398 = vmatprep.subr.bf16.mxu1 %v4705_v56 }
 0x639   :  { %3400 = vmatpush1.bf16.msra.mxu1 %v4708_v42 }
 0x63a   :  { %3402 = vmatprep.subr.bf16.mxu1 %v4711_v54  ;;  %v1672_v54 = vmul.f32 %v2637_v21, %v5273_v48  ;;  %v1809_v21 = vld [vmem:[#allocation12 + $0x48] sm:$0xff] }
 0x63d   :  { %3404 = vmatpush1.bf16.msra.mxu1 %v4714_v18  ;;  %v1670_v18 = vmul.f32 %v4468_v3, %v5274_v53  ;;  %v1802_v3 = vld [vmem:[#allocation12 + $0x10] sm:$0xff] }
 0x655   :  { %v1664_v39 = vpop.f32.mrb[10].mxu0 }
 0x656   :  { %v1665_v46 = vadd.f32 %v1664_v39, %v1591_v34  ;;  %v1666_v55 = vpop.f32.mrb[11].mxu0  ;;  %v1803_v34 = vld [vmem:[#allocation12 + $0x18] sm:$0xff] }
 0x657   :  { %v1667_v25 = vadd.f32 %v1666_v55, %v1595_v16  ;;  %v1800_v16 = vld [vmem:[#allocation12] sm:$0xff]  ;;  %v4739_v39 = vpack.c.bf16 %v1803_v34, %v1801_v20 }
 0x658   :  { %v1804_v55 = vld [vmem:[#allocation12 + $0x20] sm:$0xff] }
 0x659   :  { %v1669_v43 = vmax.f32 %v1665_v46, %v1667_v25  ;;  %v1805_v46 = vld [vmem:[#allocation12 + $0x28] sm:$0xff]  ;;  %v1806_v25 = vld [vmem:[#allocation12 + $0x30] sm:$0xff]  ;;  %3406 = vmatprep.subr.bf16.mxu1 %v4739_v39  ;;  %v1808_v34 = vld [vmem:[#allocation12 + $0x40] sm:$0xff] }
 0x65a   :  { %v4747_v53 = vpack.c.bf16 %v1806_v25, %v1804_v55  ;;  %v1817_v55 = vld [vmem:[#allocation12 + $0x88] sm:$0xff]  ;;  %v1819_v25 = vld [vmem:[#allocation12 + $0x98] sm:$0xff] }
 0x65b   :  { %v1671_v42 = vadd.f32 %v1670_v18, %v1669_v43  ;;  %v1807_v18 = vld [vmem:[#allocation12 + $0x38] sm:$0xff] }
 0x65c   :  { %v1811_v43 = vld [vmem:[#allocation12 + $0x58] sm:$0xff]  ;;  %5315 = vst [vmem:[#allocation54_spill] sm:$0xff] %v4747_v53 }
 0x65d   :  { %v4730_v56 = vsub.f32 %v1671_v42, %v1672_v54  ;;  %v4741_v42 = vpack.c.bf16 %v1802_v3, %v1800_v16  ;;  %v4743_v54 = vpack.c.bf16 %v1807_v18, %v1805_v46  ;;  %v4750_v20 = vpack.c.bf16 %v1811_v43, %v1809_v21  ;;  %v1813_v16 = vld [vmem:[#allocation12 + $0x68] sm:$0xff]  ;;  %v1815_v3 = vld [vmem:[#allocation12 + $0x78] sm:$0xff] }
 0x65e   :  { %v4756_v18 = vpack.c.bf16 %v1815_v3, %v1813_v16  ;;  %v4762_v43 = vpack.c.bf16 %v1819_v25, %v1817_v55  ;;  %v1827_v55 = vld [vmem:[#allocation12 + $0xd8] sm:$0xff] }
 0x65f   :  { %5312 = vst [vmem:[#allocation51_spill] sm:$0xff] %v4730_v56  ;;  %vm1674_vm4 = vcmp.gt.f32.partialorder %v4730_v56, %v5273_v48  ;;  %5313 = vst [vmem:[#allocation52_spill] sm:$0xff] %v4741_v42  ;;  %v1810_v48 = vld [vmem:[#allocation12 + $0x50] sm:$0xff]  ;;  %v1812_v56 = vld [vmem:[#allocation12 + $0x60] sm:$0xff] }
 0x660   :  { %2650 = vmatmul.mubr.msk.f32.vlgmr.msra.gmra.mrb[10].mxu1 %vm1674_vm4, %v5245_v1  ;;  %5314 = vst [vmem:[#allocation53_spill] sm:$0xff] %v4743_v54  ;;  %5316 = vst [vmem:[#allocation55_spill] sm:$0xff] %v4750_v20  ;;  %v4753_v46 = vpack.c.bf16 %v1810_v48, %v1808_v34  ;;  %v1821_v48 = vld [vmem:[#allocation12 + $0xa8] sm:$0xff]  ;;  %v1823_v34 = vld [vmem:[#allocation12 + $0xb8] sm:$0xff] }
 0x661   :  { %1908 = vmatprep.mubr.f32.mxu1 %v5259_v12  ;;  %3408 = vmatpush1.bf16.msra.mxu1 %v4741_v42  ;;  %v1814_v42 = vld [vmem:[#allocation12 + $0x70] sm:$0xff]  ;;  %5319 = vst [vmem:[#allocation32_spill] sm:$0xff] %v4762_v43  ;;  %v4768_v3 = vpack.c.bf16 %v1823_v34, %v1821_v48  ;;  %v1829_v48 = vld [vmem:[#allocation12 + $0xe8] sm:$0xff]  ;;  %v1831_v34 = vld [vmem:[#allocation12 + $0xf8] sm:$0xff] }
 0x662   :  { %3410 = vmatprep.subr.bf16.mxu1 %v4743_v54  ;;  %5317 = vst [vmem:[#allocation56_spill] sm:$0xff] %v4753_v46  ;;  %v4759_v21 = vpack.c.bf16 %v1814_v42, %v1812_v56  ;;  %v1816_v54 = vld [vmem:[#allocation12 + $0x80] sm:$0xff]  ;;  %v1825_v42 = vld [vmem:[#allocation12 + $0xc8] sm:$0xff] }
 0x663   :  { %5321 = vst [vmem:[#allocation59_spill] sm:$0xff] %v4768_v3  ;;  %v4775_v25 = vpack.c.bf16 %v1827_v55, %v1825_v42 }
 0x664   :  { %5318 = vst [vmem:[#allocation57_spill] sm:$0xff] %v4759_v21 }
 0x665   :  { %3412 = vmatpush1.bf16.msra.mxu1 %v4747_v53  ;;  %v1818_v53 = vld [vmem:[#allocation12 + $0x90] sm:$0xff]  ;;  %5323 = vst [vmem:[#allocation61_spill] sm:$0xff] %v4775_v25 }
 0x666   :  { %3414 = vmatprep.subr.bf16.mxu1 %v4750_v20  ;;  %v4765_v16 = vpack.c.bf16 %v1818_v53, %v1816_v54  ;;  %v1820_v20 = vld [vmem:[#allocation12 + $0xa0] sm:$0xff]  ;;  %v1826_v54 = vld [vmem:[#allocation12 + $0xd0] sm:$0xff] }
 0x667   :  { %v1824_v53 = vld [vmem:[#allocation12 + $0xc0] sm:$0xff] }
 0x668   :  { %5320 = vst [vmem:[#allocation58_spill] sm:$0xff] %v4765_v16 }
 0x669   :  { %3416 = vmatpush1.bf16.msra.mxu1 %v4753_v46  ;;  %v1822_v46 = vld [vmem:[#allocation12 + $0xb0] sm:$0xff] }
 0x66a   :  { %3418 = vmatprep.subr.bf16.mxu1 %v4756_v18  ;;  %v4771_v56 = vpack.c.bf16 %v1822_v46, %v1820_v20  ;;  %v4781_v20 = vpack.c.bf16 %v1831_v34, %v1829_v48  ;;  %v1828_v46 = vld [vmem:[#allocation12 + $0xe0] sm:$0xff]  ;;  %v1497_v48 = vmul.f32 %v4517_v47, %v4495_v58  ;;  %v1925_v47 = vld [vmem:[%s5135_s11 + $0x10] sm:$0xff]  ;;  %v1926_v34 = vld [vmem:[%s5135_s11 + $0x18] sm:$0xff] }
 0x66c   :  { %5322 = vst [vmem:[#allocation60_spill] sm:$0xff] %v4771_v56  ;;  %5325 = vst [vmem:[#allocation63_spill] sm:$0xff] %v4781_v20 }
 0x66d   :  { %3420 = vmatpush1.bf16.msra.mxu1 %v4759_v21  ;;  %v4777_v21 = vpack.c.bf16 %v1826_v54, %v1824_v53  ;;  %v1495_v53 = vmul.f32 %v4510_v38, %v4498_v63  ;;  %v1924_v38 = vld [vmem:[%s5135_s11 + $0x8] sm:$0xff] }
 0x66e   :  { %3422 = vmatprep.subr.bf16.mxu1 %v4762_v43 }
 0x66f   :  { %5324 = vst [vmem:[#allocation62_spill] sm:$0xff] %v4777_v21 }
 0x671   :  { %3424 = vmatpush1.bf16.msra.mxu1 %v4765_v16 }
 0x672   :  { %3426 = vmatprep.subr.bf16.mxu1 %v4768_v3  ;;  %v1830_v3 = vld [vmem:[#allocation12 + $0xf0] sm:$0xff] }
 0x673   :  { %v4783_v16 = vpack.c.bf16 %v1830_v3, %v1828_v46  ;;  %v4820_v46 = vpack.c.bf16 %v1926_v34, %v1925_v47  ;;  %v1932_v47 = vld [vmem:[%s5135_s11 + $0x48] sm:$0xff] }
 0x675   :  { %3428 = vmatpush1.bf16.msra.mxu1 %v4771_v56  ;;  %5326 = vst [vmem:[#allocation64_spill] sm:$0xff] %v4783_v16 }
 0x676   :  { %3430 = vmatprep.subr.bf16.mxu1 %v4775_v25 }
 0x679   :  { %3432 = vmatpush1.bf16.msra.mxu1 %v4777_v21 }
 0x67a   :  { %3434 = vmatprep.subr.bf16.mxu1 %v4781_v20 }
 0x67d   :  { %3436 = vmatpush1.bf16.msra.mxu1 %v4783_v16 }
 0x67e   :  { %3462 = vmatprep.subr.bf16.mxu1 %v4492_v57 }
 0x6f3   :  { %v1491_v42 = vpop.f32.mrb[8].mxu1 }
 0x6f4   :  { %v1492_v55 = vadd.f32 %v4503_v0, %v1491_v42  ;;  %v2806_v54 = vpop.f32.mrb[9].mxu1  ;;  %v1923_v0 = vld [vmem:[%s5135_s11] sm:$0xff] }
 0x6f5   :  { %v1927_v42 = vld [vmem:[%s5135_s11 + $0x20] sm:$0xff]  ;;  %v1929_v54 = vld [vmem:[%s5135_s11 + $0x30] sm:$0xff] }
 0x6f6   :  { %v1496_v21 = vadd.f32 %v1495_v53, %v1492_v55  ;;  %1503 = vst.msk [vmem:[#allocation14 + $0x2] sm:$0x3] %vm983_vm14, %v1492_v55  ;;  %v1928_v55 = vld [vmem:[%s5135_s11 + $0x28] sm:$0xff] }
 0x6f7   :  { %v4830_v53 = vpack.c.bf16 %v1928_v55, %v1927_v42  ;;  %v1709_v42 = vld [vmem:[%s5132_s8] sm:$0x3] }
 0x6f8   :  { %v4794_v3 = vsub.f32 %v1496_v21, %v1497_v48  ;;  %v4814_v21 = vpack.c.bf16 %v1924_v38, %v1923_v0  ;;  %v1930_v48 = vld [vmem:[%s5135_s11 + $0x38] sm:$0xff]  ;;  %v1931_v38 = vld [vmem:[%s5135_s11 + $0x40] sm:$0xff]  ;;  %v1714_v55 = vrot.slane %v1709_v42, %v4131_v59 }
 0x6f9   :  { %v4840_v0 = vpack.c.bf16 %v1930_v48, %v1929_v54  ;;  %v4850_v34 = vpack.c.bf16 %v1932_v47, %v1931_v38  ;;  %v1718_v54 = vrot.slane %v1709_v42, %v4136_v2  ;;  %v2646_v48 = vsel %vm1517_vm1, 1.0, %v5259_v12 }
 0x6fa   :  { %5327 = vst [vmem:[#allocation65_spill] sm:$0xff] %v4794_v3  ;;  %1507 = vst.msk [vmem:[#allocation17 + $0x2] sm:$0x3] %vm983_vm14, %v4794_v3  ;;  %vm1499_vm5 = vcmp.gt.f32.partialorder %v4794_v3, %v4495_v58  ;;  %3439 = vmatpush3.bf16.msra.mxu0 %v4814_v21  ;;  %v2639_v3 = vsel %vm1276_vm0, 1.0, %v5259_v12  ;;  %v2034_v63 = vmul.f32 %v2646_v48, %v4138_v5 }
 0x6fb   :  { %v4801_v57 = vsel %vm1499_vm5, 1.0, %v5259_v12  ;;  %3440 = vmatprep.subr.bf16.mxu0 %v5260_v9  ;;  %v1793_v42 = vmul.f32 %v4533_v50, %v4328_v19  ;;  %v1795_v20 = vmul.f32 %v2639_v3, %v4323_v44  ;;  %v5331_v50 = vld [vmem:[#allocation27_spill] sm:$0xff]  ;;  %v5341_v3 = vld [vmem:[#allocation42_spill] sm:$0xff] }
 0x6fc   :  { %5328 = vst [vmem:[#allocation66_spill] sm:$0xff] %v4801_v57  ;;  %1505 = vst.msk [vmem:[#allocation15 + $0x2] sm:$0x3] %vm983_vm14, %v4801_v57  ;;  %v2036_v56 = vsub.f32 %v5329_v31, %v2034_v63  ;;  %v2645_v63 = vsel %vm1516_vm2, 1.0, %v5259_v12  ;;  %v5350_v31 = vld [vmem:[#allocation51_spill] sm:$0xff] }
 0x6fe   :  { %3442 = vmatpush3.bf16.msra.mxu0 %v4820_v46  ;;  %vm2038_vm7 = vcmp.gt.f32.partialorder %v2036_v56, %v4138_v5 }
 0x6ff   :  { %3443 = vmatprep.subr.bf16.mxu0 %v5260_v9 }
 0x702   :  { %3445 = vmatpush3.bf16.msra.mxu0 %v4830_v53 }
 0x703   :  { %3446 = vmatprep.subr.bf16.mxu0 %v5260_v9 }
 0x706   :  { %3448 = vmatpush3.bf16.msra.mxu0 %v4840_v0 }
 0x707   :  { %3449 = vmatprep.subr.bf16.mxu0 %v5260_v9 }
 0x70a   :  { %3451 = vmatpush3.bf16.msra.mxu0 %v4850_v34 }
 0x70b   :  { %3452 = vmatprep.subr.bf16.mxu0 %v5260_v9 }
 0x733   :  { %v1787_v38 = vpop.f32.mrb[10].mxu1 }
 0x734   :  { %v1788_v47 = vadd.f32 %v1787_v38, %v1714_v55  ;;  %v1789_v57 = vpop.f32.mrb[11].mxu1  ;;  %v5349_v55 = vld [vmem:[#allocation50_spill] sm:$0xff] }
 0x735   :  { %v1790_v58 = vadd.f32 %v1789_v57, %v1718_v54  ;;  %v5342_v57 = vld [vmem:[#allocation43_spill] sm:$0xff]  ;;  %v2107_v54 = vld [vmem:[%s5130_s6] sm:$0x3] }
 0x736   :  { %v2112_v48 = vrot.slane %v2107_v54, %v4131_v59 }
 0x737   :  { %v1792_v16 = vmax.f32 %v1788_v47, %v1790_v58  ;;  %v5351_v58 = vld [vmem:[#allocation40_spill] sm:$0xff] }
 0x739   :  { %v1794_v25 = vadd.f32 %v1793_v42, %v1792_v16 }
 0x73b   :  { %v4873_v43 = vsub.f32 %v1794_v25, %v1795_v20  ;;  %v5338_v25 = vld [vmem:[#allocation37_spill] sm:$0xff]  ;;  %v5340_v20 = vld [vmem:[#allocation39_spill] sm:$0xff] }
 0x73d   :  { %vm1797_vm6 = vcmp.gt.f32.partialorder %v4873_v43, %v4323_v44 }
 0x73e   :  { %2652 = vmatmul.mubr.msk.f32.vlgmr.msra.gmra.mrb[12].mxu1 %vm1797_vm6, %v5245_v1 }
 0x73f   :  { %3464 = vmatpush1.bf16.msra.mxu1 %v4535_v60  ;;  %2659 = vmatprep.mubr.msk.f32.mxu1 %vm2038_vm7, %v5245_v1  ;;  %v5332_v60 = vld [vmem:[#allocation28_spill] sm:$0xff] }
 0x740   :  { %3466 = vmatprep.subr.bf16.mxu1 %v4537_v29  ;;  %v2033_v29 = vmul.f32 %v2645_v63, %v4138_v5  ;;  %v2649_v63 = vsel %vm1674_vm4, 1.0, %v5259_v12 }
 0x743   :  { %3468 = vmatpush1.bf16.msra.mxu1 %v4552_v10  ;;  %v5333_v10 = vld [vmem:[#allocation29_spill] sm:$0xff] }
 0x744   :  { %3470 = vmatprep.subr.bf16.mxu1 %v4555_v15  ;;  %v5334_v15 = vld [vmem:[#allocation30_spill] sm:$0xff] }
 0x747   :  { %3472 = vmatpush1.bf16.msra.mxu1 %v4558_v28  ;;  %v5335_v28 = vld [vmem:[#allocation33_spill] sm:$0xff] }
 0x748   :  { %3474 = vmatprep.subr.bf16.mxu1 %v4561_v33  ;;  %v2035_v33 = vsub.f32 %v5335_v28, %v2033_v29  ;;  %v2193_v29 = vmul.f32 %v2649_v63, %v5351_v58  ;;  %v5353_v28 = vld [vmem:[#allocation52_spill] sm:$0xff] }
 0x74a   :  { %vm2037_vm8 = vcmp.gt.f32.partialorder %v2035_v33, %v4138_v5  ;;  %v1933_v5 = vld [vmem:[%s5135_s11 + $0x50] sm:$0xff]  ;;  %v5354_v33 = vld [vmem:[#allocation53_spill] sm:$0xff] }
 0x74b   :  { %3476 = vmatpush1.bf16.msra.mxu1 %v4564_v52  ;;  %v5336_v52 = vld [vmem:[#allocation35_spill] sm:$0xff] }
 0x74c   :  { %3478 = vmatprep.subr.bf16.mxu1 %v4567_v6  ;;  %v1934_v6 = vld [vmem:[%s5135_s11 + $0x58] sm:$0xff] }
 0x74f   :  { %3480 = vmatpush1.bf16.msra.mxu1 %v4570_v30  ;;  %v3453_v30 = vpack.c.bf16 %v1934_v6, %v1933_v5  ;;  %v5356_v5 = vld [vmem:[#allocation55_spill] sm:$0xff]  ;;  %v5357_v6 = vld [vmem:[#allocation56_spill] sm:$0xff] }
 0x750   :  { %3482 = vmatprep.subr.bf16.mxu1 %v4573_v35  ;;  %v1935_v35 = vld [vmem:[%s5135_s11 + $0x60] sm:$0xff] }
 0x751   :  { %3454 = vmatpush3.bf16.msra.mxu0 %v3453_v30 }
 0x752   :  { %3455 = vmatprep.subr.bf16.mxu0 %v5260_v9 }
 0x753   :  { %3484 = vmatpush1.bf16.msra.mxu1 %v4576_v8  ;;  %v1936_v8 = vld [vmem:[%s5135_s11 + $0x68] sm:$0xff] }
 0x754   :  { %3486 = vmatprep.subr.bf16.mxu1 %v4579_v11  ;;  %v3456_v11 = vpack.c.bf16 %v1936_v8, %v1935_v35  ;;  %v5359_v35 = vld [vmem:[#allocation32_spill] sm:$0xff]  ;;  %v5360_v8 = vld [vmem:[#allocation58_spill] sm:$0xff] }
 0x756   :  { %3457 = vmatpush3.bf16.msra.mxu0 %v3456_v11 }
 0x757   :  { %3488 = vmatpush1.bf16.msra.mxu1 %v4582_v24  ;;  %3458 = vmatprep.subr.bf16.mxu0 %v5260_v9  ;;  %v1937_v24 = vld [vmem:[%s5135_s11 + $0x70] sm:$0xff] }
 0x758   :  { %3490 = vmatprep.subr.bf16.mxu1 %v4585_v41  ;;  %v1938_v41 = vld [vmem:[%s5135_s11 + $0x78] sm:$0xff] }
 0x75b   :  { %3492 = vmatpush1.bf16.msra.mxu1 %v4588_v32  ;;  %v3459_v32 = vpack.c.bf16 %v1938_v41, %v1937_v24  ;;  %v5362_v24 = vld [vmem:[#allocation60_spill] sm:$0xff]  ;;  %v5363_v41 = vld [vmem:[#allocation61_spill] sm:$0xff] }
 0x75c   :  { %3494 = vmatprep.subr.bf16.mxu1 %v4591_v4  ;;  %v5337_v4 = vld [vmem:[#allocation36_spill] sm:$0xff] }
 0x75d   :  { %3460 = vmatpush3.bf16.msra.mxu0 %v3459_v32 }
 0x75e   :  { %3526 = vmatprep.subr.bf16.mxu0 %v5337_v4  ;;  %v5365_v4 = vld [vmem:[#allocation63_spill] sm:$0xff] }
 0x75f   :  { %3496 = vmatpush1.bf16.msra.mxu1 %v4594_v23  ;;  %v1832_v23 = vld [vmem:[%s5134_s10] sm:$0x3] }
 0x760   :  { %3498 = vmatprep.subr.bf16.mxu1 %v4597_v27  ;;  %v1837_v27 = vrot.slane %v1832_v23, %v4131_v59 }
 0x763   :  { %3500 = vmatpush1.bf16.msra.mxu1 %v4600_v7  ;;  %v1841_v7 = vrot.slane %v1832_v23, %v4136_v2  ;;  %v5366_v23 = vld [vmem:[#allocation64_spill] sm:$0xff] }
 0x764   :  { %3502 = vmatprep.subr.bf16.mxu1 %v4603_v14 }
 0x767   :  { %3504 = vmatpush1.bf16.msra.mxu1 %v4606_v61 }
 0x768   :  { %3506 = vmatprep.subr.bf16.mxu1 %v4609_v62 }
 0x76b   :  { %3508 = vmatpush1.bf16.msra.mxu1 %v4612_v37 }
 0x76c   :  { %3510 = vmatprep.subr.bf16.mxu1 %v4615_v13 }
 0x76f   :  { %3512 = vmatpush1.bf16.msra.mxu1 %v4618_v17  ;;  %v1916_v17 = vmul.f32 %v4664_v26, %v4426_v51  ;;  %v5339_v26 = vld [vmem:[#allocation38_spill] sm:$0xff] }
 0x770   :  { %3514 = vmatprep.subr.bf16.mxu1 %v4621_v22 }
 0x773   :  { %3516 = vmatpush1.bf16.msra.mxu1 %v5331_v50 }
 0x774   :  { %3518 = vmatprep.subr.bf16.mxu1 %v5332_v60  ;;  %v5352_v60 = vld [vmem:[#allocation41_spill] sm:$0xff] }
 0x777   :  { %3520 = vmatpush1.bf16.msra.mxu1 %v5333_v10 }
 0x778   :  { %3522 = vmatprep.subr.bf16.mxu1 %v5334_v15 }
 0x77b   :  { %3524 = vmatpush1.bf16.msra.mxu1 %v5336_v52  ;;  %v5355_v52 = vld [vmem:[#allocation54_spill] sm:$0xff] }
 0x77c   :  { %3589 = vmatprep.subr.bf16.mxu1 %v5260_v9 }
 0x77e   :  { %2660 = vmatmul.mubr.msk.f32.vlgmr.msra.gmra.mrb[14].mxu1 %vm2037_vm8, %v5245_v1 }
 0x77f   :  { %3591 = vmatpush3.bf16.msra.mxu1 %v4814_v21  ;;  %2874 = vmatprep.mubr.msk.f32.mxu1 %vm3836_vm9, %v5259_v12  ;;  %v5343_v21 = vld [vmem:[#allocation44_spill] sm:$0xff] }
 0x780   :  { %3592 = vmatprep.subr.bf16.mxu1 %v5260_v9 }
 0x783   :  { %3594 = vmatpush3.bf16.msra.mxu1 %v4820_v46  ;;  %v5344_v46 = vld [vmem:[#allocation45_spill] sm:$0xff] }
 0x784   :  { %3595 = vmatprep.subr.bf16.mxu1 %v5260_v9 }
 0x787   :  { %3597 = vmatpush3.bf16.msra.mxu1 %v4830_v53  ;;  %v5345_v53 = vld [vmem:[#allocation46_spill] sm:$0xff] }
 0x788   :  { %3598 = vmatprep.subr.bf16.mxu1 %v5260_v9 }
 0x78b   :  { %3600 = vmatpush3.bf16.msra.mxu1 %v4840_v0  ;;  %v5347_v0 = vld [vmem:[#allocation48_spill] sm:$0xff] }
 0x78c   :  { %3601 = vmatprep.subr.bf16.mxu1 %v5260_v9 }
 0x78f   :  { %3603 = vmatpush3.bf16.msra.mxu1 %v4850_v34  ;;  %v5348_v34 = vld [vmem:[#allocation49_spill] sm:$0xff] }
 0x790   :  { %3604 = vmatprep.subr.bf16.mxu1 %v5260_v9 }
 0x793   :  { %3606 = vmatpush3.bf16.msra.mxu1 %v3453_v30  ;;  %v5358_v30 = vld [vmem:[#allocation57_spill] sm:$0xff] }
 0x794   :  { %3607 = vmatprep.subr.bf16.mxu1 %v5260_v9 }
 0x797   :  { %3609 = vmatpush3.bf16.msra.mxu1 %v3456_v11  ;;  %v5361_v11 = vld [vmem:[#allocation59_spill] sm:$0xff] }
 0x798   :  { %3610 = vmatprep.subr.bf16.mxu1 %v5260_v9  ;;  %v2641_v9 = vsel %vm1399_vm3, 1.0, %v5259_v12 }
 0x799   :  { %v1918_v22 = vmul.f32 %v2641_v9, %v4421_v40 }
 0x79b   :  { %3612 = vmatpush3.bf16.msra.mxu1 %v3459_v32  ;;  %v5364_v32 = vld [vmem:[#allocation62_spill] sm:$0xff] }
 0x811   :  { %v1910_v14 = vpop.f32.mrb[12].mxu1 }
 0x812   :  { %v1911_v61 = vadd.f32 %v1910_v14, %v1837_v27  ;;  %v1912_v62 = vpop.f32.mrb[13].mxu1  ;;  %v5367_v14 = vld [vmem:[#allocation26_spill] sm:$0xff] }
 0x813   :  { %v1913_v37 = vadd.f32 %v1912_v62, %v1841_v7 }
 0x815   :  { %v1915_v13 = vmax.f32 %v1911_v61, %v1913_v37  ;;  %v5368_v61 = vld [vmem:[#allocation65_spill] sm:$0xff] }
 0x816   :  { %v2016_v62 = vmul.f32 %v5368_v61, %v5367_v14 }
 0x817   :  { %v1917_v16 = vadd.f32 %v1916_v17, %v1915_v13  ;;  %v5369_v13 = vld [vmem:[#allocation25_spill] sm:$0xff]  ;;  %v5370_v17 = vld [vmem:[#allocation66_spill] sm:$0xff] }
 0x819   :  { %v4970_v56 = vsub.f32 %v1917_v16, %v1918_v22  ;;  %v2018_v22 = vmul.f32 %v5370_v17, %v5369_v13 }
 0x81b   :  { %vm1920_vm9 = vcmp.gt.f32.partialorder %v4970_v56, %v4421_v40 }
 0x81c   :  { %2840 = vmatmul.mubr.msk.f32.vlgmr.msra.gmra.mrb[12].mxu0 %vm1920_vm9, %v5245_v1 }
 0x81d   :  { %3528 = vmatpush1.bf16.msra.mxu0 %v4666_v49  ;;  %2306 = vmatprep.mubr.f32.mxu0 %v5259_v12  ;;  %v5346_v49 = vld [vmem:[#allocation47_spill] sm:$0xff] }
 0x81e   :  { %3530 = vmatprep.subr.bf16.mxu0 %v5338_v25 }
 0x821   :  { %3532 = vmatpush1.bf16.msra.mxu0 %v5339_v26  ;;  %v2230_v26 = vld [vmem:[%s5132_s8] sm:$0x3] }
 0x822   :  { %3534 = vmatprep.subr.bf16.mxu0 %v5340_v20  ;;  %v2235_v20 = vrot.slane %v2230_v26, %v4131_v59 }
 0x825   :  { %3536 = vmatpush1.bf16.msra.mxu0 %v5341_v3  ;;  %v2239_v3 = vrot.slane %v2230_v26, %v4136_v2 }
 0x826   :  { %3538 = vmatprep.subr.bf16.mxu0 %v5342_v57 }
 0x829   :  { %3540 = vmatpush1.bf16.msra.mxu0 %v5343_v21 }
 0x82a   :  { %3542 = vmatprep.subr.bf16.mxu0 %v5344_v46 }
 0x82d   :  { %3544 = vmatpush1.bf16.msra.mxu0 %v5345_v53 }
 0x82e   :  { %3546 = vmatprep.subr.bf16.mxu0 %v4699_v45  ;;  %v2116_v45 = vrot.slane %v2107_v54, %v4136_v2 }
 0x831   :  { %3548 = vmatpush1.bf16.msra.mxu0 %v4702_v36 }
 0x832   :  { %3550 = vmatprep.subr.bf16.mxu0 %v5346_v49  ;;  %v2651_v49 = vsel %vm1797_vm6, 1.0, %v5259_v12 }
 0x835   :  { %3552 = vmatpush1.bf16.msra.mxu0 %v5347_v0 }
 0x836   :  { %3554 = vmatprep.subr.bf16.mxu0 %v5348_v34  ;;  %v2314_v34 = vmul.f32 %v4873_v43, %v4328_v19  ;;  %v2653_v43 = vsel %vm1920_vm9, 1.0, %v5259_v12 }
 0x837   :  { %v2439_v63 = vmul.f32 %v2653_v43, %v4421_v40 }
 0x839   :  { %3556 = vmatpush1.bf16.msra.mxu0 %v5349_v55  ;;  %v2316_v55 = vmul.f32 %v2651_v49, %v4323_v44 }
 0x83a   :  { %3558 = vmatprep.subr.bf16.mxu0 %v4739_v39  ;;  %v2191_v39 = vmul.f32 %v5350_v31, %v5352_v60 }
 0x851   :  { %v2185_v38 = vpop.f32.mrb[14].mxu1 }
 0x852   :  { %v2186_v36 = vadd.f32 %v2185_v38, %v2112_v48  ;;  %v2187_v47 = vpop.f32.mrb[15].mxu1 }
 0x853   :  { %v2188_v42 = vadd.f32 %v2187_v47, %v2116_v45  ;;  %v2353_v45 = vld [vmem:[%s5134_s10] sm:$0x3]  ;;  %s3837_s10 = smov [#allocation14]  }
 0x854   :  { %v2358_v38 = vrot.slane %v2353_v45, %v4131_v59  ;;  %s2555_s26 = sshll.u32 %s3837_s10, 4  ;;  %s2556_s26 = int_to_ptr.vmem [resolvable:$true] %s2555_s26 }
 0x855   :  { %v2190_v50 = vmax.f32 %v2186_v36, %v2188_v42  ;;  %v2362_v36 = vrot.slane %v2353_v45, %v4136_v2  ;;  %s3743_s22 = scalar_lea.vmem %s2556_s26, 128  ;;  %p3748_p1 = scmp.lt.s32.totalorder %s2556_s26, %s2556_s26 }
 0x856   :  { %p3744_p0 = scmp.ne.s32.totalorder %s2556_s26, %s3743_s22  ;;  %p3749_p2 = scmp.lt.s32.totalorder %s3743_s22, %s3743_s22 }
 0x857   :  { %v2192_v10 = vadd.f32 %v2191_v39, %v2190_v50 }
 0x858   :  { %p3750_p3 = por %p3749_p2, %p3748_p1 }
 0x859   :  { %v2194_v15 = vsub.f32 %v2192_v10, %v2193_v29 }
 0x85a   :  { %p3751_p4 = pnand %p3750_p3, %p3744_p0 }
 0x85b   :  { %vm2195_vm10 = vcmp.gt.f32.partialorder %v2194_v15, %v5351_v58  ;;  %v2437_v58 = vmul.f32 %v4970_v56, %v4426_v51 }
 0x85c   :  { %2662 = vmatmul.mubr.msk.f32.vlgmr.msra.gmra.mrb[14].mxu0 %vm2195_vm10, %v5245_v1 }
 0x85d   :  { %3560 = vmatpush1.bf16.msra.mxu0 %v5353_v28  ;;  %2429 = vmatprep.mubr.f32.mxu0 %v5259_v12 }
 0x85e   :  { %3562 = vmatprep.subr.bf16.mxu0 %v5354_v33 }
 0x861   :  { %3564 = vmatpush1.bf16.msra.mxu0 %v5355_v52 }
 0x862   :  { %3566 = vmatprep.subr.bf16.mxu0 %v5356_v5 }
 0x865   :  { %3568 = vmatpush1.bf16.msra.mxu0 %v5357_v6 }
 0x866   :  { %3570 = vmatprep.subr.bf16.mxu0 %v4756_v18  ;;  %v2654_v18 = vld [vmem:[%s5136_s12] ss:$0 sm:$0xff] }
 0x869   :  { %3572 = vmatpush1.bf16.msra.mxu0 %v5358_v30 }
 0x86a   :  { %3574 = vmatprep.subr.bf16.mxu0 %v5359_v35 }
 0x86d   :  { %3576 = vmatpush1.bf16.msra.mxu0 %v5360_v8 }
 0x86e   :  { %3578 = vmatprep.subr.bf16.mxu0 %v5361_v11 }
 0x871   :  { %3580 = vmatpush1.bf16.msra.mxu0 %v5362_v24 }
 0x872   :  { %3582 = vmatprep.subr.bf16.mxu0 %v5363_v41 }
 0x875   :  { %3584 = vmatpush1.bf16.msra.mxu0 %v5364_v32 }
 0x876   :  { %3586 = vmatprep.subr.bf16.mxu0 %v5365_v4 }
 0x879   :  { %3588 = vmatpush1.bf16.msra.mxu0 %v5366_v23 }
 0x8ef   :  { %v2012_v27 = vpop.f32.mrb[12].mxu0 }
 0x8f0   :  { %v2013_v7 = vadd.f32 %v2654_v18, %v2012_v27  ;;  %v2841_v37 = vpop.f32.mrb[13].mxu0 }
 0x8f2   :  { %v2017_v9 = vadd.f32 %v2016_v62, %v2013_v7  ;;  %2024 = vst.msk [vmem:[#allocation14 + $0x4] sm:$0x3] %vm983_vm14, %v2013_v7 }
 0x8f4   :  { %v2019_v16 = vsub.f32 %v2017_v9, %v2018_v22 }
 0x8f6   :  { %2028 = vst.msk [vmem:[#allocation17 + $0x4] sm:$0x3] %vm983_vm14, %v2019_v16  ;;  %vm2020_vm11 = vcmp.gt.f32.partialorder %v2019_v16, %v5369_v13  ;;  %v2537_v39 = vmul.f32 %v2019_v16, %v5367_v14 }
 0x8f7   :  { %v2656_v25 = vsel %vm2020_vm11, 1.0, %v5259_v12 }
 0x8f8   :  { %2026 = vst.msk [vmem:[#allocation15 + $0x4] sm:$0x3] %vm983_vm14, %v2656_v25  ;;  %v2539_v15 = vmul.f32 %v2656_v25, %v5369_v13 }
 0x92f   :  { %v2308_v57 = vpop.f32.mrb[14].mxu0 }
 0x930   :  { %v2309_v21 = vadd.f32 %v2308_v57, %v2235_v20  ;;  %v2310_v46 = vpop.f32.mrb[15].mxu0 }
 0x931   :  { %v2311_v53 = vadd.f32 %v2310_v46, %v2239_v3 }
 0x933   :  { %v2313_v0 = vmax.f32 %v2309_v21, %v2311_v53 }
 0x935   :  { %v2315_v54 = vadd.f32 %v2314_v34, %v2313_v0 }
 0x937   :  { %v2317_v48 = vsub.f32 %v2315_v54, %v2316_v55 }
 0x939   :  { %vm2318_vm12 = vcmp.gt.f32.partialorder %v2317_v48, %v4323_v44 }
 0x93a   :  { %2664 = vmatmul.mubr.msk.f32.vlgmr.msra.gmra.mrb[16].mxu0 %vm2318_vm12, %v5245_v1 }
 0xa0d   :  { %v2431_v47 = vpop.f32.mrb[16].mxu0 }
 0xa0e   :  { %v2432_v42 = vadd.f32 %v2431_v47, %v2358_v38  ;;  %v2433_v31 = vpop.f32.mrb[17].mxu0 }
 0xa0f   :  { %v2434_v19 = vadd.f32 %v2433_v31, %v2362_v36 }
 0xa11   :  { %v2436_v44 = vmax.f32 %v2432_v42, %v2434_v19 }
 0xa13   :  { %v2438_v50 = vadd.f32 %v2437_v58, %v2436_v44 }
 0xa15   :  { %v2440_v60 = vsub.f32 %v2438_v50, %v2439_v63 }
 0xa17   :  { %vm2441_vm13 = vcmp.gt.f32.partialorder %v2440_v60, %v4421_v40 }
 0xa18   :  { %2875 = vmatmul.mubr.msk.f32.vlgmr.msra.gmra.mrb[16].mxu1 %vm2441_vm13, %v5245_v1 }
 0xaeb   :  { %v2533_v59 = vpop.f32.mrb[16].mxu1 }
 0xaec   :  { %v2534_v2 = vadd.f32 %v2654_v18, %v2533_v59  ;;  %v2876_v29 = vpop.f32.mrb[17].mxu1 }
 0xaee   :  { %v2538_v10 = vadd.f32 %v2537_v39, %v2534_v2  ;;  %2545 = vst.msk [vmem:[#allocation14 + $0x6] sm:$0x3] %vm983_vm14, %v2534_v2 }
 0xaef   :  { %3754 = shalt.err (!%p3751_p4)
}
 0xaf0   :  { %s3755_s7 = scalar_lea.hbm %s5137_s13, 128 }
 0xaf1   :  { %p3756_p5 = scmp.ne.s32.totalorder %s5137_s13, %s3755_s7  ;;  %p3759_p6 = scmp.lt.u32.totalorder %s3755_s7, %s5137_s13 }
 0xaf3   :  { %p3761_p7 = pnand %p3759_p6, %p3756_p5 }
 0xaf5   :  { %3764 = shalt.err (!%p3761_p7)
}
 0xaf6   :  { %s3839_s16 = smov 2   ;;  %v2540_v1 = vsub.f32 %v2538_v10, %v2539_v15  ;;  %s3840_s4 = smov [#allocation17]  }
 0xaf7   :  { %2561 = dma.vmem_to_hbm [thread:$0]  %s2556_s26, 128, %s5137_s13, [#allocation4], %s3830_s23, %s3830_s23, %s3839_s16  }
 0xaf8   :  { %s2579_s18 = sshll.u32 %s3840_s4, 4  ;;  %vm2541_vm15 = vcmp.gt.f32.partialorder %v2540_v1, %v5369_v13  ;;  %2549 = vst.msk [vmem:[#allocation17 + $0x6] sm:$0x3] %vm983_vm14, %v2540_v1  ;;  %s3765_s20 = scalar_lea.vmem %s2568_s29, 128  ;;  %s5086_s18 = int_to_ptr.vmem [resolvable:$true] %s2579_s18 }
 0xaf9   :  { %v2668_v40 = vsel %vm2541_vm15, 1.0, %v5259_v12  ;;  %p3766_p8 = scmp.ne.s32.totalorder %s2568_s29, %s3765_s20  ;;  %p3770_p9 = scmp.lt.s32.totalorder %s2568_s29, %s2568_s29 }
 0xafa   :  { %2547 = vst.msk [vmem:[#allocation15 + $0x6] sm:$0x3] %vm983_vm14, %v2668_v40  ;;  %p3771_p10 = scmp.lt.s32.totalorder %s3765_s20, %s3765_s20 }
 0xafc   :  { %p3772_p11 = por %p3771_p10, %p3770_p9 }
 0xafe   :  { %p3773_p12 = pnand %p3772_p11, %p3766_p8 }
 0xb00   :  { %3776 = shalt.err (!%p3773_p12)
}
 0xb01   :  { %s3777_s11 = scalar_lea.hbm %s5138_s14, 128 }
 0xb02   :  { %p3778_p13 = scmp.ne.s32.totalorder %s5138_s14, %s3777_s11  ;;  %p3781_p0 = scmp.lt.u32.totalorder %s3777_s11, %s5138_s14 }
 0xb04   :  { %p3783_p1 = pnand %p3781_p0, %p3778_p13 }
 0xb06   :  { %3786 = shalt.err (!%p3783_p1)
}
 0xb07   :  { %2573 = dma.vmem_to_hbm [thread:$0]  %s2568_s29, 128, %s5138_s14, [#allocation16], %s3830_s23, %s3830_s23, %s3839_s16  }
 0xb08   :  { %s3787_s25 = scalar_lea.vmem %s5086_s18, 128  ;;  %p3792_p3 = scmp.lt.s32.totalorder %s5086_s18, %s5086_s18 }
 0xb09   :  { %p3788_p2 = scmp.ne.s32.totalorder %s5086_s18, %s3787_s25  ;;  %p3793_p4 = scmp.lt.s32.totalorder %s3787_s25, %s3787_s25 }
 0xb0b   :  { %p3794_p5 = por %p3793_p4, %p3792_p3 }
 0xb0d   :  { %p3795_p6 = pnand %p3794_p5, %p3788_p2 }
 0xb0f   :  { %3798 = shalt.err (!%p3795_p6)
}
 0xb10   :  { %s3799_s19 = scalar_lea.hbm %s5139_s15, 128 }
 0xb11   :  { %p3800_p7 = scmp.ne.s32.totalorder %s5139_s15, %s3799_s19  ;;  %p3803_p8 = scmp.lt.u32.totalorder %s3799_s19, %s5139_s15 }
 0xb13   :  { %p3805_p9 = pnand %p3803_p8, %p3800_p7 }
 0xb15   :  { %3808 = shalt.err (!%p3805_p9)
}
 0xb16   :  { %2585 = dma.vmem_to_hbm [thread:$0]  %s5086_s18, 128, %s5139_s15, [#allocation16], %s3830_s23, %s3830_s23, %s3839_s16  }
 0xb17   :  { %3819 = dma.done.wait [#allocation4], 128  }
 0xb18   :  { %3820 = vsyncadd [#allocation4], 4294967168 }
 0xb19   :  { %3821 = dma.done.wait [#allocation16], 256  }
 0xb1a   :  { %3822 = vsyncadd [#allocation16], 4294967040 }
 0xb1b   :  { %2595 = vsyncpa [#allocation3], 1 }
 0xb1c   :  { %2596 = vsyncpa [#allocation10], 1 }
 0xb1d   :  { %2597 = vsyncpa [#allocation13], 1 }
 0xb1e   :  { %2598 = vsyncpa [#allocation4], 1 }
 0xb1f   :  { %2599 = vsyncpa [#allocation16], 1 }
 0xb20   :  { %2600 = vsyncpa [#allocation5], 1 }
 0xb21   :  { %2601 = vsyncpa [#allocation7], 1 }

</bundles_post_ra>
